<compile_context>
chip_gen: v5e
topology: v5e:2x2
jax: 0.10.0
libtpu: 0.0.40
codegen_flags: <defaults>
</compile_context>

<pallas_src>
import functools
import math

import numpy as np
import jax
import jax.numpy as jnp
from jax.experimental import pallas as pl
from jax.experimental.pallas import tpu as pltpu

# MXU operand dtype (accumulation is always f32). Set to jnp.float32 to disable bf16.
MXU_DTYPE = jnp.bfloat16
LN_EPS = 1e-5


# ----------------------------- fused decoder-layer kernel -----------------------------

def _decoder_layer_kernel(
    # activations / mask biases
    x_ref, enc_ref, la_bias_ref, pad_bias_ref,
    # self-attention weights (fused QKV)
    wqkv1_ref, bqkv1_ref, wo1_ref, bo1_ref,
    # cross-attention weights (fused KV)
    wq2_ref, bq2_ref, wkv2_ref, bkv2_ref, wo2_ref, bo2_ref,
    # ffn weights
    w1_ref, b1_ref, w2_ref, b2_ref,
    # layernorm affines ([T, D] -- nn.LayerNorm([seq_len, d_model]))
    ln1w_ref, ln1b_ref, ln2w_ref, ln2b_ref, ln3w_ref, ln3b_ref,
    # outputs
    out_ref, attn1_ref, attn2_ref,
    *, num_heads, scale):
    x = x_ref[0]                 # [T, D]  f32
    enc = enc_ref[0]             # [S, D]  f32
    la_bias = la_bias_ref[0]     # [T, T]  f32, already mask * -1e9
    pad_bias = pad_bias_ref[0]   # [T, S]  f32, already mask * -1e9

    D = x.shape[-1]
    depth = D // num_heads
    cd = wqkv1_ref.dtype         # MXU operand dtype (bf16 or f32)

    def matmul(a, w_ref, b_ref):
        y = jnp.dot(a.astype(cd), w_ref[...],
                    preferred_element_type=jnp.float32)
        return y + b_ref[...]

    def layer_norm(y, w_ref, b_ref):
        # normalize over the whole [T, D] tile (matches nn.LayerNorm([T, D]),
        # biased variance); lane-reduce first (XLU), then combine across sublanes.
        n = y.shape[0] * y.shape[1]
        mean = jnp.sum(jnp.sum(y, axis=-1, keepdims=True),
                       axis=-2, keepdims=True) / n
        diff = y - mean
        var = jnp.sum(jnp.sum(diff * diff, axis=-1, keepdims=True),
                      axis=-2, keepdims=True) / n
        return diff * jax.lax.rsqrt(var + LN_EPS) * w_ref[...] + b_ref[...]

    def attention(q2d, k2d, v2d, bias, attn_w_ref):
        # All heads processed inside this one kernel invocation (static, unrolled
        # loop over heads); everything stays in vregs/VMEM -- no HBM transposes.
        ctx_heads = []
        for h in range(num_heads):
            lo, hi = h * depth, (h + 1) * depth
            qh = q2d[:, lo:hi].astype(cd)
            kh = k2d[:, lo:hi].astype(cd)
            vh = v2d[:, lo:hi].astype(cd)
            logits = jax.lax.dot_general(
                qh, kh, (((1,), (1,)), ((), ())),
                preferred_element_type=jnp.float32) * scale
            logits = logits + bias
            m = jnp.max(logits, axis=-1, keepdims=True)
            e = jnp.exp(logits - m)                                   # f32 softmax stats
            p = e * pl.reciprocal(jnp.sum(e, axis=-1, keepdims=True), approx=True)
            attn_w_ref[0, h] = p
            ctx_heads.append(jnp.dot(p.astype(cd), vh,
                                     preferred_element_type=jnp.float32))
        return jnp.concatenate(ctx_heads, axis=-1)                    # [Tq, D]

    # ---- block 1: masked self-attention + add & norm ----
    qkv1 = matmul(x, wqkv1_ref, bqkv1_ref)                            # [T, 3D]
    ctx1 = attention(qkv1[:, 0:D], qkv1[:, D:2 * D], qkv1[:, 2 * D:3 * D],
                     la_bias, attn1_ref)
    attn1_out = matmul(ctx1, wo1_ref, bo1_ref)
    out1 = layer_norm(attn1_out + x, ln1w_ref, ln1b_ref)

    # ---- block 2: cross-attention over encoder output + add & norm ----
    q2 = matmul(out1, wq2_ref, bq2_ref)                               # [T, D]
    kv2 = matmul(enc, wkv2_ref, bkv2_ref)                             # [S, 2D]
    ctx2 = attention(q2, kv2[:, 0:D], kv2[:, D:2 * D], pad_bias, attn2_ref)
    attn2_out = matmul(ctx2, wo2_ref, bo2_ref)
    out2 = layer_norm(attn2_out + out1, ln2w_ref, ln2b_ref)

    # ---- block 3: FFN + add & norm ----
    hidden = jnp.maximum(matmul(out2, w1_ref, b1_ref), 0.0)           # [T, dff]
    ffn_out = matmul(hidden, w2_ref, b2_ref)                          # [T, D]
    out_ref[0] = layer_norm(ffn_out + out2, ln3w_ref, ln3b_ref)


_WEIGHT_KEYS = ("wqkv1", "bqkv1", "wo1", "bo1",
                "wq2", "bq2", "wkv2", "bkv2", "wo2", "bo2",
                "w1", "b1", "w2", "b2",
                "ln1_w", "ln1_b", "ln2_w", "ln2_b", "ln3_w", "ln3_b")


def decoder_layer(x, enc, la_bias, pad_bias, lp, num_heads):
    B, T, D = x.shape
    S = enc.shape[1]
    H = num_heads
    scale = 1.0 / math.sqrt(D // H)

    weights = [lp[k] for k in _WEIGHT_KEYS]

    def bcast_spec(arr):
        nd = arr.ndim
        # whole-array block, same block every grid step (no re-DMA on revisit)
        return pl.BlockSpec(arr.shape, lambda b: (0,) * nd)

    in_specs = ([pl.BlockSpec((1, T, D), lambda b: (b, 0, 0)),
                 pl.BlockSpec((1, S, D), lambda b: (b, 0, 0)),
                 pl.BlockSpec((1, T, T), lambda b: (b, 0, 0)),
                 pl.BlockSpec((1, T, S), lambda b: (b, 0, 0))]
                + [bcast_spec(w) for w in weights])

    out_shape = (jax.ShapeDtypeStruct((B, T, D), jnp.float32),
                 jax.ShapeDtypeStruct((B, H, T, T), jnp.float32),
                 jax.ShapeDtypeStruct((B, H, T, S), jnp.float32))
    out_specs = (pl.BlockSpec((1, T, D), lambda b: (b, 0, 0)),
                 pl.BlockSpec((1, H, T, T), lambda b: (b, 0, 0, 0)),
                 pl.BlockSpec((1, H, T, S), lambda b: (b, 0, 0, 0)))

    return pl.pallas_call(
        functools.partial(_decoder_layer_kernel, num_heads=H, scale=scale),
        out_shape=out_shape,
        grid=(B,),
        in_specs=in_specs,
        out_specs=out_specs,
        compiler_params=pltpu.CompilerParams(
            dimension_semantics=("parallel",)),   # batch axis split across TCs (v7x)
    )(x, enc, la_bias, pad_bias, *weights)


# ----------------------------- model glue -----------------------------

def positional_encoding_np(position, d_model):
    pos = np.arange(position)[:, np.newaxis].astype(np.float32)
    i = np.arange(d_model)[np.newaxis, :]
    angle_rates = 1.0 / np.power(10000, (2 * (i // 2)) / np.float32(d_model))
    angle_rads = pos * angle_rates
    angle_rads[:, 0::2] = np.sin(angle_rads[:, 0::2])
    angle_rads[:, 1::2] = np.cos(angle_rads[:, 1::2])
    return jnp.asarray(angle_rads[np.newaxis, ...], dtype=jnp.float32)  # [1, P, D]


@functools.partial(jax.jit, static_argnames=("d_model", "num_heads"))
def decoder_forward(tokens, enc_output, look_ahead_mask, padding_mask,
                    params, d_model, num_heads):
    B, T = tokens.shape
    S = enc_output.shape[1]

    # embedding gather + scale + positional encoding: plain-JAX glue (fused by XLA under jit)
    x = jnp.take(params["embedding"], tokens, axis=0) * jnp.sqrt(jnp.float32(d_model))
    x = x + params["pos_encoding"][:, :T, :]
    # TODO(synk): nn.Dropout layers run in eval mode (identity); training RNG not reproduced.

    # additive mask biases (mask * -1e9), computed once per forward
    la_bias = jnp.broadcast_to(look_ahead_mask, (B, T, T)).astype(jnp.float32) * (-1e9)
    pad_bias = jnp.broadcast_to(padding_mask.reshape(B, 1, S),
                                (B, T, S)).astype(jnp.float32) * (-1e9)

    attention_weights = {}
    for i, lp in enumerate(params["layers"]):
        x, w1, w2 = decoder_layer(x, enc_output, la_bias, pad_bias, lp, num_heads)
        attention_weights["decoder_layer{}_block1".format(i + 1)] = w1
        attention_weights["decoder_layer{}_block2".format(i + 1)] = w2
    return x, attention_weights


def init_params(key, num_layers, d_model, num_heads, dff, target_size, max_pos, seq_len):
    """Kernel-ready params: projection weights pre-transposed to [Din, Dout],
    Q/K/V (and cross-attn K/V) fused along the output dim, MXU operands pre-cast."""

    def lin(k, out_dim, in_dim):
        k1, k2 = jax.random.split(k)
        bound = 1.0 / math.sqrt(in_dim)
        w = jax.random.uniform(k1, (out_dim, in_dim), jnp.float32, -bound, bound)
        b = jax.random.uniform(k2, (out_dim,), jnp.float32, -bound, bound)
        return w, b

    def wt(w):      # [Dout, Din] (PyTorch layout) -> [Din, Dout], MXU operand dtype
        return jnp.asarray(w.T, dtype=MXU_DTYPE)

    def bias(*bs):  # concat 1-D biases -> [1, N] f32
        return jnp.concatenate(bs).reshape(1, -1).astype(jnp.float32)

    keys = jax.random.split(key, num_layers + 1)
    embedding = jax.random.normal(keys[0], (target_size, d_model), jnp.float32)

    layers = []
    for li in range(num_layers):
        ks = jax.random.split(keys[li + 1], 10)
        wq1, bq1 = lin(ks[0], d_model, d_model)
        wk1, bk1 = lin(ks[1], d_model, d_model)
        wv1, bv1 = lin(ks[2], d_model, d_model)
        wo1, bo1 = lin(ks[3], d_model, d_model)
        wq2, bq2 = lin(ks[4], d_model, d_model)
        wk2, bk2 = lin(ks[5], d_model, d_model)
        wv2, bv2 = lin(ks[6], d_model, d_model)
        wo2, bo2 = lin(ks[7], d_model, d_model)
        w1, b1 = lin(ks[8], dff, d_model)
        w2, b2 = lin(ks[9], d_model, dff)
        # nn.LayerNorm([i+1, d_model]) default init: weight=1, bias=0. The forward
        # only ever uses the layernorm indexed by seq_len-1, so only that
        # [seq_len, d_model] affine is materialized.
        ln_w = jnp.ones((seq_len, d_model), jnp.float32)
        ln_b = jnp.zeros((seq_len, d_model), jnp.float32)
        layers.append(dict(
            wqkv1=jnp.concatenate([wt(wq1), wt(wk1), wt(wv1)], axis=1),  # [D, 3D]
            bqkv1=bias(bq1, bk1, bv1),                                   # [1, 3D]
            wo1=wt(wo1), bo1=bias(bo1),
            wq2=wt(wq2), bq2=bias(bq2),
            wkv2=jnp.concatenate([wt(wk2), wt(wv2)], axis=1),            # [D, 2D]
            bkv2=bias(bk2, bv2),                                         # [1, 2D]
            wo2=wt(wo2), bo2=bias(bo2),
            w1=wt(w1), b1=bias(b1),
            w2=wt(w2), b2=bias(b2),
            ln1_w=ln_w, ln1_b=ln_b,
            ln2_w=ln_w, ln2_b=ln_b,
            ln3_w=ln_w, ln3_b=ln_b))

    return dict(embedding=embedding,
                pos_encoding=positional_encoding_np(max_pos, d_model),
                layers=layers)


if __name__ == "__main__":
    num_layers, d_model, num_heads, dff = 2, 32, 4, 64
    target_size, max_pos = 16, 16
    B, T, S = 2, 8, 8

    key = jax.random.PRNGKey(0)
    kp, kt, ke = jax.random.split(key, 3)

    params = init_params(kp, num_layers, d_model, num_heads, dff,
                         target_size, max_pos, T)
    tokens = jax.random.randint(kt, (B, T), 0, target_size, dtype=jnp.int32)
    enc_output = jax.random.normal(ke, (B, S, d_model), jnp.float32)
    look_ahead_mask = jnp.triu(jnp.ones((T, T), jnp.float32), k=1)   # causal mask
    padding_mask = jnp.zeros((B, 1, 1, S), jnp.float32)

    out, attn = decoder_forward(tokens, enc_output, look_ahead_mask, padding_mask,
                                params, d_model, num_heads)
    jax.block_until_ready(out)
    for v in attn.values():
        jax.block_until_ready(v)

    assert out.shape == (B, T, d_model)
    assert out.dtype == jnp.float32
    assert attn["decoder_layer1_block1"].shape == (B, num_heads, T, T)
    assert attn["decoder_layer1_block2"].shape == (B, num_heads, T, S)
    assert attn["decoder_layer2_block1"].shape == (B, num_heads, T, T)
    print("KERNEL_OK")
</pallas_src>

<mosaic_0001>
module attributes {stable_mosaic.version = 11 : i64} {
  func.func @_decoder_layer_kernel(%arg0: i32, %arg1: memref<1x8x32xf32, #tpu.memory_space<vmem>>, %arg2: memref<1x8x32xf32, #tpu.memory_space<vmem>>, %arg3: memref<1x8x8xf32, #tpu.memory_space<vmem>>, %arg4: memref<1x8x8xf32, #tpu.memory_space<vmem>>, %arg5: memref<32x96xbf16, #tpu.memory_space<vmem>>, %arg6: memref<1x96xf32, #tpu.memory_space<vmem>>, %arg7: memref<32x32xbf16, #tpu.memory_space<vmem>>, %arg8: memref<1x32xf32, #tpu.memory_space<vmem>>, %arg9: memref<32x32xbf16, #tpu.memory_space<vmem>>, %arg10: memref<1x32xf32, #tpu.memory_space<vmem>>, %arg11: memref<32x64xbf16, #tpu.memory_space<vmem>>, %arg12: memref<1x64xf32, #tpu.memory_space<vmem>>, %arg13: memref<32x32xbf16, #tpu.memory_space<vmem>>, %arg14: memref<1x32xf32, #tpu.memory_space<vmem>>, %arg15: memref<32x64xbf16, #tpu.memory_space<vmem>>, %arg16: memref<1x64xf32, #tpu.memory_space<vmem>>, %arg17: memref<64x32xbf16, #tpu.memory_space<vmem>>, %arg18: memref<1x32xf32, #tpu.memory_space<vmem>>, %arg19: memref<8x32xf32, #tpu.memory_space<vmem>>, %arg20: memref<8x32xf32, #tpu.memory_space<vmem>>, %arg21: memref<8x32xf32, #tpu.memory_space<vmem>>, %arg22: memref<8x32xf32, #tpu.memory_space<vmem>>, %arg23: memref<8x32xf32, #tpu.memory_space<vmem>>, %arg24: memref<8x32xf32, #tpu.memory_space<vmem>>, %arg25: memref<1x8x32xf32, #tpu.memory_space<vmem>>, %arg26: memref<1x4x8x8xf32, #tpu.memory_space<vmem>>, %arg27: memref<1x4x8x8xf32, #tpu.memory_space<vmem>>) attributes {dimension_semantics = [#tpu.dimension_semantics<parallel>], iteration_bounds = array<i64: 2>, scalar_prefetch = 0 : i64, scratch_operands = 0 : i64, tpu.core_type = #tpu.core_type<tc>, window_params = [{transform_indices = @transform_0, window_bounds = array<i64: 1, 8, 32>}, {transform_indices = @transform_1, window_bounds = array<i64: 1, 8, 32>}, {transform_indices = @transform_2, window_bounds = array<i64: 1, 8, 8>}, {transform_indices = @transform_3, window_bounds = array<i64: 1, 8, 8>}, {pipeline_mode = #tpu.pipeline_mode<synchronous>, transform_indices = @transform_4, window_bounds = array<i64: 32, 96>}, {pipeline_mode = #tpu.pipeline_mode<synchronous>, transform_indices = @transform_5, window_bounds = array<i64: 1, 96>}, {pipeline_mode = #tpu.pipeline_mode<synchronous>, transform_indices = @transform_6, window_bounds = array<i64: 32, 32>}, {pipeline_mode = #tpu.pipeline_mode<synchronous>, transform_indices = @transform_7, window_bounds = array<i64: 1, 32>}, {pipeline_mode = #tpu.pipeline_mode<synchronous>, transform_indices = @transform_8, window_bounds = array<i64: 32, 32>}, {pipeline_mode = #tpu.pipeline_mode<synchronous>, transform_indices = @transform_9, window_bounds = array<i64: 1, 32>}, {pipeline_mode = #tpu.pipeline_mode<synchronous>, transform_indices = @transform_10, window_bounds = array<i64: 32, 64>}, {pipeline_mode = #tpu.pipeline_mode<synchronous>, transform_indices = @transform_11, window_bounds = array<i64: 1, 64>}, {pipeline_mode = #tpu.pipeline_mode<synchronous>, transform_indices = @transform_12, window_bounds = array<i64: 32, 32>}, {pipeline_mode = #tpu.pipeline_mode<synchronous>, transform_indices = @transform_13, window_bounds = array<i64: 1, 32>}, {pipeline_mode = #tpu.pipeline_mode<synchronous>, transform_indices = @transform_14, window_bounds = array<i64: 32, 64>}, {pipeline_mode = #tpu.pipeline_mode<synchronous>, transform_indices = @transform_15, window_bounds = array<i64: 1, 64>}, {pipeline_mode = #tpu.pipeline_mode<synchronous>, transform_indices = @transform_16, window_bounds = array<i64: 64, 32>}, {pipeline_mode = #tpu.pipeline_mode<synchronous>, transform_indices = @transform_17, window_bounds = array<i64: 1, 32>}, {pipeline_mode = #tpu.pipeline_mode<synchronous>, transform_indices = @transform_18, window_bounds = array<i64: 8, 32>}, {pipeline_mode = #tpu.pipeline_mode<synchronous>, transform_indices = @transform_19, window_bounds = array<i64: 8, 32>}, {pipeline_mode = #tpu.pipeline_mode<synchronous>, transform_indices = @transform_20, window_bounds = array<i64: 8, 32>}, {pipeline_mode = #tpu.pipeline_mode<synchronous>, transform_indices = @transform_21, window_bounds = array<i64: 8, 32>}, {pipeline_mode = #tpu.pipeline_mode<synchronous>, transform_indices = @transform_22, window_bounds = array<i64: 8, 32>}, {pipeline_mode = #tpu.pipeline_mode<synchronous>, transform_indices = @transform_23, window_bounds = array<i64: 8, 32>}, {transform_indices = @transform_24, window_bounds = array<i64: 1, 8, 32>}, {transform_indices = @transform_25, window_bounds = array<i64: 1, 4, 8, 8>}, {transform_indices = @transform_26, window_bounds = array<i64: 1, 4, 8, 8>}]} {
    %c0 = arith.constant 0 : index
    %c0_0 = arith.constant 0 : index
    %c0_1 = arith.constant 0 : index
    %0 = vector.load %arg1[%c0, %c0_0, %c0_1] : memref<1x8x32xf32, #tpu.memory_space<vmem>>, vector<1x8x32xf32>
    %1 = vector.shape_cast %0 : vector<1x8x32xf32> to vector<8x32xf32>
    %c0_2 = arith.constant 0 : index
    %c0_3 = arith.constant 0 : index
    %c0_4 = arith.constant 0 : index
    %2 = vector.load %arg2[%c0_2, %c0_3, %c0_4] : memref<1x8x32xf32, #tpu.memory_space<vmem>>, vector<1x8x32xf32>
    %3 = vector.shape_cast %2 : vector<1x8x32xf32> to vector<8x32xf32>
    %c0_5 = arith.constant 0 : index
    %c0_6 = arith.constant 0 : index
    %c0_7 = arith.constant 0 : index
    %4 = vector.load %arg3[%c0_5, %c0_6, %c0_7] : memref<1x8x8xf32, #tpu.memory_space<vmem>>, vector<1x8x8xf32>
    %5 = vector.shape_cast %4 : vector<1x8x8xf32> to vector<8x8xf32>
    %c0_8 = arith.constant 0 : index
    %c0_9 = arith.constant 0 : index
    %c0_10 = arith.constant 0 : index
    %6 = vector.load %arg4[%c0_8, %c0_9, %c0_10] : memref<1x8x8xf32, #tpu.memory_space<vmem>>, vector<1x8x8xf32>
    %7 = vector.shape_cast %6 : vector<1x8x8xf32> to vector<8x8xf32>
    %8 = arith.truncf %1 : vector<8x32xf32> to vector<8x32xbf16>
    %c0_11 = arith.constant 0 : index
    %c0_12 = arith.constant 0 : index
    %9 = vector.load %arg5[%c0_11, %c0_12] : memref<32x96xbf16, #tpu.memory_space<vmem>>, vector<32x96xbf16>
    %cst = arith.constant dense<0.000000e+00> : vector<8x96xf32>
    %10 = tpu.matmul %8, %9, %cst {dimension_numbers = #tpu.dot_dimension_numbers<[1], [0], [0], [1], [0, 0, 1, 1], [], []>} : vector<8x32xbf16>, vector<32x96xbf16>, vector<8x96xf32> -> vector<8x96xf32>
    %c0_13 = arith.constant 0 : index
    %c0_14 = arith.constant 0 : index
    %11 = vector.load %arg6[%c0_13, %c0_14] : memref<1x96xf32, #tpu.memory_space<vmem>>, vector<1x96xf32>
    %12 = vector.broadcast %11 : vector<1x96xf32> to vector<8x96xf32>
    %13 = arith.addf %10, %12 : vector<8x96xf32>
    %14 = vector.extract_strided_slice %13 {offsets = [0, 0], sizes = [8, 32], strides = [1, 1]} : vector<8x96xf32> to vector<8x32xf32>
    %15 = vector.extract_strided_slice %13 {offsets = [0, 32], sizes = [8, 32], strides = [1, 1]} : vector<8x96xf32> to vector<8x32xf32>
    %16 = vector.extract_strided_slice %13 {offsets = [0, 64], sizes = [8, 32], strides = [1, 1]} : vector<8x96xf32> to vector<8x32xf32>
    %17 = vector.extract_strided_slice %14 {offsets = [0, 0], sizes = [8, 8], strides = [1, 1]} : vector<8x32xf32> to vector<8x8xf32>
    %18 = arith.truncf %17 : vector<8x8xf32> to vector<8x8xbf16>
    %19 = vector.extract_strided_slice %15 {offsets = [0, 0], sizes = [8, 8], strides = [1, 1]} : vector<8x32xf32> to vector<8x8xf32>
    %20 = arith.truncf %19 : vector<8x8xf32> to vector<8x8xbf16>
    %21 = vector.extract_strided_slice %16 {offsets = [0, 0], sizes = [8, 8], strides = [1, 1]} : vector<8x32xf32> to vector<8x8xf32>
    %22 = arith.truncf %21 : vector<8x8xf32> to vector<8x8xbf16>
    %cst_15 = arith.constant dense<0.000000e+00> : vector<8x8xf32>
    %23 = tpu.matmul %18, %20, %cst_15 {dimension_numbers = #tpu.dot_dimension_numbers<[1], [1], [0], [0], [0, 0, 1, 0], [], []>} : vector<8x8xbf16>, vector<8x8xbf16>, vector<8x8xf32> -> vector<8x8xf32>
    %cst_16 = arith.constant 0.353553385 : f32
    %24 = vector.broadcast %cst_16 : f32 to vector<8x8xf32>
    %25 = arith.mulf %23, %24 : vector<8x8xf32>
    %26 = arith.addf %25, %5 : vector<8x8xf32>
    %cst_17 = arith.constant dense<0xFF800000> : vector<8xf32>
    %27 = vector.multi_reduction <maximumf>, %26, %cst_17 [1] : vector<8x8xf32> to vector<8xf32>
    %28 = vector.shape_cast %27 : vector<8xf32> to vector<8x1xf32>
    %29 = vector.broadcast %28 : vector<8x1xf32> to vector<8x8xf32>
    %30 = arith.subf %26, %29 : vector<8x8xf32>
    %31 = math.exp %30 : vector<8x8xf32>
    %cst_18 = arith.constant dense<0.000000e+00> : vector<8xf32>
    %32 = vector.multi_reduction <add>, %31, %cst_18 [1] : vector<8x8xf32> to vector<8xf32>
    %33 = vector.shape_cast %32 : vector<8xf32> to vector<8x1xf32>
    %34 = tpu.reciprocal %33 {approx = true} : vector<8x1xf32> -> vector<8x1xf32>
    %35 = vector.broadcast %34 : vector<8x1xf32> to vector<8x8xf32>
    %36 = arith.mulf %31, %35 : vector<8x8xf32>
    %c0_19 = arith.constant 0 : index
    %c0_20 = arith.constant 0 : index
    %c0_21 = arith.constant 0 : index
    %c0_22 = arith.constant 0 : index
    %37 = vector.load %arg26[%c0_19, %c0_20, %c0_21, %c0_22] : memref<1x4x8x8xf32, #tpu.memory_space<vmem>>, vector<1x1x8x8xf32>
    %38 = vector.shape_cast %37 : vector<1x1x8x8xf32> to vector<8x8xf32>
    %39 = vector.shape_cast %36 : vector<8x8xf32> to vector<1x1x8x8xf32>
    tpu.vector_store %arg26[%c0_19, %c0_20, %c0_21, %c0_22], %39 {strides = array<i32>} : memref<1x4x8x8xf32, #tpu.memory_space<vmem>>, vector<1x1x8x8xf32>,
    %40 = arith.truncf %36 : vector<8x8xf32> to vector<8x8xbf16>
    %cst_23 = arith.constant dense<0.000000e+00> : vector<8x8xf32>
    %41 = tpu.matmul %40, %22, %cst_23 {dimension_numbers = #tpu.dot_dimension_numbers<[1], [0], [0], [1], [0, 0, 1, 1], [], []>} : vector<8x8xbf16>, vector<8x8xbf16>, vector<8x8xf32> -> vector<8x8xf32>
    %42 = vector.extract_strided_slice %14 {offsets = [0, 8], sizes = [8, 8], strides = [1, 1]} : vector<8x32xf32> to vector<8x8xf32>
    %43 = arith.truncf %42 : vector<8x8xf32> to vector<8x8xbf16>
    %44 = vector.extract_strided_slice %15 {offsets = [0, 8], sizes = [8, 8], strides = [1, 1]} : vector<8x32xf32> to vector<8x8xf32>
    %45 = arith.truncf %44 : vector<8x8xf32> to vector<8x8xbf16>
    %46 = vector.extract_strided_slice %16 {offsets = [0, 8], sizes = [8, 8], strides = [1, 1]} : vector<8x32xf32> to vector<8x8xf32>
    %47 = arith.truncf %46 : vector<8x8xf32> to vector<8x8xbf16>
    %cst_24 = arith.constant dense<0.000000e+00> : vector<8x8xf32>
    %48 = tpu.matmul %43, %45, %cst_24 {dimension_numbers = #tpu.dot_dimension_numbers<[1], [1], [0], [0], [0, 0, 1, 0], [], []>} : vector<8x8xbf16>, vector<8x8xbf16>, vector<8x8xf32> -> vector<8x8xf32>
    %cst_25 = arith.constant 0.353553385 : f32
    %49 = vector.broadcast %cst_25 : f32 to vector<8x8xf32>
    %50 = arith.mulf %48, %49 : vector<8x8xf32>
    %51 = arith.addf %50, %5 : vector<8x8xf32>
    %cst_26 = arith.constant dense<0xFF800000> : vector<8xf32>
    %52 = vector.multi_reduction <maximumf>, %51, %cst_26 [1] : vector<8x8xf32> to vector<8xf32>
    %53 = vector.shape_cast %52 : vector<8xf32> to vector<8x1xf32>
    %54 = vector.broadcast %53 : vector<8x1xf32> to vector<8x8xf32>
    %55 = arith.subf %51, %54 : vector<8x8xf32>
    %56 = math.exp %55 : vector<8x8xf32>
    %cst_27 = arith.constant dense<0.000000e+00> : vector<8xf32>
    %57 = vector.multi_reduction <add>, %56, %cst_27 [1] : vector<8x8xf32> to vector<8xf32>
    %58 = vector.shape_cast %57 : vector<8xf32> to vector<8x1xf32>
    %59 = tpu.reciprocal %58 {approx = true} : vector<8x1xf32> -> vector<8x1xf32>
    %60 = vector.broadcast %59 : vector<8x1xf32> to vector<8x8xf32>
    %61 = arith.mulf %56, %60 : vector<8x8xf32>
    %c0_28 = arith.constant 0 : index
    %c1 = arith.constant 1 : index
    %c0_29 = arith.constant 0 : index
    %c0_30 = arith.constant 0 : index
    %62 = vector.load %arg26[%c0_28, %c1, %c0_29, %c0_30] : memref<1x4x8x8xf32, #tpu.memory_space<vmem>>, vector<1x1x8x8xf32>
    %63 = vector.shape_cast %62 : vector<1x1x8x8xf32> to vector<8x8xf32>
    %64 = vector.shape_cast %61 : vector<8x8xf32> to vector<1x1x8x8xf32>
    tpu.vector_store %arg26[%c0_28, %c1, %c0_29, %c0_30], %64 {strides = array<i32>} : memref<1x4x8x8xf32, #tpu.memory_space<vmem>>, vector<1x1x8x8xf32>,
    %65 = arith.truncf %61 : vector<8x8xf32> to vector<8x8xbf16>
    %cst_31 = arith.constant dense<0.000000e+00> : vector<8x8xf32>
    %66 = tpu.matmul %65, %47, %cst_31 {dimension_numbers = #tpu.dot_dimension_numbers<[1], [0], [0], [1], [0, 0, 1, 1], [], []>} : vector<8x8xbf16>, vector<8x8xbf16>, vector<8x8xf32> -> vector<8x8xf32>
    %67 = vector.extract_strided_slice %14 {offsets = [0, 16], sizes = [8, 8], strides = [1, 1]} : vector<8x32xf32> to vector<8x8xf32>
    %68 = arith.truncf %67 : vector<8x8xf32> to vector<8x8xbf16>
    %69 = vector.extract_strided_slice %15 {offsets = [0, 16], sizes = [8, 8], strides = [1, 1]} : vector<8x32xf32> to vector<8x8xf32>
    %70 = arith.truncf %69 : vector<8x8xf32> to vector<8x8xbf16>
    %71 = vector.extract_strided_slice %16 {offsets = [0, 16], sizes = [8, 8], strides = [1, 1]} : vector<8x32xf32> to vector<8x8xf32>
    %72 = arith.truncf %71 : vector<8x8xf32> to vector<8x8xbf16>
    %cst_32 = arith.constant dense<0.000000e+00> : vector<8x8xf32>
    %73 = tpu.matmul %68, %70, %cst_32 {dimension_numbers = #tpu.dot_dimension_numbers<[1], [1], [0], [0], [0, 0, 1, 0], [], []>} : vector<8x8xbf16>, vector<8x8xbf16>, vector<8x8xf32> -> vector<8x8xf32>
    %cst_33 = arith.constant 0.353553385 : f32
    %74 = vector.broadcast %cst_33 : f32 to vector<8x8xf32>
    %75 = arith.mulf %73, %74 : vector<8x8xf32>
    %76 = arith.addf %75, %5 : vector<8x8xf32>
    %cst_34 = arith.constant dense<0xFF800000> : vector<8xf32>
    %77 = vector.multi_reduction <maximumf>, %76, %cst_34 [1] : vector<8x8xf32> to vector<8xf32>
    %78 = vector.shape_cast %77 : vector<8xf32> to vector<8x1xf32>
    %79 = vector.broadcast %78 : vector<8x1xf32> to vector<8x8xf32>
    %80 = arith.subf %76, %79 : vector<8x8xf32>
    %81 = math.exp %80 : vector<8x8xf32>
    %cst_35 = arith.constant dense<0.000000e+00> : vector<8xf32>
    %82 = vector.multi_reduction <add>, %81, %cst_35 [1] : vector<8x8xf32> to vector<8xf32>
    %83 = vector.shape_cast %82 : vector<8xf32> to vector<8x1xf32>
    %84 = tpu.reciprocal %83 {approx = true} : vector<8x1xf32> -> vector<8x1xf32>
    %85 = vector.broadcast %84 : vector<8x1xf32> to vector<8x8xf32>
    %86 = arith.mulf %81, %85 : vector<8x8xf32>
    %c0_36 = arith.constant 0 : index
    %c2 = arith.constant 2 : index
    %c0_37 = arith.constant 0 : index
    %c0_38 = arith.constant 0 : index
    %87 = vector.load %arg26[%c0_36, %c2, %c0_37, %c0_38] : memref<1x4x8x8xf32, #tpu.memory_space<vmem>>, vector<1x1x8x8xf32>
    %88 = vector.shape_cast %87 : vector<1x1x8x8xf32> to vector<8x8xf32>
    %89 = vector.shape_cast %86 : vector<8x8xf32> to vector<1x1x8x8xf32>
    tpu.vector_store %arg26[%c0_36, %c2, %c0_37, %c0_38], %89 {strides = array<i32>} : memref<1x4x8x8xf32, #tpu.memory_space<vmem>>, vector<1x1x8x8xf32>,
    %90 = arith.truncf %86 : vector<8x8xf32> to vector<8x8xbf16>
    %cst_39 = arith.constant dense<0.000000e+00> : vector<8x8xf32>
    %91 = tpu.matmul %90, %72, %cst_39 {dimension_numbers = #tpu.dot_dimension_numbers<[1], [0], [0], [1], [0, 0, 1, 1], [], []>} : vector<8x8xbf16>, vector<8x8xbf16>, vector<8x8xf32> -> vector<8x8xf32>
    %92 = vector.extract_strided_slice %14 {offsets = [0, 24], sizes = [8, 8], strides = [1, 1]} : vector<8x32xf32> to vector<8x8xf32>
    %93 = arith.truncf %92 : vector<8x8xf32> to vector<8x8xbf16>
    %94 = vector.extract_strided_slice %15 {offsets = [0, 24], sizes = [8, 8], strides = [1, 1]} : vector<8x32xf32> to vector<8x8xf32>
    %95 = arith.truncf %94 : vector<8x8xf32> to vector<8x8xbf16>
    %96 = vector.extract_strided_slice %16 {offsets = [0, 24], sizes = [8, 8], strides = [1, 1]} : vector<8x32xf32> to vector<8x8xf32>
    %97 = arith.truncf %96 : vector<8x8xf32> to vector<8x8xbf16>
    %cst_40 = arith.constant dense<0.000000e+00> : vector<8x8xf32>
    %98 = tpu.matmul %93, %95, %cst_40 {dimension_numbers = #tpu.dot_dimension_numbers<[1], [1], [0], [0], [0, 0, 1, 0], [], []>} : vector<8x8xbf16>, vector<8x8xbf16>, vector<8x8xf32> -> vector<8x8xf32>
    %cst_41 = arith.constant 0.353553385 : f32
    %99 = vector.broadcast %cst_41 : f32 to vector<8x8xf32>
    %100 = arith.mulf %98, %99 : vector<8x8xf32>
    %101 = arith.addf %100, %5 : vector<8x8xf32>
    %cst_42 = arith.constant dense<0xFF800000> : vector<8xf32>
    %102 = vector.multi_reduction <maximumf>, %101, %cst_42 [1] : vector<8x8xf32> to vector<8xf32>
    %103 = vector.shape_cast %102 : vector<8xf32> to vector<8x1xf32>
    %104 = vector.broadcast %103 : vector<8x1xf32> to vector<8x8xf32>
    %105 = arith.subf %101, %104 : vector<8x8xf32>
    %106 = math.exp %105 : vector<8x8xf32>
    %cst_43 = arith.constant dense<0.000000e+00> : vector<8xf32>
    %107 = vector.multi_reduction <add>, %106, %cst_43 [1] : vector<8x8xf32> to vector<8xf32>
    %108 = vector.shape_cast %107 : vector<8xf32> to vector<8x1xf32>
    %109 = tpu.reciprocal %108 {approx = true} : vector<8x1xf32> -> vector<8x1xf32>
    %110 = vector.broadcast %109 : vector<8x1xf32> to vector<8x8xf32>
    %111 = arith.mulf %106, %110 : vector<8x8xf32>
    %c0_44 = arith.constant 0 : index
    %c3 = arith.constant 3 : index
    %c0_45 = arith.constant 0 : index
    %c0_46 = arith.constant 0 : index
    %112 = vector.load %arg26[%c0_44, %c3, %c0_45, %c0_46] : memref<1x4x8x8xf32, #tpu.memory_space<vmem>>, vector<1x1x8x8xf32>
    %113 = vector.shape_cast %112 : vector<1x1x8x8xf32> to vector<8x8xf32>
    %114 = vector.shape_cast %111 : vector<8x8xf32> to vector<1x1x8x8xf32>
    tpu.vector_store %arg26[%c0_44, %c3, %c0_45, %c0_46], %114 {strides = array<i32>} : memref<1x4x8x8xf32, #tpu.memory_space<vmem>>, vector<1x1x8x8xf32>,
    %115 = arith.truncf %111 : vector<8x8xf32> to vector<8x8xbf16>
    %cst_47 = arith.constant dense<0.000000e+00> : vector<8x8xf32>
    %116 = tpu.matmul %115, %97, %cst_47 {dimension_numbers = #tpu.dot_dimension_numbers<[1], [0], [0], [1], [0, 0, 1, 1], [], []>} : vector<8x8xbf16>, vector<8x8xbf16>, vector<8x8xf32> -> vector<8x8xf32>
    %117 = tpu.concatenate %41, %66, %91, %116 in 1 : vector<8x8xf32>, vector<8x8xf32>, vector<8x8xf32>, vector<8x8xf32> -> vector<8x32xf32>
    %118 = arith.truncf %117 : vector<8x32xf32> to vector<8x32xbf16>
    %c0_48 = arith.constant 0 : index
    %c0_49 = arith.constant 0 : index
    %119 = vector.load %arg7[%c0_48, %c0_49] : memref<32x32xbf16, #tpu.memory_space<vmem>>, vector<32x32xbf16>
    %cst_50 = arith.constant dense<0.000000e+00> : vector<8x32xf32>
    %120 = tpu.matmul %118, %119, %cst_50 {dimension_numbers = #tpu.dot_dimension_numbers<[1], [0], [0], [1], [0, 0, 1, 1], [], []>} : vector<8x32xbf16>, vector<32x32xbf16>, vector<8x32xf32> -> vector<8x32xf32>
    %c0_51 = arith.constant 0 : index
    %c0_52 = arith.constant 0 : index
    %121 = vector.load %arg8[%c0_51, %c0_52] : memref<1x32xf32, #tpu.memory_space<vmem>>, vector<1x32xf32>
    %122 = vector.broadcast %121 : vector<1x32xf32> to vector<8x32xf32>
    %123 = arith.addf %120, %122 : vector<8x32xf32>
    %124 = arith.addf %123, %1 : vector<8x32xf32>
    %cst_53 = arith.constant dense<0.000000e+00> : vector<8xf32>
    %125 = vector.multi_reduction <add>, %124, %cst_53 [1] : vector<8x32xf32> to vector<8xf32>
    %126 = vector.shape_cast %125 : vector<8xf32> to vector<8x1xf32>
    %cst_54 = arith.constant dense<0.000000e+00> : vector<1xf32>
    %127 = vector.multi_reduction <add>, %126, %cst_54 [0] : vector<8x1xf32> to vector<1xf32>
    %128 = vector.shape_cast %127 : vector<1xf32> to vector<1x1xf32>
    %cst_55 = arith.constant 2.560000e+02 : f32
    %129 = vector.broadcast %cst_55 : f32 to vector<1x1xf32>
    %130 = arith.divf %128, %129 : vector<1x1xf32>
    %131 = vector.broadcast %130 : vector<1x1xf32> to vector<8x32xf32>
    %132 = arith.subf %124, %131 : vector<8x32xf32>
    %133 = arith.mulf %132, %132 : vector<8x32xf32>
    %cst_56 = arith.constant dense<0.000000e+00> : vector<8xf32>
    %134 = vector.multi_reduction <add>, %133, %cst_56 [1] : vector<8x32xf32> to vector<8xf32>
    %135 = vector.shape_cast %134 : vector<8xf32> to vector<8x1xf32>
    %cst_57 = arith.constant dense<0.000000e+00> : vector<1xf32>
    %136 = vector.multi_reduction <add>, %135, %cst_57 [0] : vector<8x1xf32> to vector<1xf32>
    %137 = vector.shape_cast %136 : vector<1xf32> to vector<1x1xf32>
    %cst_58 = arith.constant 2.560000e+02 : f32
    %138 = vector.broadcast %cst_58 : f32 to vector<1x1xf32>
    %139 = arith.divf %137, %138 : vector<1x1xf32>
    %cst_59 = arith.constant 9.99999974E-6 : f32
    %140 = vector.broadcast %cst_59 : f32 to vector<1x1xf32>
    %141 = arith.addf %139, %140 : vector<1x1xf32>
    %142 = math.rsqrt %141 : vector<1x1xf32>
    %143 = vector.broadcast %142 : vector<1x1xf32> to vector<8x32xf32>
    %144 = arith.mulf %132, %143 : vector<8x32xf32>
    %c0_60 = arith.constant 0 : index
    %c0_61 = arith.constant 0 : index
    %145 = vector.load %arg19[%c0_60, %c0_61] : memref<8x32xf32, #tpu.memory_space<vmem>>, vector<8x32xf32>
    %146 = arith.mulf %144, %145 : vector<8x32xf32>
    %c0_62 = arith.constant 0 : index
    %c0_63 = arith.constant 0 : index
    %147 = vector.load %arg20[%c0_62, %c0_63] : memref<8x32xf32, #tpu.memory_space<vmem>>, vector<8x32xf32>
    %148 = arith.addf %146, %147 : vector<8x32xf32>
    %149 = arith.truncf %148 : vector<8x32xf32> to vector<8x32xbf16>
    %c0_64 = arith.constant 0 : index
    %c0_65 = arith.constant 0 : index
    %150 = vector.load %arg9[%c0_64, %c0_65] : memref<32x32xbf16, #tpu.memory_space<vmem>>, vector<32x32xbf16>
    %cst_66 = arith.constant dense<0.000000e+00> : vector<8x32xf32>
    %151 = tpu.matmul %149, %150, %cst_66 {dimension_numbers = #tpu.dot_dimension_numbers<[1], [0], [0], [1], [0, 0, 1, 1], [], []>} : vector<8x32xbf16>, vector<32x32xbf16>, vector<8x32xf32> -> vector<8x32xf32>
    %c0_67 = arith.constant 0 : index
    %c0_68 = arith.constant 0 : index
    %152 = vector.load %arg10[%c0_67, %c0_68] : memref<1x32xf32, #tpu.memory_space<vmem>>, vector<1x32xf32>
    %153 = vector.broadcast %152 : vector<1x32xf32> to vector<8x32xf32>
    %154 = arith.addf %151, %153 : vector<8x32xf32>
    %155 = arith.truncf %3 : vector<8x32xf32> to vector<8x32xbf16>
    %c0_69 = arith.constant 0 : index
    %c0_70 = arith.constant 0 : index
    %156 = vector.load %arg11[%c0_69, %c0_70] : memref<32x64xbf16, #tpu.memory_space<vmem>>, vector<32x64xbf16>
    %cst_71 = arith.constant dense<0.000000e+00> : vector<8x64xf32>
    %157 = tpu.matmul %155, %156, %cst_71 {dimension_numbers = #tpu.dot_dimension_numbers<[1], [0], [0], [1], [0, 0, 1, 1], [], []>} : vector<8x32xbf16>, vector<32x64xbf16>, vector<8x64xf32> -> vector<8x64xf32>
    %c0_72 = arith.constant 0 : index
    %c0_73 = arith.constant 0 : index
    %158 = vector.load %arg12[%c0_72, %c0_73] : memref<1x64xf32, #tpu.memory_space<vmem>>, vector<1x64xf32>
    %159 = vector.broadcast %158 : vector<1x64xf32> to vector<8x64xf32>
    %160 = arith.addf %157, %159 : vector<8x64xf32>
    %161 = vector.extract_strided_slice %160 {offsets = [0, 0], sizes = [8, 32], strides = [1, 1]} : vector<8x64xf32> to vector<8x32xf32>
    %162 = vector.extract_strided_slice %160 {offsets = [0, 32], sizes = [8, 32], strides = [1, 1]} : vector<8x64xf32> to vector<8x32xf32>
    %163 = vector.extract_strided_slice %154 {offsets = [0, 0], sizes = [8, 8], strides = [1, 1]} : vector<8x32xf32> to vector<8x8xf32>
    %164 = arith.truncf %163 : vector<8x8xf32> to vector<8x8xbf16>
    %165 = vector.extract_strided_slice %161 {offsets = [0, 0], sizes = [8, 8], strides = [1, 1]} : vector<8x32xf32> to vector<8x8xf32>
    %166 = arith.truncf %165 : vector<8x8xf32> to vector<8x8xbf16>
    %167 = vector.extract_strided_slice %162 {offsets = [0, 0], sizes = [8, 8], strides = [1, 1]} : vector<8x32xf32> to vector<8x8xf32>
    %168 = arith.truncf %167 : vector<8x8xf32> to vector<8x8xbf16>
    %cst_74 = arith.constant dense<0.000000e+00> : vector<8x8xf32>
    %169 = tpu.matmul %164, %166, %cst_74 {dimension_numbers = #tpu.dot_dimension_numbers<[1], [1], [0], [0], [0, 0, 1, 0], [], []>} : vector<8x8xbf16>, vector<8x8xbf16>, vector<8x8xf32> -> vector<8x8xf32>
    %cst_75 = arith.constant 0.353553385 : f32
    %170 = vector.broadcast %cst_75 : f32 to vector<8x8xf32>
    %171 = arith.mulf %169, %170 : vector<8x8xf32>
    %172 = arith.addf %171, %7 : vector<8x8xf32>
    %cst_76 = arith.constant dense<0xFF800000> : vector<8xf32>
    %173 = vector.multi_reduction <maximumf>, %172, %cst_76 [1] : vector<8x8xf32> to vector<8xf32>
    %174 = vector.shape_cast %173 : vector<8xf32> to vector<8x1xf32>
    %175 = vector.broadcast %174 : vector<8x1xf32> to vector<8x8xf32>
    %176 = arith.subf %172, %175 : vector<8x8xf32>
    %177 = math.exp %176 : vector<8x8xf32>
    %cst_77 = arith.constant dense<0.000000e+00> : vector<8xf32>
    %178 = vector.multi_reduction <add>, %177, %cst_77 [1] : vector<8x8xf32> to vector<8xf32>
    %179 = vector.shape_cast %178 : vector<8xf32> to vector<8x1xf32>
    %180 = tpu.reciprocal %179 {approx = true} : vector<8x1xf32> -> vector<8x1xf32>
    %181 = vector.broadcast %180 : vector<8x1xf32> to vector<8x8xf32>
    %182 = arith.mulf %177, %181 : vector<8x8xf32>
    %c0_78 = arith.constant 0 : index
    %c0_79 = arith.constant 0 : index
    %c0_80 = arith.constant 0 : index
    %c0_81 = arith.constant 0 : index
    %183 = vector.load %arg27[%c0_78, %c0_79, %c0_80, %c0_81] : memref<1x4x8x8xf32, #tpu.memory_space<vmem>>, vector<1x1x8x8xf32>
    %184 = vector.shape_cast %183 : vector<1x1x8x8xf32> to vector<8x8xf32>
    %185 = vector.shape_cast %182 : vector<8x8xf32> to vector<1x1x8x8xf32>
    tpu.vector_store %arg27[%c0_78, %c0_79, %c0_80, %c0_81], %185 {strides = array<i32>} : memref<1x4x8x8xf32, #tpu.memory_space<vmem>>, vector<1x1x8x8xf32>,
    %186 = arith.truncf %182 : vector<8x8xf32> to vector<8x8xbf16>
    %cst_82 = arith.constant dense<0.000000e+00> : vector<8x8xf32>
    %187 = tpu.matmul %186, %168, %cst_82 {dimension_numbers = #tpu.dot_dimension_numbers<[1], [0], [0], [1], [0, 0, 1, 1], [], []>} : vector<8x8xbf16>, vector<8x8xbf16>, vector<8x8xf32> -> vector<8x8xf32>
    %188 = vector.extract_strided_slice %154 {offsets = [0, 8], sizes = [8, 8], strides = [1, 1]} : vector<8x32xf32> to vector<8x8xf32>
    %189 = arith.truncf %188 : vector<8x8xf32> to vector<8x8xbf16>
    %190 = vector.extract_strided_slice %161 {offsets = [0, 8], sizes = [8, 8], strides = [1, 1]} : vector<8x32xf32> to vector<8x8xf32>
    %191 = arith.truncf %190 : vector<8x8xf32> to vector<8x8xbf16>
    %192 = vector.extract_strided_slice %162 {offsets = [0, 8], sizes = [8, 8], strides = [1, 1]} : vector<8x32xf32> to vector<8x8xf32>
    %193 = arith.truncf %192 : vector<8x8xf32> to vector<8x8xbf16>
    %cst_83 = arith.constant dense<0.000000e+00> : vector<8x8xf32>
    %194 = tpu.matmul %189, %191, %cst_83 {dimension_numbers = #tpu.dot_dimension_numbers<[1], [1], [0], [0], [0, 0, 1, 0], [], []>} : vector<8x8xbf16>, vector<8x8xbf16>, vector<8x8xf32> -> vector<8x8xf32>
    %cst_84 = arith.constant 0.353553385 : f32
    %195 = vector.broadcast %cst_84 : f32 to vector<8x8xf32>
    %196 = arith.mulf %194, %195 : vector<8x8xf32>
    %197 = arith.addf %196, %7 : vector<8x8xf32>
    %cst_85 = arith.constant dense<0xFF800000> : vector<8xf32>
    %198 = vector.multi_reduction <maximumf>, %197, %cst_85 [1] : vector<8x8xf32> to vector<8xf32>
    %199 = vector.shape_cast %198 : vector<8xf32> to vector<8x1xf32>
    %200 = vector.broadcast %199 : vector<8x1xf32> to vector<8x8xf32>
    %201 = arith.subf %197, %200 : vector<8x8xf32>
    %202 = math.exp %201 : vector<8x8xf32>
    %cst_86 = arith.constant dense<0.000000e+00> : vector<8xf32>
    %203 = vector.multi_reduction <add>, %202, %cst_86 [1] : vector<8x8xf32> to vector<8xf32>
    %204 = vector.shape_cast %203 : vector<8xf32> to vector<8x1xf32>
    %205 = tpu.reciprocal %204 {approx = true} : vector<8x1xf32> -> vector<8x1xf32>
    %206 = vector.broadcast %205 : vector<8x1xf32> to vector<8x8xf32>
    %207 = arith.mulf %202, %206 : vector<8x8xf32>
    %c0_87 = arith.constant 0 : index
    %c1_88 = arith.constant 1 : index
    %c0_89 = arith.constant 0 : index
    %c0_90 = arith.constant 0 : index
    %208 = vector.load %arg27[%c0_87, %c1_88, %c0_89, %c0_90] : memref<1x4x8x8xf32, #tpu.memory_space<vmem>>, vector<1x1x8x8xf32>
    %209 = vector.shape_cast %208 : vector<1x1x8x8xf32> to vector<8x8xf32>
    %210 = vector.shape_cast %207 : vector<8x8xf32> to vector<1x1x8x8xf32>
    tpu.vector_store %arg27[%c0_87, %c1_88, %c0_89, %c0_90], %210 {strides = array<i32>} : memref<1x4x8x8xf32, #tpu.memory_space<vmem>>, vector<1x1x8x8xf32>,
    %211 = arith.truncf %207 : vector<8x8xf32> to vector<8x8xbf16>
    %cst_91 = arith.constant dense<0.000000e+00> : vector<8x8xf32>
    %212 = tpu.matmul %211, %193, %cst_91 {dimension_numbers = #tpu.dot_dimension_numbers<[1], [0], [0], [1], [0, 0, 1, 1], [], []>} : vector<8x8xbf16>, vector<8x8xbf16>, vector<8x8xf32> -> vector<8x8xf32>
    %213 = vector.extract_strided_slice %154 {offsets = [0, 16], sizes = [8, 8], strides = [1, 1]} : vector<8x32xf32> to vector<8x8xf32>
    %214 = arith.truncf %213 : vector<8x8xf32> to vector<8x8xbf16>
    %215 = vector.extract_strided_slice %161 {offsets = [0, 16], sizes = [8, 8], strides = [1, 1]} : vector<8x32xf32> to vector<8x8xf32>
    %216 = arith.truncf %215 : vector<8x8xf32> to vector<8x8xbf16>
    %217 = vector.extract_strided_slice %162 {offsets = [0, 16], sizes = [8, 8], strides = [1, 1]} : vector<8x32xf32> to vector<8x8xf32>
    %218 = arith.truncf %217 : vector<8x8xf32> to vector<8x8xbf16>
    %cst_92 = arith.constant dense<0.000000e+00> : vector<8x8xf32>
    %219 = tpu.matmul %214, %216, %cst_92 {dimension_numbers = #tpu.dot_dimension_numbers<[1], [1], [0], [0], [0, 0, 1, 0], [], []>} : vector<8x8xbf16>, vector<8x8xbf16>, vector<8x8xf32> -> vector<8x8xf32>
    %cst_93 = arith.constant 0.353553385 : f32
    %220 = vector.broadcast %cst_93 : f32 to vector<8x8xf32>
    %221 = arith.mulf %219, %220 : vector<8x8xf32>
    %222 = arith.addf %221, %7 : vector<8x8xf32>
    %cst_94 = arith.constant dense<0xFF800000> : vector<8xf32>
    %223 = vector.multi_reduction <maximumf>, %222, %cst_94 [1] : vector<8x8xf32> to vector<8xf32>
    %224 = vector.shape_cast %223 : vector<8xf32> to vector<8x1xf32>
    %225 = vector.broadcast %224 : vector<8x1xf32> to vector<8x8xf32>
    %226 = arith.subf %222, %225 : vector<8x8xf32>
    %227 = math.exp %226 : vector<8x8xf32>
    %cst_95 = arith.constant dense<0.000000e+00> : vector<8xf32>
    %228 = vector.multi_reduction <add>, %227, %cst_95 [1] : vector<8x8xf32> to vector<8xf32>
    %229 = vector.shape_cast %228 : vector<8xf32> to vector<8x1xf32>
    %230 = tpu.reciprocal %229 {approx = true} : vector<8x1xf32> -> vector<8x1xf32>
    %231 = vector.broadcast %230 : vector<8x1xf32> to vector<8x8xf32>
    %232 = arith.mulf %227, %231 : vector<8x8xf32>
    %c0_96 = arith.constant 0 : index
    %c2_97 = arith.constant 2 : index
    %c0_98 = arith.constant 0 : index
    %c0_99 = arith.constant 0 : index
    %233 = vector.load %arg27[%c0_96, %c2_97, %c0_98, %c0_99] : memref<1x4x8x8xf32, #tpu.memory_space<vmem>>, vector<1x1x8x8xf32>
    %234 = vector.shape_cast %233 : vector<1x1x8x8xf32> to vector<8x8xf32>
    %235 = vector.shape_cast %232 : vector<8x8xf32> to vector<1x1x8x8xf32>
    tpu.vector_store %arg27[%c0_96, %c2_97, %c0_98, %c0_99], %235 {strides = array<i32>} : memref<1x4x8x8xf32, #tpu.memory_space<vmem>>, vector<1x1x8x8xf32>,
    %236 = arith.truncf %232 : vector<8x8xf32> to vector<8x8xbf16>
    %cst_100 = arith.constant dense<0.000000e+00> : vector<8x8xf32>
    %237 = tpu.matmul %236, %218, %cst_100 {dimension_numbers = #tpu.dot_dimension_numbers<[1], [0], [0], [1], [0, 0, 1, 1], [], []>} : vector<8x8xbf16>, vector<8x8xbf16>, vector<8x8xf32> -> vector<8x8xf32>
    %238 = vector.extract_strided_slice %154 {offsets = [0, 24], sizes = [8, 8], strides = [1, 1]} : vector<8x32xf32> to vector<8x8xf32>
    %239 = arith.truncf %238 : vector<8x8xf32> to vector<8x8xbf16>
    %240 = vector.extract_strided_slice %161 {offsets = [0, 24], sizes = [8, 8], strides = [1, 1]} : vector<8x32xf32> to vector<8x8xf32>
    %241 = arith.truncf %240 : vector<8x8xf32> to vector<8x8xbf16>
    %242 = vector.extract_strided_slice %162 {offsets = [0, 24], sizes = [8, 8], strides = [1, 1]} : vector<8x32xf32> to vector<8x8xf32>
    %243 = arith.truncf %242 : vector<8x8xf32> to vector<8x8xbf16>
    %cst_101 = arith.constant dense<0.000000e+00> : vector<8x8xf32>
    %244 = tpu.matmul %239, %241, %cst_101 {dimension_numbers = #tpu.dot_dimension_numbers<[1], [1], [0], [0], [0, 0, 1, 0], [], []>} : vector<8x8xbf16>, vector<8x8xbf16>, vector<8x8xf32> -> vector<8x8xf32>
    %cst_102 = arith.constant 0.353553385 : f32
    %245 = vector.broadcast %cst_102 : f32 to vector<8x8xf32>
    %246 = arith.mulf %244, %245 : vector<8x8xf32>
    %247 = arith.addf %246, %7 : vector<8x8xf32>
    %cst_103 = arith.constant dense<0xFF800000> : vector<8xf32>
    %248 = vector.multi_reduction <maximumf>, %247, %cst_103 [1] : vector<8x8xf32> to vector<8xf32>
    %249 = vector.shape_cast %248 : vector<8xf32> to vector<8x1xf32>
    %250 = vector.broadcast %249 : vector<8x1xf32> to vector<8x8xf32>
    %251 = arith.subf %247, %250 : vector<8x8xf32>
    %252 = math.exp %251 : vector<8x8xf32>
    %cst_104 = arith.constant dense<0.000000e+00> : vector<8xf32>
    %253 = vector.multi_reduction <add>, %252, %cst_104 [1] : vector<8x8xf32> to vector<8xf32>
    %254 = vector.shape_cast %253 : vector<8xf32> to vector<8x1xf32>
    %255 = tpu.reciprocal %254 {approx = true} : vector<8x1xf32> -> vector<8x1xf32>
    %256 = vector.broadcast %255 : vector<8x1xf32> to vector<8x8xf32>
    %257 = arith.mulf %252, %256 : vector<8x8xf32>
    %c0_105 = arith.constant 0 : index
    %c3_106 = arith.constant 3 : index
    %c0_107 = arith.constant 0 : index
    %c0_108 = arith.constant 0 : index
    %258 = vector.load %arg27[%c0_105, %c3_106, %c0_107, %c0_108] : memref<1x4x8x8xf32, #tpu.memory_space<vmem>>, vector<1x1x8x8xf32>
    %259 = vector.shape_cast %258 : vector<1x1x8x8xf32> to vector<8x8xf32>
    %260 = vector.shape_cast %257 : vector<8x8xf32> to vector<1x1x8x8xf32>
    tpu.vector_store %arg27[%c0_105, %c3_106, %c0_107, %c0_108], %260 {strides = array<i32>} : memref<1x4x8x8xf32, #tpu.memory_space<vmem>>, vector<1x1x8x8xf32>,
    %261 = arith.truncf %257 : vector<8x8xf32> to vector<8x8xbf16>
    %cst_109 = arith.constant dense<0.000000e+00> : vector<8x8xf32>
    %262 = tpu.matmul %261, %243, %cst_109 {dimension_numbers = #tpu.dot_dimension_numbers<[1], [0], [0], [1], [0, 0, 1, 1], [], []>} : vector<8x8xbf16>, vector<8x8xbf16>, vector<8x8xf32> -> vector<8x8xf32>
    %263 = tpu.concatenate %187, %212, %237, %262 in 1 : vector<8x8xf32>, vector<8x8xf32>, vector<8x8xf32>, vector<8x8xf32> -> vector<8x32xf32>
    %264 = arith.truncf %263 : vector<8x32xf32> to vector<8x32xbf16>
    %c0_110 = arith.constant 0 : index
    %c0_111 = arith.constant 0 : index
    %265 = vector.load %arg13[%c0_110, %c0_111] : memref<32x32xbf16, #tpu.memory_space<vmem>>, vector<32x32xbf16>
    %cst_112 = arith.constant dense<0.000000e+00> : vector<8x32xf32>
    %266 = tpu.matmul %264, %265, %cst_112 {dimension_numbers = #tpu.dot_dimension_numbers<[1], [0], [0], [1], [0, 0, 1, 1], [], []>} : vector<8x32xbf16>, vector<32x32xbf16>, vector<8x32xf32> -> vector<8x32xf32>
    %c0_113 = arith.constant 0 : index
    %c0_114 = arith.constant 0 : index
    %267 = vector.load %arg14[%c0_113, %c0_114] : memref<1x32xf32, #tpu.memory_space<vmem>>, vector<1x32xf32>
    %268 = vector.broadcast %267 : vector<1x32xf32> to vector<8x32xf32>
    %269 = arith.addf %266, %268 : vector<8x32xf32>
    %270 = arith.addf %269, %148 : vector<8x32xf32>
    %cst_115 = arith.constant dense<0.000000e+00> : vector<8xf32>
    %271 = vector.multi_reduction <add>, %270, %cst_115 [1] : vector<8x32xf32> to vector<8xf32>
    %272 = vector.shape_cast %271 : vector<8xf32> to vector<8x1xf32>
    %cst_116 = arith.constant dense<0.000000e+00> : vector<1xf32>
    %273 = vector.multi_reduction <add>, %272, %cst_116 [0] : vector<8x1xf32> to vector<1xf32>
    %274 = vector.shape_cast %273 : vector<1xf32> to vector<1x1xf32>
    %cst_117 = arith.constant 2.560000e+02 : f32
    %275 = vector.broadcast %cst_117 : f32 to vector<1x1xf32>
    %276 = arith.divf %274, %275 : vector<1x1xf32>
    %277 = vector.broadcast %276 : vector<1x1xf32> to vector<8x32xf32>
    %278 = arith.subf %270, %277 : vector<8x32xf32>
    %279 = arith.mulf %278, %278 : vector<8x32xf32>
    %cst_118 = arith.constant dense<0.000000e+00> : vector<8xf32>
    %280 = vector.multi_reduction <add>, %279, %cst_118 [1] : vector<8x32xf32> to vector<8xf32>
    %281 = vector.shape_cast %280 : vector<8xf32> to vector<8x1xf32>
    %cst_119 = arith.constant dense<0.000000e+00> : vector<1xf32>
    %282 = vector.multi_reduction <add>, %281, %cst_119 [0] : vector<8x1xf32> to vector<1xf32>
    %283 = vector.shape_cast %282 : vector<1xf32> to vector<1x1xf32>
    %cst_120 = arith.constant 2.560000e+02 : f32
    %284 = vector.broadcast %cst_120 : f32 to vector<1x1xf32>
    %285 = arith.divf %283, %284 : vector<1x1xf32>
    %cst_121 = arith.constant 9.99999974E-6 : f32
    %286 = vector.broadcast %cst_121 : f32 to vector<1x1xf32>
    %287 = arith.addf %285, %286 : vector<1x1xf32>
    %288 = math.rsqrt %287 : vector<1x1xf32>
    %289 = vector.broadcast %288 : vector<1x1xf32> to vector<8x32xf32>
    %290 = arith.mulf %278, %289 : vector<8x32xf32>
    %c0_122 = arith.constant 0 : index
    %c0_123 = arith.constant 0 : index
    %291 = vector.load %arg21[%c0_122, %c0_123] : memref<8x32xf32, #tpu.memory_space<vmem>>, vector<8x32xf32>
    %292 = arith.mulf %290, %291 : vector<8x32xf32>
    %c0_124 = arith.constant 0 : index
    %c0_125 = arith.constant 0 : index
    %293 = vector.load %arg22[%c0_124, %c0_125] : memref<8x32xf32, #tpu.memory_space<vmem>>, vector<8x32xf32>
    %294 = arith.addf %292, %293 : vector<8x32xf32>
    %295 = arith.truncf %294 : vector<8x32xf32> to vector<8x32xbf16>
    %c0_126 = arith.constant 0 : index
    %c0_127 = arith.constant 0 : index
    %296 = vector.load %arg15[%c0_126, %c0_127] : memref<32x64xbf16, #tpu.memory_space<vmem>>, vector<32x64xbf16>
    %cst_128 = arith.constant dense<0.000000e+00> : vector<8x64xf32>
    %297 = tpu.matmul %295, %296, %cst_128 {dimension_numbers = #tpu.dot_dimension_numbers<[1], [0], [0], [1], [0, 0, 1, 1], [], []>} : vector<8x32xbf16>, vector<32x64xbf16>, vector<8x64xf32> -> vector<8x64xf32>
    %c0_129 = arith.constant 0 : index
    %c0_130 = arith.constant 0 : index
    %298 = vector.load %arg16[%c0_129, %c0_130] : memref<1x64xf32, #tpu.memory_space<vmem>>, vector<1x64xf32>
    %299 = vector.broadcast %298 : vector<1x64xf32> to vector<8x64xf32>
    %300 = arith.addf %297, %299 : vector<8x64xf32>
    %cst_131 = arith.constant 0.000000e+00 : f32
    %301 = vector.broadcast %cst_131 : f32 to vector<8x64xf32>
    %302 = arith.maximumf %300, %301 : vector<8x64xf32>
    %303 = arith.truncf %302 : vector<8x64xf32> to vector<8x64xbf16>
    %c0_132 = arith.constant 0 : index
    %c0_133 = arith.constant 0 : index
    %304 = vector.load %arg17[%c0_132, %c0_133] : memref<64x32xbf16, #tpu.memory_space<vmem>>, vector<64x32xbf16>
    %cst_134 = arith.constant dense<0.000000e+00> : vector<8x32xf32>
    %305 = tpu.matmul %303, %304, %cst_134 {dimension_numbers = #tpu.dot_dimension_numbers<[1], [0], [0], [1], [0, 0, 1, 1], [], []>} : vector<8x64xbf16>, vector<64x32xbf16>, vector<8x32xf32> -> vector<8x32xf32>
    %c0_135 = arith.constant 0 : index
    %c0_136 = arith.constant 0 : index
    %306 = vector.load %arg18[%c0_135, %c0_136] : memref<1x32xf32, #tpu.memory_space<vmem>>, vector<1x32xf32>
    %307 = vector.broadcast %306 : vector<1x32xf32> to vector<8x32xf32>
    %308 = arith.addf %305, %307 : vector<8x32xf32>
    %309 = arith.addf %308, %294 : vector<8x32xf32>
    %cst_137 = arith.constant dense<0.000000e+00> : vector<8xf32>
    %310 = vector.multi_reduction <add>, %309, %cst_137 [1] : vector<8x32xf32> to vector<8xf32>
    %311 = vector.shape_cast %310 : vector<8xf32> to vector<8x1xf32>
    %cst_138 = arith.constant dense<0.000000e+00> : vector<1xf32>
    %312 = vector.multi_reduction <add>, %311, %cst_138 [0] : vector<8x1xf32> to vector<1xf32>
    %313 = vector.shape_cast %312 : vector<1xf32> to vector<1x1xf32>
    %cst_139 = arith.constant 2.560000e+02 : f32
    %314 = vector.broadcast %cst_139 : f32 to vector<1x1xf32>
    %315 = arith.divf %313, %314 : vector<1x1xf32>
    %316 = vector.broadcast %315 : vector<1x1xf32> to vector<8x32xf32>
    %317 = arith.subf %309, %316 : vector<8x32xf32>
    %318 = arith.mulf %317, %317 : vector<8x32xf32>
    %cst_140 = arith.constant dense<0.000000e+00> : vector<8xf32>
    %319 = vector.multi_reduction <add>, %318, %cst_140 [1] : vector<8x32xf32> to vector<8xf32>
    %320 = vector.shape_cast %319 : vector<8xf32> to vector<8x1xf32>
    %cst_141 = arith.constant dense<0.000000e+00> : vector<1xf32>
    %321 = vector.multi_reduction <add>, %320, %cst_141 [0] : vector<8x1xf32> to vector<1xf32>
    %322 = vector.shape_cast %321 : vector<1xf32> to vector<1x1xf32>
    %cst_142 = arith.constant 2.560000e+02 : f32
    %323 = vector.broadcast %cst_142 : f32 to vector<1x1xf32>
    %324 = arith.divf %322, %323 : vector<1x1xf32>
    %cst_143 = arith.constant 9.99999974E-6 : f32
    %325 = vector.broadcast %cst_143 : f32 to vector<1x1xf32>
    %326 = arith.addf %324, %325 : vector<1x1xf32>
    %327 = math.rsqrt %326 : vector<1x1xf32>
    %328 = vector.broadcast %327 : vector<1x1xf32> to vector<8x32xf32>
    %329 = arith.mulf %317, %328 : vector<8x32xf32>
    %c0_144 = arith.constant 0 : index
    %c0_145 = arith.constant 0 : index
    %330 = vector.load %arg23[%c0_144, %c0_145] : memref<8x32xf32, #tpu.memory_space<vmem>>, vector<8x32xf32>
    %331 = arith.mulf %329, %330 : vector<8x32xf32>
    %c0_146 = arith.constant 0 : index
    %c0_147 = arith.constant 0 : index
    %332 = vector.load %arg24[%c0_146, %c0_147] : memref<8x32xf32, #tpu.memory_space<vmem>>, vector<8x32xf32>
    %333 = arith.addf %331, %332 : vector<8x32xf32>
    %c0_148 = arith.constant 0 : index
    %c0_149 = arith.constant 0 : index
    %c0_150 = arith.constant 0 : index
    %334 = vector.load %arg25[%c0_148, %c0_149, %c0_150] : memref<1x8x32xf32, #tpu.memory_space<vmem>>, vector<1x8x32xf32>
    %335 = vector.shape_cast %334 : vector<1x8x32xf32> to vector<8x32xf32>
    %336 = vector.shape_cast %333 : vector<8x32xf32> to vector<1x8x32xf32>
    tpu.vector_store %arg25[%c0_148, %c0_149, %c0_150], %336 {strides = array<i32>} : memref<1x8x32xf32, #tpu.memory_space<vmem>>, vector<1x8x32xf32>,
    return
  }
  func.func @transform_0(%arg0: i32) -> (i32, i32, i32) {
    %c0_i32 = arith.constant 0 : i32
    %c0_i32_0 = arith.constant 0 : i32
    %c0_i32_1 = arith.constant 0 : i32
    return %arg0, %c0_i32, %c0_i32_0 : i32, i32, i32
  }
  func.func @transform_1(%arg0: i32) -> (i32, i32, i32) {
    %c0_i32 = arith.constant 0 : i32
    %c0_i32_0 = arith.constant 0 : i32
    %c0_i32_1 = arith.constant 0 : i32
    return %arg0, %c0_i32, %c0_i32_0 : i32, i32, i32
  }
  func.func @transform_2(%arg0: i32) -> (i32, i32, i32) {
    %c0_i32 = arith.constant 0 : i32
    %c0_i32_0 = arith.constant 0 : i32
    %c0_i32_1 = arith.constant 0 : i32
    return %arg0, %c0_i32, %c0_i32_0 : i32, i32, i32
  }
  func.func @transform_3(%arg0: i32) -> (i32, i32, i32) {
    %c0_i32 = arith.constant 0 : i32
    %c0_i32_0 = arith.constant 0 : i32
    %c0_i32_1 = arith.constant 0 : i32
    return %arg0, %c0_i32, %c0_i32_0 : i32, i32, i32
  }
  func.func @transform_4(%arg0: i32) -> (i32, i32) {
    %c0_i32 = arith.constant 0 : i32
    %c0_i32_0 = arith.constant 0 : i32
    %c0_i32_1 = arith.constant 0 : i32
    return %c0_i32, %c0_i32_0 : i32, i32
  }
  func.func @transform_5(%arg0: i32) -> (i32, i32) {
    %c0_i32 = arith.constant 0 : i32
    %c0_i32_0 = arith.constant 0 : i32
    %c0_i32_1 = arith.constant 0 : i32
    return %c0_i32, %c0_i32_0 : i32, i32
  }
  func.func @transform_6(%arg0: i32) -> (i32, i32) {
    %c0_i32 = arith.constant 0 : i32
    %c0_i32_0 = arith.constant 0 : i32
    %c0_i32_1 = arith.constant 0 : i32
    return %c0_i32, %c0_i32_0 : i32, i32
  }
  func.func @transform_7(%arg0: i32) -> (i32, i32) {
    %c0_i32 = arith.constant 0 : i32
    %c0_i32_0 = arith.constant 0 : i32
    %c0_i32_1 = arith.constant 0 : i32
    return %c0_i32, %c0_i32_0 : i32, i32
  }
  func.func @transform_8(%arg0: i32) -> (i32, i32) {
    %c0_i32 = arith.constant 0 : i32
    %c0_i32_0 = arith.constant 0 : i32
    %c0_i32_1 = arith.constant 0 : i32
    return %c0_i32, %c0_i32_0 : i32, i32
  }
  func.func @transform_9(%arg0: i32) -> (i32, i32) {
    %c0_i32 = arith.constant 0 : i32
    %c0_i32_0 = arith.constant 0 : i32
    %c0_i32_1 = arith.constant 0 : i32
    return %c0_i32, %c0_i32_0 : i32, i32
  }
  func.func @transform_10(%arg0: i32) -> (i32, i32) {
    %c0_i32 = arith.constant 0 : i32
    %c0_i32_0 = arith.constant 0 : i32
    %c0_i32_1 = arith.constant 0 : i32
    return %c0_i32, %c0_i32_0 : i32, i32
  }
  func.func @transform_11(%arg0: i32) -> (i32, i32) {
    %c0_i32 = arith.constant 0 : i32
    %c0_i32_0 = arith.constant 0 : i32
    %c0_i32_1 = arith.constant 0 : i32
    return %c0_i32, %c0_i32_0 : i32, i32
  }
  func.func @transform_12(%arg0: i32) -> (i32, i32) {
    %c0_i32 = arith.constant 0 : i32
    %c0_i32_0 = arith.constant 0 : i32
    %c0_i32_1 = arith.constant 0 : i32
    return %c0_i32, %c0_i32_0 : i32, i32
  }
  func.func @transform_13(%arg0: i32) -> (i32, i32) {
    %c0_i32 = arith.constant 0 : i32
    %c0_i32_0 = arith.constant 0 : i32
    %c0_i32_1 = arith.constant 0 : i32
    return %c0_i32, %c0_i32_0 : i32, i32
  }
  func.func @transform_14(%arg0: i32) -> (i32, i32) {
    %c0_i32 = arith.constant 0 : i32
    %c0_i32_0 = arith.constant 0 : i32
    %c0_i32_1 = arith.constant 0 : i32
    return %c0_i32, %c0_i32_0 : i32, i32
  }
  func.func @transform_15(%arg0: i32) -> (i32, i32) {
    %c0_i32 = arith.constant 0 : i32
    %c0_i32_0 = arith.constant 0 : i32
    %c0_i32_1 = arith.constant 0 : i32
    return %c0_i32, %c0_i32_0 : i32, i32
  }
  func.func @transform_16(%arg0: i32) -> (i32, i32) {
    %c0_i32 = arith.constant 0 : i32
    %c0_i32_0 = arith.constant 0 : i32
    %c0_i32_1 = arith.constant 0 : i32
    return %c0_i32, %c0_i32_0 : i32, i32
  }
  func.func @transform_17(%arg0: i32) -> (i32, i32) {
    %c0_i32 = arith.constant 0 : i32
    %c0_i32_0 = arith.constant 0 : i32
    %c0_i32_1 = arith.constant 0 : i32
    return %c0_i32, %c0_i32_0 : i32, i32
  }
  func.func @transform_18(%arg0: i32) -> (i32, i32) {
    %c0_i32 = arith.constant 0 : i32
    %c0_i32_0 = arith.constant 0 : i32
    %c0_i32_1 = arith.constant 0 : i32
    return %c0_i32, %c0_i32_0 : i32, i32
  }
  func.func @transform_19(%arg0: i32) -> (i32, i32) {
    %c0_i32 = arith.constant 0 : i32
    %c0_i32_0 = arith.constant 0 : i32
    %c0_i32_1 = arith.constant 0 : i32
    return %c0_i32, %c0_i32_0 : i32, i32
  }
  func.func @transform_20(%arg0: i32) -> (i32, i32) {
    %c0_i32 = arith.constant 0 : i32
    %c0_i32_0 = arith.constant 0 : i32
    %c0_i32_1 = arith.constant 0 : i32
    return %c0_i32, %c0_i32_0 : i32, i32
  }
  func.func @transform_21(%arg0: i32) -> (i32, i32) {
    %c0_i32 = arith.constant 0 : i32
    %c0_i32_0 = arith.constant 0 : i32
    %c0_i32_1 = arith.constant 0 : i32
    return %c0_i32, %c0_i32_0 : i32, i32
  }
  func.func @transform_22(%arg0: i32) -> (i32, i32) {
    %c0_i32 = arith.constant 0 : i32
    %c0_i32_0 = arith.constant 0 : i32
    %c0_i32_1 = arith.constant 0 : i32
    return %c0_i32, %c0_i32_0 : i32, i32
  }
  func.func @transform_23(%arg0: i32) -> (i32, i32) {
    %c0_i32 = arith.constant 0 : i32
    %c0_i32_0 = arith.constant 0 : i32
    %c0_i32_1 = arith.constant 0 : i32
    return %c0_i32, %c0_i32_0 : i32, i32
  }
  func.func @transform_24(%arg0: i32) -> (i32, i32, i32) {
    %c0_i32 = arith.constant 0 : i32
    %c0_i32_0 = arith.constant 0 : i32
    %c0_i32_1 = arith.constant 0 : i32
    return %arg0, %c0_i32, %c0_i32_0 : i32, i32, i32
  }
  func.func @transform_25(%arg0: i32) -> (i32, i32, i32, i32) {
    %c0_i32 = arith.constant 0 : i32
    %c0_i32_0 = arith.constant 0 : i32
    %c0_i32_1 = arith.constant 0 : i32
    %c0_i32_2 = arith.constant 0 : i32
    return %arg0, %c0_i32, %c0_i32_0, %c0_i32_1 : i32, i32, i32, i32
  }
  func.func @transform_26(%arg0: i32) -> (i32, i32, i32, i32) {
    %c0_i32 = arith.constant 0 : i32
    %c0_i32_0 = arith.constant 0 : i32
    %c0_i32_1 = arith.constant 0 : i32
    %c0_i32_2 = arith.constant 0 : i32
    return %arg0, %c0_i32, %c0_i32_0, %c0_i32_1 : i32, i32, i32, i32
  }
}

module attributes {stable_mosaic.version = 11 : i64} {
  func.func @_decoder_layer_kernel(%arg0: i32, %arg1: memref<1x8x32xf32, #tpu.memory_space<vmem>>, %arg2: memref<1x8x32xf32, #tpu.memory_space<vmem>>, %arg3: memref<1x8x8xf32, #tpu.memory_space<vmem>>, %arg4: memref<1x8x8xf32, #tpu.memory_space<vmem>>, %arg5: memref<32x96xbf16, #tpu.memory_space<vmem>>, %arg6: memref<1x96xf32, #tpu.memory_space<vmem>>, %arg7: memref<32x32xbf16, #tpu.memory_space<vmem>>, %arg8: memref<1x32xf32, #tpu.memory_space<vmem>>, %arg9: memref<32x32xbf16, #tpu.memory_space<vmem>>, %arg10: memref<1x32xf32, #tpu.memory_space<vmem>>, %arg11: memref<32x64xbf16, #tpu.memory_space<vmem>>, %arg12: memref<1x64xf32, #tpu.memory_space<vmem>>, %arg13: memref<32x32xbf16, #tpu.memory_space<vmem>>, %arg14: memref<1x32xf32, #tpu.memory_space<vmem>>, %arg15: memref<32x64xbf16, #tpu.memory_space<vmem>>, %arg16: memref<1x64xf32, #tpu.memory_space<vmem>>, %arg17: memref<64x32xbf16, #tpu.memory_space<vmem>>, %arg18: memref<1x32xf32, #tpu.memory_space<vmem>>, %arg19: memref<8x32xf32, #tpu.memory_space<vmem>>, %arg20: memref<8x32xf32, #tpu.memory_space<vmem>>, %arg21: memref<8x32xf32, #tpu.memory_space<vmem>>, %arg22: memref<8x32xf32, #tpu.memory_space<vmem>>, %arg23: memref<8x32xf32, #tpu.memory_space<vmem>>, %arg24: memref<8x32xf32, #tpu.memory_space<vmem>>, %arg25: memref<1x8x32xf32, #tpu.memory_space<vmem>>, %arg26: memref<1x4x8x8xf32, #tpu.memory_space<vmem>>, %arg27: memref<1x4x8x8xf32, #tpu.memory_space<vmem>>) attributes {dimension_semantics = [#tpu.dimension_semantics<parallel>], iteration_bounds = array<i64: 2>, scalar_prefetch = 0 : i64, scratch_operands = 0 : i64, tpu.core_type = #tpu.core_type<tc>, window_params = [{transform_indices = @transform_0, window_bounds = array<i64: 1, 8, 32>}, {transform_indices = @transform_1, window_bounds = array<i64: 1, 8, 32>}, {transform_indices = @transform_2, window_bounds = array<i64: 1, 8, 8>}, {transform_indices = @transform_3, window_bounds = array<i64: 1, 8, 8>}, {pipeline_mode = #tpu.pipeline_mode<synchronous>, transform_indices = @transform_4, window_bounds = array<i64: 32, 96>}, {pipeline_mode = #tpu.pipeline_mode<synchronous>, transform_indices = @transform_5, window_bounds = array<i64: 1, 96>}, {pipeline_mode = #tpu.pipeline_mode<synchronous>, transform_indices = @transform_6, window_bounds = array<i64: 32, 32>}, {pipeline_mode = #tpu.pipeline_mode<synchronous>, transform_indices = @transform_7, window_bounds = array<i64: 1, 32>}, {pipeline_mode = #tpu.pipeline_mode<synchronous>, transform_indices = @transform_8, window_bounds = array<i64: 32, 32>}, {pipeline_mode = #tpu.pipeline_mode<synchronous>, transform_indices = @transform_9, window_bounds = array<i64: 1, 32>}, {pipeline_mode = #tpu.pipeline_mode<synchronous>, transform_indices = @transform_10, window_bounds = array<i64: 32, 64>}, {pipeline_mode = #tpu.pipeline_mode<synchronous>, transform_indices = @transform_11, window_bounds = array<i64: 1, 64>}, {pipeline_mode = #tpu.pipeline_mode<synchronous>, transform_indices = @transform_12, window_bounds = array<i64: 32, 32>}, {pipeline_mode = #tpu.pipeline_mode<synchronous>, transform_indices = @transform_13, window_bounds = array<i64: 1, 32>}, {pipeline_mode = #tpu.pipeline_mode<synchronous>, transform_indices = @transform_14, window_bounds = array<i64: 32, 64>}, {pipeline_mode = #tpu.pipeline_mode<synchronous>, transform_indices = @transform_15, window_bounds = array<i64: 1, 64>}, {pipeline_mode = #tpu.pipeline_mode<synchronous>, transform_indices = @transform_16, window_bounds = array<i64: 64, 32>}, {pipeline_mode = #tpu.pipeline_mode<synchronous>, transform_indices = @transform_17, window_bounds = array<i64: 1, 32>}, {pipeline_mode = #tpu.pipeline_mode<synchronous>, transform_indices = @transform_18, window_bounds = array<i64: 8, 32>}, {pipeline_mode = #tpu.pipeline_mode<synchronous>, transform_indices = @transform_19, window_bounds = array<i64: 8, 32>}, {pipeline_mode = #tpu.pipeline_mode<synchronous>, transform_indices = @transform_20, window_bounds = array<i64: 8, 32>}, {pipeline_mode = #tpu.pipeline_mode<synchronous>, transform_indices = @transform_21, window_bounds = array<i64: 8, 32>}, {pipeline_mode = #tpu.pipeline_mode<synchronous>, transform_indices = @transform_22, window_bounds = array<i64: 8, 32>}, {pipeline_mode = #tpu.pipeline_mode<synchronous>, transform_indices = @transform_23, window_bounds = array<i64: 8, 32>}, {transform_indices = @transform_24, window_bounds = array<i64: 1, 8, 32>}, {transform_indices = @transform_25, window_bounds = array<i64: 1, 4, 8, 8>}, {transform_indices = @transform_26, window_bounds = array<i64: 1, 4, 8, 8>}]} {
    %c0 = arith.constant 0 : index
    %c0_0 = arith.constant 0 : index
    %c0_1 = arith.constant 0 : index
    %0 = vector.load %arg1[%c0, %c0_0, %c0_1] : memref<1x8x32xf32, #tpu.memory_space<vmem>>, vector<1x8x32xf32>
    %1 = vector.shape_cast %0 : vector<1x8x32xf32> to vector<8x32xf32>
    %c0_2 = arith.constant 0 : index
    %c0_3 = arith.constant 0 : index
    %c0_4 = arith.constant 0 : index
    %2 = vector.load %arg2[%c0_2, %c0_3, %c0_4] : memref<1x8x32xf32, #tpu.memory_space<vmem>>, vector<1x8x32xf32>
    %3 = vector.shape_cast %2 : vector<1x8x32xf32> to vector<8x32xf32>
    %c0_5 = arith.constant 0 : index
    %c0_6 = arith.constant 0 : index
    %c0_7 = arith.constant 0 : index
    %4 = vector.load %arg3[%c0_5, %c0_6, %c0_7] : memref<1x8x8xf32, #tpu.memory_space<vmem>>, vector<1x8x8xf32>
    %5 = vector.shape_cast %4 : vector<1x8x8xf32> to vector<8x8xf32>
    %c0_8 = arith.constant 0 : index
    %c0_9 = arith.constant 0 : index
    %c0_10 = arith.constant 0 : index
    %6 = vector.load %arg4[%c0_8, %c0_9, %c0_10] : memref<1x8x8xf32, #tpu.memory_space<vmem>>, vector<1x8x8xf32>
    %7 = vector.shape_cast %6 : vector<1x8x8xf32> to vector<8x8xf32>
    %8 = arith.truncf %1 : vector<8x32xf32> to vector<8x32xbf16>
    %c0_11 = arith.constant 0 : index
    %c0_12 = arith.constant 0 : index
    %9 = vector.load %arg5[%c0_11, %c0_12] : memref<32x96xbf16, #tpu.memory_space<vmem>>, vector<32x96xbf16>
    %cst = arith.constant dense<0.000000e+00> : vector<8x96xf32>
    %10 = tpu.matmul %8, %9, %cst {dimension_numbers = #tpu.dot_dimension_numbers<[1], [0], [0], [1], [0, 0, 1, 1], [], []>} : vector<8x32xbf16>, vector<32x96xbf16>, vector<8x96xf32> -> vector<8x96xf32>
    %c0_13 = arith.constant 0 : index
    %c0_14 = arith.constant 0 : index
    %11 = vector.load %arg6[%c0_13, %c0_14] : memref<1x96xf32, #tpu.memory_space<vmem>>, vector<1x96xf32>
    %12 = vector.broadcast %11 : vector<1x96xf32> to vector<8x96xf32>
    %13 = arith.addf %10, %12 : vector<8x96xf32>
    %14 = vector.extract_strided_slice %13 {offsets = [0, 0], sizes = [8, 32], strides = [1, 1]} : vector<8x96xf32> to vector<8x32xf32>
    %15 = vector.extract_strided_slice %13 {offsets = [0, 32], sizes = [8, 32], strides = [1, 1]} : vector<8x96xf32> to vector<8x32xf32>
    %16 = vector.extract_strided_slice %13 {offsets = [0, 64], sizes = [8, 32], strides = [1, 1]} : vector<8x96xf32> to vector<8x32xf32>
    %17 = vector.extract_strided_slice %14 {offsets = [0, 0], sizes = [8, 8], strides = [1, 1]} : vector<8x32xf32> to vector<8x8xf32>
    %18 = arith.truncf %17 : vector<8x8xf32> to vector<8x8xbf16>
    %19 = vector.extract_strided_slice %15 {offsets = [0, 0], sizes = [8, 8], strides = [1, 1]} : vector<8x32xf32> to vector<8x8xf32>
    %20 = arith.truncf %19 : vector<8x8xf32> to vector<8x8xbf16>
    %21 = vector.extract_strided_slice %16 {offsets = [0, 0], sizes = [8, 8], strides = [1, 1]} : vector<8x32xf32> to vector<8x8xf32>
    %22 = arith.truncf %21 : vector<8x8xf32> to vector<8x8xbf16>
    %cst_15 = arith.constant dense<0.000000e+00> : vector<8x8xf32>
    %23 = tpu.matmul %18, %20, %cst_15 {dimension_numbers = #tpu.dot_dimension_numbers<[1], [1], [0], [0], [0, 0, 1, 0], [], []>} : vector<8x8xbf16>, vector<8x8xbf16>, vector<8x8xf32> -> vector<8x8xf32>
    %cst_16 = arith.constant 0.353553385 : f32
    %24 = vector.broadcast %cst_16 : f32 to vector<8x8xf32>
    %25 = arith.mulf %23, %24 : vector<8x8xf32>
    %26 = arith.addf %25, %5 : vector<8x8xf32>
    %cst_17 = arith.constant dense<0xFF800000> : vector<8xf32>
    %27 = vector.multi_reduction <maximumf>, %26, %cst_17 [1] : vector<8x8xf32> to vector<8xf32>
    %28 = vector.shape_cast %27 : vector<8xf32> to vector<8x1xf32>
    %29 = vector.broadcast %28 : vector<8x1xf32> to vector<8x8xf32>
    %30 = arith.subf %26, %29 : vector<8x8xf32>
    %31 = math.exp %30 : vector<8x8xf32>
    %cst_18 = arith.constant dense<0.000000e+00> : vector<8xf32>
    %32 = vector.multi_reduction <add>, %31, %cst_18 [1] : vector<8x8xf32> to vector<8xf32>
    %33 = vector.shape_cast %32 : vector<8xf32> to vector<8x1xf32>
    %34 = tpu.reciprocal %33 {approx = true} : vector<8x1xf32> -> vector<8x1xf32>
    %35 = vector.broadcast %34 : vector<8x1xf32> to vector<8x8xf32>
    %36 = arith.mulf %31, %35 : vector<8x8xf32>
    %c0_19 = arith.constant 0 : index
    %c0_20 = arith.constant 0 : index
    %c0_21 = arith.constant 0 : index
    %c0_22 = arith.constant 0 : index
    %37 = vector.load %arg26[%c0_19, %c0_20, %c0_21, %c0_22] : memref<1x4x8x8xf32, #tpu.memory_space<vmem>>, vector<1x1x8x8xf32>
    %38 = vector.shape_cast %37 : vector<1x1x8x8xf32> to vector<8x8xf32>
    %39 = vector.shape_cast %36 : vector<8x8xf32> to vector<1x1x8x8xf32>
    tpu.vector_store %arg26[%c0_19, %c0_20, %c0_21, %c0_22], %39 {strides = array<i32>} : memref<1x4x8x8xf32, #tpu.memory_space<vmem>>, vector<1x1x8x8xf32>,
    %40 = arith.truncf %36 : vector<8x8xf32> to vector<8x8xbf16>
    %cst_23 = arith.constant dense<0.000000e+00> : vector<8x8xf32>
    %41 = tpu.matmul %40, %22, %cst_23 {dimension_numbers = #tpu.dot_dimension_numbers<[1], [0], [0], [1], [0, 0, 1, 1], [], []>} : vector<8x8xbf16>, vector<8x8xbf16>, vector<8x8xf32> -> vector<8x8xf32>
    %42 = vector.extract_strided_slice %14 {offsets = [0, 8], sizes = [8, 8], strides = [1, 1]} : vector<8x32xf32> to vector<8x8xf32>
    %43 = arith.truncf %42 : vector<8x8xf32> to vector<8x8xbf16>
    %44 = vector.extract_strided_slice %15 {offsets = [0, 8], sizes = [8, 8], strides = [1, 1]} : vector<8x32xf32> to vector<8x8xf32>
    %45 = arith.truncf %44 : vector<8x8xf32> to vector<8x8xbf16>
    %46 = vector.extract_strided_slice %16 {offsets = [0, 8], sizes = [8, 8], strides = [1, 1]} : vector<8x32xf32> to vector<8x8xf32>
    %47 = arith.truncf %46 : vector<8x8xf32> to vector<8x8xbf16>
    %cst_24 = arith.constant dense<0.000000e+00> : vector<8x8xf32>
    %48 = tpu.matmul %43, %45, %cst_24 {dimension_numbers = #tpu.dot_dimension_numbers<[1], [1], [0], [0], [0, 0, 1, 0], [], []>} : vector<8x8xbf16>, vector<8x8xbf16>, vector<8x8xf32> -> vector<8x8xf32>
    %cst_25 = arith.constant 0.353553385 : f32
    %49 = vector.broadcast %cst_25 : f32 to vector<8x8xf32>
    %50 = arith.mulf %48, %49 : vector<8x8xf32>
    %51 = arith.addf %50, %5 : vector<8x8xf32>
    %cst_26 = arith.constant dense<0xFF800000> : vector<8xf32>
    %52 = vector.multi_reduction <maximumf>, %51, %cst_26 [1] : vector<8x8xf32> to vector<8xf32>
    %53 = vector.shape_cast %52 : vector<8xf32> to vector<8x1xf32>
    %54 = vector.broadcast %53 : vector<8x1xf32> to vector<8x8xf32>
    %55 = arith.subf %51, %54 : vector<8x8xf32>
    %56 = math.exp %55 : vector<8x8xf32>
    %cst_27 = arith.constant dense<0.000000e+00> : vector<8xf32>
    %57 = vector.multi_reduction <add>, %56, %cst_27 [1] : vector<8x8xf32> to vector<8xf32>
    %58 = vector.shape_cast %57 : vector<8xf32> to vector<8x1xf32>
    %59 = tpu.reciprocal %58 {approx = true} : vector<8x1xf32> -> vector<8x1xf32>
    %60 = vector.broadcast %59 : vector<8x1xf32> to vector<8x8xf32>
    %61 = arith.mulf %56, %60 : vector<8x8xf32>
    %c0_28 = arith.constant 0 : index
    %c1 = arith.constant 1 : index
    %c0_29 = arith.constant 0 : index
    %c0_30 = arith.constant 0 : index
    %62 = vector.load %arg26[%c0_28, %c1, %c0_29, %c0_30] : memref<1x4x8x8xf32, #tpu.memory_space<vmem>>, vector<1x1x8x8xf32>
    %63 = vector.shape_cast %62 : vector<1x1x8x8xf32> to vector<8x8xf32>
    %64 = vector.shape_cast %61 : vector<8x8xf32> to vector<1x1x8x8xf32>
    tpu.vector_store %arg26[%c0_28, %c1, %c0_29, %c0_30], %64 {strides = array<i32>} : memref<1x4x8x8xf32, #tpu.memory_space<vmem>>, vector<1x1x8x8xf32>,
    %65 = arith.truncf %61 : vector<8x8xf32> to vector<8x8xbf16>
    %cst_31 = arith.constant dense<0.000000e+00> : vector<8x8xf32>
    %66 = tpu.matmul %65, %47, %cst_31 {dimension_numbers = #tpu.dot_dimension_numbers<[1], [0], [0], [1], [0, 0, 1, 1], [], []>} : vector<8x8xbf16>, vector<8x8xbf16>, vector<8x8xf32> -> vector<8x8xf32>
    %67 = vector.extract_strided_slice %14 {offsets = [0, 16], sizes = [8, 8], strides = [1, 1]} : vector<8x32xf32> to vector<8x8xf32>
    %68 = arith.truncf %67 : vector<8x8xf32> to vector<8x8xbf16>
    %69 = vector.extract_strided_slice %15 {offsets = [0, 16], sizes = [8, 8], strides = [1, 1]} : vector<8x32xf32> to vector<8x8xf32>
    %70 = arith.truncf %69 : vector<8x8xf32> to vector<8x8xbf16>
    %71 = vector.extract_strided_slice %16 {offsets = [0, 16], sizes = [8, 8], strides = [1, 1]} : vector<8x32xf32> to vector<8x8xf32>
    %72 = arith.truncf %71 : vector<8x8xf32> to vector<8x8xbf16>
    %cst_32 = arith.constant dense<0.000000e+00> : vector<8x8xf32>
    %73 = tpu.matmul %68, %70, %cst_32 {dimension_numbers = #tpu.dot_dimension_numbers<[1], [1], [0], [0], [0, 0, 1, 0], [], []>} : vector<8x8xbf16>, vector<8x8xbf16>, vector<8x8xf32> -> vector<8x8xf32>
    %cst_33 = arith.constant 0.353553385 : f32
    %74 = vector.broadcast %cst_33 : f32 to vector<8x8xf32>
    %75 = arith.mulf %73, %74 : vector<8x8xf32>
    %76 = arith.addf %75, %5 : vector<8x8xf32>
    %cst_34 = arith.constant dense<0xFF800000> : vector<8xf32>
    %77 = vector.multi_reduction <maximumf>, %76, %cst_34 [1] : vector<8x8xf32> to vector<8xf32>
    %78 = vector.shape_cast %77 : vector<8xf32> to vector<8x1xf32>
    %79 = vector.broadcast %78 : vector<8x1xf32> to vector<8x8xf32>
    %80 = arith.subf %76, %79 : vector<8x8xf32>
    %81 = math.exp %80 : vector<8x8xf32>
    %cst_35 = arith.constant dense<0.000000e+00> : vector<8xf32>
    %82 = vector.multi_reduction <add>, %81, %cst_35 [1] : vector<8x8xf32> to vector<8xf32>
    %83 = vector.shape_cast %82 : vector<8xf32> to vector<8x1xf32>
    %84 = tpu.reciprocal %83 {approx = true} : vector<8x1xf32> -> vector<8x1xf32>
    %85 = vector.broadcast %84 : vector<8x1xf32> to vector<8x8xf32>
    %86 = arith.mulf %81, %85 : vector<8x8xf32>
    %c0_36 = arith.constant 0 : index
    %c2 = arith.constant 2 : index
    %c0_37 = arith.constant 0 : index
    %c0_38 = arith.constant 0 : index
    %87 = vector.load %arg26[%c0_36, %c2, %c0_37, %c0_38] : memref<1x4x8x8xf32, #tpu.memory_space<vmem>>, vector<1x1x8x8xf32>
    %88 = vector.shape_cast %87 : vector<1x1x8x8xf32> to vector<8x8xf32>
    %89 = vector.shape_cast %86 : vector<8x8xf32> to vector<1x1x8x8xf32>
    tpu.vector_store %arg26[%c0_36, %c2, %c0_37, %c0_38], %89 {strides = array<i32>} : memref<1x4x8x8xf32, #tpu.memory_space<vmem>>, vector<1x1x8x8xf32>,
    %90 = arith.truncf %86 : vector<8x8xf32> to vector<8x8xbf16>
    %cst_39 = arith.constant dense<0.000000e+00> : vector<8x8xf32>
    %91 = tpu.matmul %90, %72, %cst_39 {dimension_numbers = #tpu.dot_dimension_numbers<[1], [0], [0], [1], [0, 0, 1, 1], [], []>} : vector<8x8xbf16>, vector<8x8xbf16>, vector<8x8xf32> -> vector<8x8xf32>
    %92 = vector.extract_strided_slice %14 {offsets = [0, 24], sizes = [8, 8], strides = [1, 1]} : vector<8x32xf32> to vector<8x8xf32>
    %93 = arith.truncf %92 : vector<8x8xf32> to vector<8x8xbf16>
    %94 = vector.extract_strided_slice %15 {offsets = [0, 24], sizes = [8, 8], strides = [1, 1]} : vector<8x32xf32> to vector<8x8xf32>
    %95 = arith.truncf %94 : vector<8x8xf32> to vector<8x8xbf16>
    %96 = vector.extract_strided_slice %16 {offsets = [0, 24], sizes = [8, 8], strides = [1, 1]} : vector<8x32xf32> to vector<8x8xf32>
    %97 = arith.truncf %96 : vector<8x8xf32> to vector<8x8xbf16>
    %cst_40 = arith.constant dense<0.000000e+00> : vector<8x8xf32>
    %98 = tpu.matmul %93, %95, %cst_40 {dimension_numbers = #tpu.dot_dimension_numbers<[1], [1], [0], [0], [0, 0, 1, 0], [], []>} : vector<8x8xbf16>, vector<8x8xbf16>, vector<8x8xf32> -> vector<8x8xf32>
    %cst_41 = arith.constant 0.353553385 : f32
    %99 = vector.broadcast %cst_41 : f32 to vector<8x8xf32>
    %100 = arith.mulf %98, %99 : vector<8x8xf32>
    %101 = arith.addf %100, %5 : vector<8x8xf32>
    %cst_42 = arith.constant dense<0xFF800000> : vector<8xf32>
    %102 = vector.multi_reduction <maximumf>, %101, %cst_42 [1] : vector<8x8xf32> to vector<8xf32>
    %103 = vector.shape_cast %102 : vector<8xf32> to vector<8x1xf32>
    %104 = vector.broadcast %103 : vector<8x1xf32> to vector<8x8xf32>
    %105 = arith.subf %101, %104 : vector<8x8xf32>
    %106 = math.exp %105 : vector<8x8xf32>
    %cst_43 = arith.constant dense<0.000000e+00> : vector<8xf32>
    %107 = vector.multi_reduction <add>, %106, %cst_43 [1] : vector<8x8xf32> to vector<8xf32>
    %108 = vector.shape_cast %107 : vector<8xf32> to vector<8x1xf32>
    %109 = tpu.reciprocal %108 {approx = true} : vector<8x1xf32> -> vector<8x1xf32>
    %110 = vector.broadcast %109 : vector<8x1xf32> to vector<8x8xf32>
    %111 = arith.mulf %106, %110 : vector<8x8xf32>
    %c0_44 = arith.constant 0 : index
    %c3 = arith.constant 3 : index
    %c0_45 = arith.constant 0 : index
    %c0_46 = arith.constant 0 : index
    %112 = vector.load %arg26[%c0_44, %c3, %c0_45, %c0_46] : memref<1x4x8x8xf32, #tpu.memory_space<vmem>>, vector<1x1x8x8xf32>
    %113 = vector.shape_cast %112 : vector<1x1x8x8xf32> to vector<8x8xf32>
    %114 = vector.shape_cast %111 : vector<8x8xf32> to vector<1x1x8x8xf32>
    tpu.vector_store %arg26[%c0_44, %c3, %c0_45, %c0_46], %114 {strides = array<i32>} : memref<1x4x8x8xf32, #tpu.memory_space<vmem>>, vector<1x1x8x8xf32>,
    %115 = arith.truncf %111 : vector<8x8xf32> to vector<8x8xbf16>
    %cst_47 = arith.constant dense<0.000000e+00> : vector<8x8xf32>
    %116 = tpu.matmul %115, %97, %cst_47 {dimension_numbers = #tpu.dot_dimension_numbers<[1], [0], [0], [1], [0, 0, 1, 1], [], []>} : vector<8x8xbf16>, vector<8x8xbf16>, vector<8x8xf32> -> vector<8x8xf32>
    %117 = tpu.concatenate %41, %66, %91, %116 in 1 : vector<8x8xf32>, vector<8x8xf32>, vector<8x8xf32>, vector<8x8xf32> -> vector<8x32xf32>
    %118 = arith.truncf %117 : vector<8x32xf32> to vector<8x32xbf16>
    %c0_48 = arith.constant 0 : index
    %c0_49 = arith.constant 0 : index
    %119 = vector.load %arg7[%c0_48, %c0_49] : memref<32x32xbf16, #tpu.memory_space<vmem>>, vector<32x32xbf16>
    %cst_50 = arith.constant dense<0.000000e+00> : vector<8x32xf32>
    %120 = tpu.matmul %118, %119, %cst_50 {dimension_numbers = #tpu.dot_dimension_numbers<[1], [0], [0], [1], [0, 0, 1, 1], [], []>} : vector<8x32xbf16>, vector<32x32xbf16>, vector<8x32xf32> -> vector<8x32xf32>
    %c0_51 = arith.constant 0 : index
    %c0_52 = arith.constant 0 : index
    %121 = vector.load %arg8[%c0_51, %c0_52] : memref<1x32xf32, #tpu.memory_space<vmem>>, vector<1x32xf32>
    %122 = vector.broadcast %121 : vector<1x32xf32> to vector<8x32xf32>
    %123 = arith.addf %120, %122 : vector<8x32xf32>
    %124 = arith.addf %123, %1 : vector<8x32xf32>
    %cst_53 = arith.constant dense<0.000000e+00> : vector<8xf32>
    %125 = vector.multi_reduction <add>, %124, %cst_53 [1] : vector<8x32xf32> to vector<8xf32>
    %126 = vector.shape_cast %125 : vector<8xf32> to vector<8x1xf32>
    %cst_54 = arith.constant dense<0.000000e+00> : vector<1xf32>
    %127 = vector.multi_reduction <add>, %126, %cst_54 [0] : vector<8x1xf32> to vector<1xf32>
    %128 = vector.shape_cast %127 : vector<1xf32> to vector<1x1xf32>
    %cst_55 = arith.constant 2.560000e+02 : f32
    %129 = vector.broadcast %cst_55 : f32 to vector<1x1xf32>
    %130 = arith.divf %128, %129 : vector<1x1xf32>
    %131 = vector.broadcast %130 : vector<1x1xf32> to vector<8x32xf32>
    %132 = arith.subf %124, %131 : vector<8x32xf32>
    %133 = arith.mulf %132, %132 : vector<8x32xf32>
    %cst_56 = arith.constant dense<0.000000e+00> : vector<8xf32>
    %134 = vector.multi_reduction <add>, %133, %cst_56 [1] : vector<8x32xf32> to vector<8xf32>
    %135 = vector.shape_cast %134 : vector<8xf32> to vector<8x1xf32>
    %cst_57 = arith.constant dense<0.000000e+00> : vector<1xf32>
    %136 = vector.multi_reduction <add>, %135, %cst_57 [0] : vector<8x1xf32> to vector<1xf32>
    %137 = vector.shape_cast %136 : vector<1xf32> to vector<1x1xf32>
    %cst_58 = arith.constant 2.560000e+02 : f32
    %138 = vector.broadcast %cst_58 : f32 to vector<1x1xf32>
    %139 = arith.divf %137, %138 : vector<1x1xf32>
    %cst_59 = arith.constant 9.99999974E-6 : f32
    %140 = vector.broadcast %cst_59 : f32 to vector<1x1xf32>
    %141 = arith.addf %139, %140 : vector<1x1xf32>
    %142 = math.rsqrt %141 : vector<1x1xf32>
    %143 = vector.broadcast %142 : vector<1x1xf32> to vector<8x32xf32>
    %144 = arith.mulf %132, %143 : vector<8x32xf32>
    %c0_60 = arith.constant 0 : index
    %c0_61 = arith.constant 0 : index
    %145 = vector.load %arg19[%c0_60, %c0_61] : memref<8x32xf32, #tpu.memory_space<vmem>>, vector<8x32xf32>
    %146 = arith.mulf %144, %145 : vector<8x32xf32>
    %c0_62 = arith.constant 0 : index
    %c0_63 = arith.constant 0 : index
    %147 = vector.load %arg20[%c0_62, %c0_63] : memref<8x32xf32, #tpu.memory_space<vmem>>, vector<8x32xf32>
    %148 = arith.addf %146, %147 : vector<8x32xf32>
    %149 = arith.truncf %148 : vector<8x32xf32> to vector<8x32xbf16>
    %c0_64 = arith.constant 0 : index
    %c0_65 = arith.constant 0 : index
    %150 = vector.load %arg9[%c0_64, %c0_65] : memref<32x32xbf16, #tpu.memory_space<vmem>>, vector<32x32xbf16>
    %cst_66 = arith.constant dense<0.000000e+00> : vector<8x32xf32>
    %151 = tpu.matmul %149, %150, %cst_66 {dimension_numbers = #tpu.dot_dimension_numbers<[1], [0], [0], [1], [0, 0, 1, 1], [], []>} : vector<8x32xbf16>, vector<32x32xbf16>, vector<8x32xf32> -> vector<8x32xf32>
    %c0_67 = arith.constant 0 : index
    %c0_68 = arith.constant 0 : index
    %152 = vector.load %arg10[%c0_67, %c0_68] : memref<1x32xf32, #tpu.memory_space<vmem>>, vector<1x32xf32>
    %153 = vector.broadcast %152 : vector<1x32xf32> to vector<8x32xf32>
    %154 = arith.addf %151, %153 : vector<8x32xf32>
    %155 = arith.truncf %3 : vector<8x32xf32> to vector<8x32xbf16>
    %c0_69 = arith.constant 0 : index
    %c0_70 = arith.constant 0 : index
    %156 = vector.load %arg11[%c0_69, %c0_70] : memref<32x64xbf16, #tpu.memory_space<vmem>>, vector<32x64xbf16>
    %cst_71 = arith.constant dense<0.000000e+00> : vector<8x64xf32>
    %157 = tpu.matmul %155, %156, %cst_71 {dimension_numbers = #tpu.dot_dimension_numbers<[1], [0], [0], [1], [0, 0, 1, 1], [], []>} : vector<8x32xbf16>, vector<32x64xbf16>, vector<8x64xf32> -> vector<8x64xf32>
    %c0_72 = arith.constant 0 : index
    %c0_73 = arith.constant 0 : index
    %158 = vector.load %arg12[%c0_72, %c0_73] : memref<1x64xf32, #tpu.memory_space<vmem>>, vector<1x64xf32>
    %159 = vector.broadcast %158 : vector<1x64xf32> to vector<8x64xf32>
    %160 = arith.addf %157, %159 : vector<8x64xf32>
    %161 = vector.extract_strided_slice %160 {offsets = [0, 0], sizes = [8, 32], strides = [1, 1]} : vector<8x64xf32> to vector<8x32xf32>
    %162 = vector.extract_strided_slice %160 {offsets = [0, 32], sizes = [8, 32], strides = [1, 1]} : vector<8x64xf32> to vector<8x32xf32>
    %163 = vector.extract_strided_slice %154 {offsets = [0, 0], sizes = [8, 8], strides = [1, 1]} : vector<8x32xf32> to vector<8x8xf32>
    %164 = arith.truncf %163 : vector<8x8xf32> to vector<8x8xbf16>
    %165 = vector.extract_strided_slice %161 {offsets = [0, 0], sizes = [8, 8], strides = [1, 1]} : vector<8x32xf32> to vector<8x8xf32>
    %166 = arith.truncf %165 : vector<8x8xf32> to vector<8x8xbf16>
    %167 = vector.extract_strided_slice %162 {offsets = [0, 0], sizes = [8, 8], strides = [1, 1]} : vector<8x32xf32> to vector<8x8xf32>
    %168 = arith.truncf %167 : vector<8x8xf32> to vector<8x8xbf16>
    %cst_74 = arith.constant dense<0.000000e+00> : vector<8x8xf32>
    %169 = tpu.matmul %164, %166, %cst_74 {dimension_numbers = #tpu.dot_dimension_numbers<[1], [1], [0], [0], [0, 0, 1, 0], [], []>} : vector<8x8xbf16>, vector<8x8xbf16>, vector<8x8xf32> -> vector<8x8xf32>
    %cst_75 = arith.constant 0.353553385 : f32
    %170 = vector.broadcast %cst_75 : f32 to vector<8x8xf32>
    %171 = arith.mulf %169, %170 : vector<8x8xf32>
    %172 = arith.addf %171, %7 : vector<8x8xf32>
    %cst_76 = arith.constant dense<0xFF800000> : vector<8xf32>
    %173 = vector.multi_reduction <maximumf>, %172, %cst_76 [1] : vector<8x8xf32> to vector<8xf32>
    %174 = vector.shape_cast %173 : vector<8xf32> to vector<8x1xf32>
    %175 = vector.broadcast %174 : vector<8x1xf32> to vector<8x8xf32>
    %176 = arith.subf %172, %175 : vector<8x8xf32>
    %177 = math.exp %176 : vector<8x8xf32>
    %cst_77 = arith.constant dense<0.000000e+00> : vector<8xf32>
    %178 = vector.multi_reduction <add>, %177, %cst_77 [1] : vector<8x8xf32> to vector<8xf32>
    %179 = vector.shape_cast %178 : vector<8xf32> to vector<8x1xf32>
    %180 = tpu.reciprocal %179 {approx = true} : vector<8x1xf32> -> vector<8x1xf32>
    %181 = vector.broadcast %180 : vector<8x1xf32> to vector<8x8xf32>
    %182 = arith.mulf %177, %181 : vector<8x8xf32>
    %c0_78 = arith.constant 0 : index
    %c0_79 = arith.constant 0 : index
    %c0_80 = arith.constant 0 : index
    %c0_81 = arith.constant 0 : index
    %183 = vector.load %arg27[%c0_78, %c0_79, %c0_80, %c0_81] : memref<1x4x8x8xf32, #tpu.memory_space<vmem>>, vector<1x1x8x8xf32>
    %184 = vector.shape_cast %183 : vector<1x1x8x8xf32> to vector<8x8xf32>
    %185 = vector.shape_cast %182 : vector<8x8xf32> to vector<1x1x8x8xf32>
    tpu.vector_store %arg27[%c0_78, %c0_79, %c0_80, %c0_81], %185 {strides = array<i32>} : memref<1x4x8x8xf32, #tpu.memory_space<vmem>>, vector<1x1x8x8xf32>,
    %186 = arith.truncf %182 : vector<8x8xf32> to vector<8x8xbf16>
    %cst_82 = arith.constant dense<0.000000e+00> : vector<8x8xf32>
    %187 = tpu.matmul %186, %168, %cst_82 {dimension_numbers = #tpu.dot_dimension_numbers<[1], [0], [0], [1], [0, 0, 1, 1], [], []>} : vector<8x8xbf16>, vector<8x8xbf16>, vector<8x8xf32> -> vector<8x8xf32>
    %188 = vector.extract_strided_slice %154 {offsets = [0, 8], sizes = [8, 8], strides = [1, 1]} : vector<8x32xf32> to vector<8x8xf32>
    %189 = arith.truncf %188 : vector<8x8xf32> to vector<8x8xbf16>
    %190 = vector.extract_strided_slice %161 {offsets = [0, 8], sizes = [8, 8], strides = [1, 1]} : vector<8x32xf32> to vector<8x8xf32>
    %191 = arith.truncf %190 : vector<8x8xf32> to vector<8x8xbf16>
    %192 = vector.extract_strided_slice %162 {offsets = [0, 8], sizes = [8, 8], strides = [1, 1]} : vector<8x32xf32> to vector<8x8xf32>
    %193 = arith.truncf %192 : vector<8x8xf32> to vector<8x8xbf16>
    %cst_83 = arith.constant dense<0.000000e+00> : vector<8x8xf32>
    %194 = tpu.matmul %189, %191, %cst_83 {dimension_numbers = #tpu.dot_dimension_numbers<[1], [1], [0], [0], [0, 0, 1, 0], [], []>} : vector<8x8xbf16>, vector<8x8xbf16>, vector<8x8xf32> -> vector<8x8xf32>
    %cst_84 = arith.constant 0.353553385 : f32
    %195 = vector.broadcast %cst_84 : f32 to vector<8x8xf32>
    %196 = arith.mulf %194, %195 : vector<8x8xf32>
    %197 = arith.addf %196, %7 : vector<8x8xf32>
    %cst_85 = arith.constant dense<0xFF800000> : vector<8xf32>
    %198 = vector.multi_reduction <maximumf>, %197, %cst_85 [1] : vector<8x8xf32> to vector<8xf32>
    %199 = vector.shape_cast %198 : vector<8xf32> to vector<8x1xf32>
    %200 = vector.broadcast %199 : vector<8x1xf32> to vector<8x8xf32>
    %201 = arith.subf %197, %200 : vector<8x8xf32>
    %202 = math.exp %201 : vector<8x8xf32>
    %cst_86 = arith.constant dense<0.000000e+00> : vector<8xf32>
    %203 = vector.multi_reduction <add>, %202, %cst_86 [1] : vector<8x8xf32> to vector<8xf32>
    %204 = vector.shape_cast %203 : vector<8xf32> to vector<8x1xf32>
    %205 = tpu.reciprocal %204 {approx = true} : vector<8x1xf32> -> vector<8x1xf32>
    %206 = vector.broadcast %205 : vector<8x1xf32> to vector<8x8xf32>
    %207 = arith.mulf %202, %206 : vector<8x8xf32>
    %c0_87 = arith.constant 0 : index
    %c1_88 = arith.constant 1 : index
    %c0_89 = arith.constant 0 : index
    %c0_90 = arith.constant 0 : index
    %208 = vector.load %arg27[%c0_87, %c1_88, %c0_89, %c0_90] : memref<1x4x8x8xf32, #tpu.memory_space<vmem>>, vector<1x1x8x8xf32>
    %209 = vector.shape_cast %208 : vector<1x1x8x8xf32> to vector<8x8xf32>
    %210 = vector.shape_cast %207 : vector<8x8xf32> to vector<1x1x8x8xf32>
    tpu.vector_store %arg27[%c0_87, %c1_88, %c0_89, %c0_90], %210 {strides = array<i32>} : memref<1x4x8x8xf32, #tpu.memory_space<vmem>>, vector<1x1x8x8xf32>,
    %211 = arith.truncf %207 : vector<8x8xf32> to vector<8x8xbf16>
    %cst_91 = arith.constant dense<0.000000e+00> : vector<8x8xf32>
    %212 = tpu.matmul %211, %193, %cst_91 {dimension_numbers = #tpu.dot_dimension_numbers<[1], [0], [0], [1], [0, 0, 1, 1], [], []>} : vector<8x8xbf16>, vector<8x8xbf16>, vector<8x8xf32> -> vector<8x8xf32>
    %213 = vector.extract_strided_slice %154 {offsets = [0, 16], sizes = [8, 8], strides = [1, 1]} : vector<8x32xf32> to vector<8x8xf32>
    %214 = arith.truncf %213 : vector<8x8xf32> to vector<8x8xbf16>
    %215 = vector.extract_strided_slice %161 {offsets = [0, 16], sizes = [8, 8], strides = [1, 1]} : vector<8x32xf32> to vector<8x8xf32>
    %216 = arith.truncf %215 : vector<8x8xf32> to vector<8x8xbf16>
    %217 = vector.extract_strided_slice %162 {offsets = [0, 16], sizes = [8, 8], strides = [1, 1]} : vector<8x32xf32> to vector<8x8xf32>
    %218 = arith.truncf %217 : vector<8x8xf32> to vector<8x8xbf16>
    %cst_92 = arith.constant dense<0.000000e+00> : vector<8x8xf32>
    %219 = tpu.matmul %214, %216, %cst_92 {dimension_numbers = #tpu.dot_dimension_numbers<[1], [1], [0], [0], [0, 0, 1, 0], [], []>} : vector<8x8xbf16>, vector<8x8xbf16>, vector<8x8xf32> -> vector<8x8xf32>
    %cst_93 = arith.constant 0.353553385 : f32
    %220 = vector.broadcast %cst_93 : f32 to vector<8x8xf32>
    %221 = arith.mulf %219, %220 : vector<8x8xf32>
    %222 = arith.addf %221, %7 : vector<8x8xf32>
    %cst_94 = arith.constant dense<0xFF800000> : vector<8xf32>
    %223 = vector.multi_reduction <maximumf>, %222, %cst_94 [1] : vector<8x8xf32> to vector<8xf32>
    %224 = vector.shape_cast %223 : vector<8xf32> to vector<8x1xf32>
    %225 = vector.broadcast %224 : vector<8x1xf32> to vector<8x8xf32>
    %226 = arith.subf %222, %225 : vector<8x8xf32>
    %227 = math.exp %226 : vector<8x8xf32>
    %cst_95 = arith.constant dense<0.000000e+00> : vector<8xf32>
    %228 = vector.multi_reduction <add>, %227, %cst_95 [1] : vector<8x8xf32> to vector<8xf32>
    %229 = vector.shape_cast %228 : vector<8xf32> to vector<8x1xf32>
    %230 = tpu.reciprocal %229 {approx = true} : vector<8x1xf32> -> vector<8x1xf32>
    %231 = vector.broadcast %230 : vector<8x1xf32> to vector<8x8xf32>
    %232 = arith.mulf %227, %231 : vector<8x8xf32>
    %c0_96 = arith.constant 0 : index
    %c2_97 = arith.constant 2 : index
    %c0_98 = arith.constant 0 : index
    %c0_99 = arith.constant 0 : index
    %233 = vector.load %arg27[%c0_96, %c2_97, %c0_98, %c0_99] : memref<1x4x8x8xf32, #tpu.memory_space<vmem>>, vector<1x1x8x8xf32>
    %234 = vector.shape_cast %233 : vector<1x1x8x8xf32> to vector<8x8xf32>
    %235 = vector.shape_cast %232 : vector<8x8xf32> to vector<1x1x8x8xf32>
    tpu.vector_store %arg27[%c0_96, %c2_97, %c0_98, %c0_99], %235 {strides = array<i32>} : memref<1x4x8x8xf32, #tpu.memory_space<vmem>>, vector<1x1x8x8xf32>,
    %236 = arith.truncf %232 : vector<8x8xf32> to vector<8x8xbf16>
    %cst_100 = arith.constant dense<0.000000e+00> : vector<8x8xf32>
    %237 = tpu.matmul %236, %218, %cst_100 {dimension_numbers = #tpu.dot_dimension_numbers<[1], [0], [0], [1], [0, 0, 1, 1], [], []>} : vector<8x8xbf16>, vector<8x8xbf16>, vector<8x8xf32> -> vector<8x8xf32>
    %238 = vector.extract_strided_slice %154 {offsets = [0, 24], sizes = [8, 8], strides = [1, 1]} : vector<8x32xf32> to vector<8x8xf32>
    %239 = arith.truncf %238 : vector<8x8xf32> to vector<8x8xbf16>
    %240 = vector.extract_strided_slice %161 {offsets = [0, 24], sizes = [8, 8], strides = [1, 1]} : vector<8x32xf32> to vector<8x8xf32>
    %241 = arith.truncf %240 : vector<8x8xf32> to vector<8x8xbf16>
    %242 = vector.extract_strided_slice %162 {offsets = [0, 24], sizes = [8, 8], strides = [1, 1]} : vector<8x32xf32> to vector<8x8xf32>
    %243 = arith.truncf %242 : vector<8x8xf32> to vector<8x8xbf16>
    %cst_101 = arith.constant dense<0.000000e+00> : vector<8x8xf32>
    %244 = tpu.matmul %239, %241, %cst_101 {dimension_numbers = #tpu.dot_dimension_numbers<[1], [1], [0], [0], [0, 0, 1, 0], [], []>} : vector<8x8xbf16>, vector<8x8xbf16>, vector<8x8xf32> -> vector<8x8xf32>
    %cst_102 = arith.constant 0.353553385 : f32
    %245 = vector.broadcast %cst_102 : f32 to vector<8x8xf32>
    %246 = arith.mulf %244, %245 : vector<8x8xf32>
    %247 = arith.addf %246, %7 : vector<8x8xf32>
    %cst_103 = arith.constant dense<0xFF800000> : vector<8xf32>
    %248 = vector.multi_reduction <maximumf>, %247, %cst_103 [1] : vector<8x8xf32> to vector<8xf32>
    %249 = vector.shape_cast %248 : vector<8xf32> to vector<8x1xf32>
    %250 = vector.broadcast %249 : vector<8x1xf32> to vector<8x8xf32>
    %251 = arith.subf %247, %250 : vector<8x8xf32>
    %252 = math.exp %251 : vector<8x8xf32>
    %cst_104 = arith.constant dense<0.000000e+00> : vector<8xf32>
    %253 = vector.multi_reduction <add>, %252, %cst_104 [1] : vector<8x8xf32> to vector<8xf32>
    %254 = vector.shape_cast %253 : vector<8xf32> to vector<8x1xf32>
    %255 = tpu.reciprocal %254 {approx = true} : vector<8x1xf32> -> vector<8x1xf32>
    %256 = vector.broadcast %255 : vector<8x1xf32> to vector<8x8xf32>
    %257 = arith.mulf %252, %256 : vector<8x8xf32>
    %c0_105 = arith.constant 0 : index
    %c3_106 = arith.constant 3 : index
    %c0_107 = arith.constant 0 : index
    %c0_108 = arith.constant 0 : index
    %258 = vector.load %arg27[%c0_105, %c3_106, %c0_107, %c0_108] : memref<1x4x8x8xf32, #tpu.memory_space<vmem>>, vector<1x1x8x8xf32>
    %259 = vector.shape_cast %258 : vector<1x1x8x8xf32> to vector<8x8xf32>
    %260 = vector.shape_cast %257 : vector<8x8xf32> to vector<1x1x8x8xf32>
    tpu.vector_store %arg27[%c0_105, %c3_106, %c0_107, %c0_108], %260 {strides = array<i32>} : memref<1x4x8x8xf32, #tpu.memory_space<vmem>>, vector<1x1x8x8xf32>,
    %261 = arith.truncf %257 : vector<8x8xf32> to vector<8x8xbf16>
    %cst_109 = arith.constant dense<0.000000e+00> : vector<8x8xf32>
    %262 = tpu.matmul %261, %243, %cst_109 {dimension_numbers = #tpu.dot_dimension_numbers<[1], [0], [0], [1], [0, 0, 1, 1], [], []>} : vector<8x8xbf16>, vector<8x8xbf16>, vector<8x8xf32> -> vector<8x8xf32>
    %263 = tpu.concatenate %187, %212, %237, %262 in 1 : vector<8x8xf32>, vector<8x8xf32>, vector<8x8xf32>, vector<8x8xf32> -> vector<8x32xf32>
    %264 = arith.truncf %263 : vector<8x32xf32> to vector<8x32xbf16>
    %c0_110 = arith.constant 0 : index
    %c0_111 = arith.constant 0 : index
    %265 = vector.load %arg13[%c0_110, %c0_111] : memref<32x32xbf16, #tpu.memory_space<vmem>>, vector<32x32xbf16>
    %cst_112 = arith.constant dense<0.000000e+00> : vector<8x32xf32>
    %266 = tpu.matmul %264, %265, %cst_112 {dimension_numbers = #tpu.dot_dimension_numbers<[1], [0], [0], [1], [0, 0, 1, 1], [], []>} : vector<8x32xbf16>, vector<32x32xbf16>, vector<8x32xf32> -> vector<8x32xf32>
    %c0_113 = arith.constant 0 : index
    %c0_114 = arith.constant 0 : index
    %267 = vector.load %arg14[%c0_113, %c0_114] : memref<1x32xf32, #tpu.memory_space<vmem>>, vector<1x32xf32>
    %268 = vector.broadcast %267 : vector<1x32xf32> to vector<8x32xf32>
    %269 = arith.addf %266, %268 : vector<8x32xf32>
    %270 = arith.addf %269, %148 : vector<8x32xf32>
    %cst_115 = arith.constant dense<0.000000e+00> : vector<8xf32>
    %271 = vector.multi_reduction <add>, %270, %cst_115 [1] : vector<8x32xf32> to vector<8xf32>
    %272 = vector.shape_cast %271 : vector<8xf32> to vector<8x1xf32>
    %cst_116 = arith.constant dense<0.000000e+00> : vector<1xf32>
    %273 = vector.multi_reduction <add>, %272, %cst_116 [0] : vector<8x1xf32> to vector<1xf32>
    %274 = vector.shape_cast %273 : vector<1xf32> to vector<1x1xf32>
    %cst_117 = arith.constant 2.560000e+02 : f32
    %275 = vector.broadcast %cst_117 : f32 to vector<1x1xf32>
    %276 = arith.divf %274, %275 : vector<1x1xf32>
    %277 = vector.broadcast %276 : vector<1x1xf32> to vector<8x32xf32>
    %278 = arith.subf %270, %277 : vector<8x32xf32>
    %279 = arith.mulf %278, %278 : vector<8x32xf32>
    %cst_118 = arith.constant dense<0.000000e+00> : vector<8xf32>
    %280 = vector.multi_reduction <add>, %279, %cst_118 [1] : vector<8x32xf32> to vector<8xf32>
    %281 = vector.shape_cast %280 : vector<8xf32> to vector<8x1xf32>
    %cst_119 = arith.constant dense<0.000000e+00> : vector<1xf32>
    %282 = vector.multi_reduction <add>, %281, %cst_119 [0] : vector<8x1xf32> to vector<1xf32>
    %283 = vector.shape_cast %282 : vector<1xf32> to vector<1x1xf32>
    %cst_120 = arith.constant 2.560000e+02 : f32
    %284 = vector.broadcast %cst_120 : f32 to vector<1x1xf32>
    %285 = arith.divf %283, %284 : vector<1x1xf32>
    %cst_121 = arith.constant 9.99999974E-6 : f32
    %286 = vector.broadcast %cst_121 : f32 to vector<1x1xf32>
    %287 = arith.addf %285, %286 : vector<1x1xf32>
    %288 = math.rsqrt %287 : vector<1x1xf32>
    %289 = vector.broadcast %288 : vector<1x1xf32> to vector<8x32xf32>
    %290 = arith.mulf %278, %289 : vector<8x32xf32>
    %c0_122 = arith.constant 0 : index
    %c0_123 = arith.constant 0 : index
    %291 = vector.load %arg21[%c0_122, %c0_123] : memref<8x32xf32, #tpu.memory_space<vmem>>, vector<8x32xf32>
    %292 = arith.mulf %290, %291 : vector<8x32xf32>
    %c0_124 = arith.constant 0 : index
    %c0_125 = arith.constant 0 : index
    %293 = vector.load %arg22[%c0_124, %c0_125] : memref<8x32xf32, #tpu.memory_space<vmem>>, vector<8x32xf32>
    %294 = arith.addf %292, %293 : vector<8x32xf32>
    %295 = arith.truncf %294 : vector<8x32xf32> to vector<8x32xbf16>
    %c0_126 = arith.constant 0 : index
    %c0_127 = arith.constant 0 : index
    %296 = vector.load %arg15[%c0_126, %c0_127] : memref<32x64xbf16, #tpu.memory_space<vmem>>, vector<32x64xbf16>
    %cst_128 = arith.constant dense<0.000000e+00> : vector<8x64xf32>
    %297 = tpu.matmul %295, %296, %cst_128 {dimension_numbers = #tpu.dot_dimension_numbers<[1], [0], [0], [1], [0, 0, 1, 1], [], []>} : vector<8x32xbf16>, vector<32x64xbf16>, vector<8x64xf32> -> vector<8x64xf32>
    %c0_129 = arith.constant 0 : index
    %c0_130 = arith.constant 0 : index
    %298 = vector.load %arg16[%c0_129, %c0_130] : memref<1x64xf32, #tpu.memory_space<vmem>>, vector<1x64xf32>
    %299 = vector.broadcast %298 : vector<1x64xf32> to vector<8x64xf32>
    %300 = arith.addf %297, %299 : vector<8x64xf32>
    %cst_131 = arith.constant 0.000000e+00 : f32
    %301 = vector.broadcast %cst_131 : f32 to vector<8x64xf32>
    %302 = arith.maximumf %300, %301 : vector<8x64xf32>
    %303 = arith.truncf %302 : vector<8x64xf32> to vector<8x64xbf16>
    %c0_132 = arith.constant 0 : index
    %c0_133 = arith.constant 0 : index
    %304 = vector.load %arg17[%c0_132, %c0_133] : memref<64x32xbf16, #tpu.memory_space<vmem>>, vector<64x32xbf16>
    %cst_134 = arith.constant dense<0.000000e+00> : vector<8x32xf32>
    %305 = tpu.matmul %303, %304, %cst_134 {dimension_numbers = #tpu.dot_dimension_numbers<[1], [0], [0], [1], [0, 0, 1, 1], [], []>} : vector<8x64xbf16>, vector<64x32xbf16>, vector<8x32xf32> -> vector<8x32xf32>
    %c0_135 = arith.constant 0 : index
    %c0_136 = arith.constant 0 : index
    %306 = vector.load %arg18[%c0_135, %c0_136] : memref<1x32xf32, #tpu.memory_space<vmem>>, vector<1x32xf32>
    %307 = vector.broadcast %306 : vector<1x32xf32> to vector<8x32xf32>
    %308 = arith.addf %305, %307 : vector<8x32xf32>
    %309 = arith.addf %308, %294 : vector<8x32xf32>
    %cst_137 = arith.constant dense<0.000000e+00> : vector<8xf32>
    %310 = vector.multi_reduction <add>, %309, %cst_137 [1] : vector<8x32xf32> to vector<8xf32>
    %311 = vector.shape_cast %310 : vector<8xf32> to vector<8x1xf32>
    %cst_138 = arith.constant dense<0.000000e+00> : vector<1xf32>
    %312 = vector.multi_reduction <add>, %311, %cst_138 [0] : vector<8x1xf32> to vector<1xf32>
    %313 = vector.shape_cast %312 : vector<1xf32> to vector<1x1xf32>
    %cst_139 = arith.constant 2.560000e+02 : f32
    %314 = vector.broadcast %cst_139 : f32 to vector<1x1xf32>
    %315 = arith.divf %313, %314 : vector<1x1xf32>
    %316 = vector.broadcast %315 : vector<1x1xf32> to vector<8x32xf32>
    %317 = arith.subf %309, %316 : vector<8x32xf32>
    %318 = arith.mulf %317, %317 : vector<8x32xf32>
    %cst_140 = arith.constant dense<0.000000e+00> : vector<8xf32>
    %319 = vector.multi_reduction <add>, %318, %cst_140 [1] : vector<8x32xf32> to vector<8xf32>
    %320 = vector.shape_cast %319 : vector<8xf32> to vector<8x1xf32>
    %cst_141 = arith.constant dense<0.000000e+00> : vector<1xf32>
    %321 = vector.multi_reduction <add>, %320, %cst_141 [0] : vector<8x1xf32> to vector<1xf32>
    %322 = vector.shape_cast %321 : vector<1xf32> to vector<1x1xf32>
    %cst_142 = arith.constant 2.560000e+02 : f32
    %323 = vector.broadcast %cst_142 : f32 to vector<1x1xf32>
    %324 = arith.divf %322, %323 : vector<1x1xf32>
    %cst_143 = arith.constant 9.99999974E-6 : f32
    %325 = vector.broadcast %cst_143 : f32 to vector<1x1xf32>
    %326 = arith.addf %324, %325 : vector<1x1xf32>
    %327 = math.rsqrt %326 : vector<1x1xf32>
    %328 = vector.broadcast %327 : vector<1x1xf32> to vector<8x32xf32>
    %329 = arith.mulf %317, %328 : vector<8x32xf32>
    %c0_144 = arith.constant 0 : index
    %c0_145 = arith.constant 0 : index
    %330 = vector.load %arg23[%c0_144, %c0_145] : memref<8x32xf32, #tpu.memory_space<vmem>>, vector<8x32xf32>
    %331 = arith.mulf %329, %330 : vector<8x32xf32>
    %c0_146 = arith.constant 0 : index
    %c0_147 = arith.constant 0 : index
    %332 = vector.load %arg24[%c0_146, %c0_147] : memref<8x32xf32, #tpu.memory_space<vmem>>, vector<8x32xf32>
    %333 = arith.addf %331, %332 : vector<8x32xf32>
    %c0_148 = arith.constant 0 : index
    %c0_149 = arith.constant 0 : index
    %c0_150 = arith.constant 0 : index
    %334 = vector.load %arg25[%c0_148, %c0_149, %c0_150] : memref<1x8x32xf32, #tpu.memory_space<vmem>>, vector<1x8x32xf32>
    %335 = vector.shape_cast %334 : vector<1x8x32xf32> to vector<8x32xf32>
    %336 = vector.shape_cast %333 : vector<8x32xf32> to vector<1x8x32xf32>
    tpu.vector_store %arg25[%c0_148, %c0_149, %c0_150], %336 {strides = array<i32>} : memref<1x8x32xf32, #tpu.memory_space<vmem>>, vector<1x8x32xf32>,
    return
  }
  func.func @transform_0(%arg0: i32) -> (i32, i32, i32) {
    %c0_i32 = arith.constant 0 : i32
    %c0_i32_0 = arith.constant 0 : i32
    %c0_i32_1 = arith.constant 0 : i32
    return %arg0, %c0_i32, %c0_i32_0 : i32, i32, i32
  }
  func.func @transform_1(%arg0: i32) -> (i32, i32, i32) {
    %c0_i32 = arith.constant 0 : i32
    %c0_i32_0 = arith.constant 0 : i32
    %c0_i32_1 = arith.constant 0 : i32
    return %arg0, %c0_i32, %c0_i32_0 : i32, i32, i32
  }
  func.func @transform_2(%arg0: i32) -> (i32, i32, i32) {
    %c0_i32 = arith.constant 0 : i32
    %c0_i32_0 = arith.constant 0 : i32
    %c0_i32_1 = arith.constant 0 : i32
    return %arg0, %c0_i32, %c0_i32_0 : i32, i32, i32
  }
  func.func @transform_3(%arg0: i32) -> (i32, i32, i32) {
    %c0_i32 = arith.constant 0 : i32
    %c0_i32_0 = arith.constant 0 : i32
    %c0_i32_1 = arith.constant 0 : i32
    return %arg0, %c0_i32, %c0_i32_0 : i32, i32, i32
  }
  func.func @transform_4(%arg0: i32) -> (i32, i32) {
    %c0_i32 = arith.constant 0 : i32
    %c0_i32_0 = arith.constant 0 : i32
    %c0_i32_1 = arith.constant 0 : i32
    return %c0_i32, %c0_i32_0 : i32, i32
  }
  func.func @transform_5(%arg0: i32) -> (i32, i32) {
    %c0_i32 = arith.constant 0 : i32
    %c0_i32_0 = arith.constant 0 : i32
    %c0_i32_1 = arith.constant 0 : i32
    return %c0_i32, %c0_i32_0 : i32, i32
  }
  func.func @transform_6(%arg0: i32) -> (i32, i32) {
    %c0_i32 = arith.constant 0 : i32
    %c0_i32_0 = arith.constant 0 : i32
    %c0_i32_1 = arith.constant 0 : i32
    return %c0_i32, %c0_i32_0 : i32, i32
  }
  func.func @transform_7(%arg0: i32) -> (i32, i32) {
    %c0_i32 = arith.constant 0 : i32
    %c0_i32_0 = arith.constant 0 : i32
    %c0_i32_1 = arith.constant 0 : i32
    return %c0_i32, %c0_i32_0 : i32, i32
  }
  func.func @transform_8(%arg0: i32) -> (i32, i32) {
    %c0_i32 = arith.constant 0 : i32
    %c0_i32_0 = arith.constant 0 : i32
    %c0_i32_1 = arith.constant 0 : i32
    return %c0_i32, %c0_i32_0 : i32, i32
  }
  func.func @transform_9(%arg0: i32) -> (i32, i32) {
    %c0_i32 = arith.constant 0 : i32
    %c0_i32_0 = arith.constant 0 : i32
    %c0_i32_1 = arith.constant 0 : i32
    return %c0_i32, %c0_i32_0 : i32, i32
  }
  func.func @transform_10(%arg0: i32) -> (i32, i32) {
    %c0_i32 = arith.constant 0 : i32
    %c0_i32_0 = arith.constant 0 : i32
    %c0_i32_1 = arith.constant 0 : i32
    return %c0_i32, %c0_i32_0 : i32, i32
  }
  func.func @transform_11(%arg0: i32) -> (i32, i32) {
    %c0_i32 = arith.constant 0 : i32
    %c0_i32_0 = arith.constant 0 : i32
    %c0_i32_1 = arith.constant 0 : i32
    return %c0_i32, %c0_i32_0 : i32, i32
  }
  func.func @transform_12(%arg0: i32) -> (i32, i32) {
    %c0_i32 = arith.constant 0 : i32
    %c0_i32_0 = arith.constant 0 : i32
    %c0_i32_1 = arith.constant 0 : i32
    return %c0_i32, %c0_i32_0 : i32, i32
  }
  func.func @transform_13(%arg0: i32) -> (i32, i32) {
    %c0_i32 = arith.constant 0 : i32
    %c0_i32_0 = arith.constant 0 : i32
    %c0_i32_1 = arith.constant 0 : i32
    return %c0_i32, %c0_i32_0 : i32, i32
  }
  func.func @transform_14(%arg0: i32) -> (i32, i32) {
    %c0_i32 = arith.constant 0 : i32
    %c0_i32_0 = arith.constant 0 : i32
    %c0_i32_1 = arith.constant 0 : i32
    return %c0_i32, %c0_i32_0 : i32, i32
  }
  func.func @transform_15(%arg0: i32) -> (i32, i32) {
    %c0_i32 = arith.constant 0 : i32
    %c0_i32_0 = arith.constant 0 : i32
    %c0_i32_1 = arith.constant 0 : i32
    return %c0_i32, %c0_i32_0 : i32, i32
  }
  func.func @transform_16(%arg0: i32) -> (i32, i32) {
    %c0_i32 = arith.constant 0 : i32
    %c0_i32_0 = arith.constant 0 : i32
    %c0_i32_1 = arith.constant 0 : i32
    return %c0_i32, %c0_i32_0 : i32, i32
  }
  func.func @transform_17(%arg0: i32) -> (i32, i32) {
    %c0_i32 = arith.constant 0 : i32
    %c0_i32_0 = arith.constant 0 : i32
    %c0_i32_1 = arith.constant 0 : i32
    return %c0_i32, %c0_i32_0 : i32, i32
  }
  func.func @transform_18(%arg0: i32) -> (i32, i32) {
    %c0_i32 = arith.constant 0 : i32
    %c0_i32_0 = arith.constant 0 : i32
    %c0_i32_1 = arith.constant 0 : i32
    return %c0_i32, %c0_i32_0 : i32, i32
  }
  func.func @transform_19(%arg0: i32) -> (i32, i32) {
    %c0_i32 = arith.constant 0 : i32
    %c0_i32_0 = arith.constant 0 : i32
    %c0_i32_1 = arith.constant 0 : i32
    return %c0_i32, %c0_i32_0 : i32, i32
  }
  func.func @transform_20(%arg0: i32) -> (i32, i32) {
    %c0_i32 = arith.constant 0 : i32
    %c0_i32_0 = arith.constant 0 : i32
    %c0_i32_1 = arith.constant 0 : i32
    return %c0_i32, %c0_i32_0 : i32, i32
  }
  func.func @transform_21(%arg0: i32) -> (i32, i32) {
    %c0_i32 = arith.constant 0 : i32
    %c0_i32_0 = arith.constant 0 : i32
    %c0_i32_1 = arith.constant 0 : i32
    return %c0_i32, %c0_i32_0 : i32, i32
  }
  func.func @transform_22(%arg0: i32) -> (i32, i32) {
    %c0_i32 = arith.constant 0 : i32
    %c0_i32_0 = arith.constant 0 : i32
    %c0_i32_1 = arith.constant 0 : i32
    return %c0_i32, %c0_i32_0 : i32, i32
  }
  func.func @transform_23(%arg0: i32) -> (i32, i32) {
    %c0_i32 = arith.constant 0 : i32
    %c0_i32_0 = arith.constant 0 : i32
    %c0_i32_1 = arith.constant 0 : i32
    return %c0_i32, %c0_i32_0 : i32, i32
  }
  func.func @transform_24(%arg0: i32) -> (i32, i32, i32) {
    %c0_i32 = arith.constant 0 : i32
    %c0_i32_0 = arith.constant 0 : i32
    %c0_i32_1 = arith.constant 0 : i32
    return %arg0, %c0_i32, %c0_i32_0 : i32, i32, i32
  }
  func.func @transform_25(%arg0: i32) -> (i32, i32, i32, i32) {
    %c0_i32 = arith.constant 0 : i32
    %c0_i32_0 = arith.constant 0 : i32
    %c0_i32_1 = arith.constant 0 : i32
    %c0_i32_2 = arith.constant 0 : i32
    return %arg0, %c0_i32, %c0_i32_0, %c0_i32_1 : i32, i32, i32, i32
  }
  func.func @transform_26(%arg0: i32) -> (i32, i32, i32, i32) {
    %c0_i32 = arith.constant 0 : i32
    %c0_i32_0 = arith.constant 0 : i32
    %c0_i32_1 = arith.constant 0 : i32
    %c0_i32_2 = arith.constant 0 : i32
    return %arg0, %c0_i32, %c0_i32_0, %c0_i32_1 : i32, i32, i32, i32
  }
}

</mosaic_0001>

<bundles_post_ra>
// kernel: decoder_forward.2
= control target key start
LH: loop header
LB: loop body
LE: loop exit
PB: predicated region body
PF: predicated region fallthrough
CT: control target
= control target key end

     0   :  { %s2837_s0 = inlined_call_operand.vmem [shape: f32[2,8,32], index: 0, kind: input, shape index: {}]   ;;  %s2838_s1 = inlined_call_operand.vmem [shape: f32[2,8,32], index: 1, kind: input, shape index: {}]   ;;  %s2839_s2 = inlined_call_operand.vmem [shape: f32[2,8,8], index: 2, kind: input, shape index: {}]   ;;  %s2840_s3 = inlined_call_operand.vmem [shape: f32[2,8,8], index: 3, kind: input, shape index: {}]   ;;  %s2841_s4 = inlined_call_operand.vmem [shape: bf16[32,96], index: 4, kind: input, shape index: {}]   ;;  %s2842_s5 = inlined_call_operand.vmem [shape: f32[1,96], index: 5, kind: input, shape index: {}]   ;;  %s2843_s6 = inlined_call_operand.vmem [shape: bf16[32,32], index: 6, kind: input, shape index: {}]   ;;  %s2844_s7 = inlined_call_operand.vmem [shape: f32[1,32], index: 7, kind: input, shape index: {}]   ;;  %s2845_s8 = inlined_call_operand.vmem [shape: bf16[32,32], index: 8, kind: input, shape index: {}]   ;;  %s2846_s9 = inlined_call_operand.vmem [shape: f32[1,32], index: 9, kind: input, shape index: {}]   ;;  %s2847_s10 = inlined_call_operand.vmem [shape: bf16[32,64], index: 10, kind: input, shape index: {}]   ;;  %s2848_s11 = inlined_call_operand.vmem [shape: f32[1,64], index: 11, kind: input, shape index: {}]   ;;  %s2849_s12 = inlined_call_operand.vmem [shape: bf16[32,32], index: 12, kind: input, shape index: {}]   ;;  %s2850_s13 = inlined_call_operand.vmem [shape: f32[1,32], index: 13, kind: input, shape index: {}]   ;;  %s2851_s14 = inlined_call_operand.vmem [shape: bf16[32,64], index: 14, kind: input, shape index: {}]   ;;  %s2852_s15 = inlined_call_operand.vmem [shape: f32[1,64], index: 15, kind: input, shape index: {}]   ;;  %s2853_s16 = inlined_call_operand.vmem [shape: bf16[64,32], index: 16, kind: input, shape index: {}]   ;;  %s2854_s17 = inlined_call_operand.vmem [shape: f32[1,32], index: 17, kind: input, shape index: {}]   ;;  %s2855_s18 = inlined_call_operand.vmem [shape: f32[8,32], index: 18, kind: input, shape index: {}]   ;;  %s2856_s19 = inlined_call_operand.vmem [shape: f32[8,32], index: 19, kind: input, shape index: {}]   ;;  %s2857_s20 = inlined_call_operand.vmem [shape: f32[8,32], index: 20, kind: input, shape index: {}]   ;;  %s2858_s21 = inlined_call_operand.vmem [shape: f32[8,32], index: 21, kind: input, shape index: {}]   ;;  %s2859_s22 = inlined_call_operand.vmem [shape: f32[8,32], index: 22, kind: input, shape index: {}]   ;;  %s2860_s23 = inlined_call_operand.vmem [shape: f32[8,32], index: 23, kind: input, shape index: {}]   ;;  %s2861_s24 = inlined_call_operand.vmem [shape: f32[2,8,32], index: 24, kind: output, shape index: {0}]   ;;  %s2862_s25 = inlined_call_operand.hbm [shape: f32[2,4,8,8], index: 25, kind: output, shape index: {1}]   ;;  %s2863_s26 = inlined_call_operand.hbm [shape: f32[2,4,8,8], index: 26, kind: output, shape index: {2}]  }
   0x1   :  { %2894 = sst [smem:[#allocation15_spill]] %s2837_s0 }
   0x2   :  { %2895 = sst [smem:[#allocation16_spill]] %s2838_s1 }
   0x3   :  { %2896 = sst [smem:[#allocation17_spill]] %s2839_s2 }
   0x4   :  { %2897 = sst [smem:[#allocation18_spill]] %s2840_s3 }
   0x5   :  { %2898 = sst [smem:[#allocation19_spill]] %s2841_s4 }
   0x6   :  { %2899 = sst [smem:[#allocation20_spill]] %s2842_s5 }
   0x7   :  { %2900 = sst [smem:[#allocation21_spill]] %s2843_s6 }
   0x8   :  { %2901 = sst [smem:[#allocation22_spill]] %s2844_s7 }
   0x9   :  { %2902 = sst [smem:[#allocation23_spill]] %s2845_s8 }
   0xa   :  { %2903 = sst [smem:[#allocation24_spill]] %s2846_s9 }
   0xb   :  { %2904 = sst [smem:[#allocation25_spill]] %s2847_s10 }
   0xc   :  { %2905 = sst [smem:[#allocation26_spill]] %s2848_s11 }
   0xd   :  { %2906 = sst [smem:[#allocation27_spill]] %s2849_s12 }
   0xe   :  { %2907 = sst [smem:[#allocation28_spill]] %s2850_s13 }
   0xf   :  { %2908 = sst [smem:[#allocation29_spill]] %s2851_s14 }
  0x10   :  { %2909 = sst [smem:[#allocation30_spill]] %s2852_s15 }
  0x11   :  { %2910 = sst [smem:[#allocation31_spill]] %s2861_s24 }
  0x12   :  { %32 = vsyncpa [#allocation3], 0 }
  0x13   :  { %34 = vsyncpa [#allocation3 + $0x1], 0 }
  0x14   :  { %35 = vsyncpa [#allocation5], 0 }
  0x15   :  { %37 = vsyncpa [#allocation5 + $0x1], 0  ;;  %s2463_s27 = smov 0   ;;  %s2465_s3 = smov 0  }
  0x16   :  { %s2467_s7 = smov 0   ;;  %s2469_s28 = smov 0  }
  0x17 LB: > { %2911 = sst [smem:[#allocation8_spill]] %s2298_s27  ;;  %s2484_s8 = sadd.s32 4294967295, %s2310_s28   ;;  %s2310_s28 = sphi %s2469_s28, %s2951_s28   ;;  %s2306_s7 = sphi %s2467_s7, %s2954_s7   ;;  %s2302_s3 = sphi %s2465_s3, %s2953_s3   ;;  %s2298_s27 = sphi %s2463_s27, %s2952_s27  }
  0x18   : > { %2912 = sst [smem:[#allocation9_spill]] %s2302_s3  ;;  %s1979_s4 = sadd.s32 4294967294, %s2310_s28  }
  0x19   : > { %2913 = sst [smem:[#allocation10_spill]] %s2306_s7  ;;  %s2488_s29 = sadd.s32 1, %s2310_s28  }
  0x1a   : > { %2914 = sst [smem:[#allocation11_spill]] %s2310_s28  ;;  %s600_s0 = sadd.s32 1, %s2306_s7 }
  0x1b   : > { %2915 = sst [smem:[#allocation12_spill]] %s2488_s29  ;;  %s597_s9 = ssub.s32 %s2310_s28, %s2488_s29 }
  0x1c   : > { %p610_p0 = scmp.ne.s32.totalorder %s2306_s7, %s2302_s3  ;;  %p598_p1 = scmp.eq.s32.totalorder %s597_s9, 0 }
  0x1d   : > { %p611_p2 = scmp.eq.s32.totalorder %s2484_s8, 1  ;;  %p616_p3 = scmp.ne.s32.totalorder %s2302_s3, %s2298_s27 }
  0x1e   : > { %p617_p4 = scmp.eq.s32.totalorder %s1979_s4, 1  ;;  %p1982_p7 = scmp.ge.s32.totalorder %s2310_s28, 1 }
  0x1f   : > { %s2499_s30 = scalar_select %p598_p1, %s2306_s7, %s600_s0  }
  0x20   : > { %p2501_p5 = por %p611_p2, %p610_p0  ;;  %p2505_p6 = por %p617_p4, %p616_p3 }
  0x21   : > { %2916 = sst [smem:[#allocation13_spill]] %s2499_s30  ;;  %p749_p8 = scmp.lt.s32.totalorder %s2310_s28, 3 }
  0x22   : > { %s2918_s5 = scalar_select %p2505_p6, 1, 0 }
  0x23   : > { %p750_p9 = pnand %p1982_p7, %p749_p8 }
  0x24   : > { %2919 = sst [smem:[#allocation14_spill]] %s2918_s5  ;;  %p839_p10 = scmp.lt.s32.totalorder (!%p750_p9), %s2484_s8, 1 }
  0x25   : > { %753 = sbr.rel (%p750_p9) target bundleno = 3307 (0xceb), region = 116  ;;  %s2920_s1 = sld [smem:[#allocation19_spill]] (!%p750_p9) }
  0x26   : > { %s2921_s5 = sld [smem:[#allocation15_spill]] (!%p750_p9)  ;;  %s2878_s0 = smov (!%p750_p9), 104  }
  0x27   : > { %s2922_s4 = sld [smem:[#allocation20_spill]] (!%p750_p9)  ;;  %s2877_s7 = smov (!%p750_p9), 96  }
  0x28   : > { %s2873_s29 = smov (!%p750_p9), 80   ;;  %s2880_s10 = smov (!%p750_p9), 112  }
  0x29   : > { %s2321_s6 = smov (!%p750_p9), 56   ;;  %s2929_s11 = sld [smem:[#allocation26_spill]] (!%p750_p9) }
  0x2a   : > { %s840_s9 = scalar_select %p839_p10, %s2484_s8, 1  ;;  %vm885_vm0 = vcmask 261120   ;;  %vm906_vm1 = vcmask 64512   ;;  %vm946_vm2 = vcmask 1043456   ;;  %vm1156_vm3 = vcmask 130048  }
  0x2b   : > { %v2092_v0 = vld [vmem:[%s2920_s1 + $0x8] sm:$0xff]  ;;  %v2091_v1 = vld [vmem:[%s2920_s1] sm:$0xff]  ;;  %vm1158_vm4 = vcmask 195584   ;;  %s2928_s1 = sld [smem:[#allocation23_spill]]  ;;  %s2933_s28 = smov 104   ;;  %vm1722_vm12 = vcmask 523264  }
  0x2c   : > { %895 = vmatpush.bf16.msra.mxu0 %v2092_v0  ;;  %s2519_s30 = sshll.u32 %s840_s9, 3  ;;  %s2874_s9 = smov 88  }
  0x2d   : > { %s842_s27 = scalar_lea.vmem %s2921_s5, %s2519_s30  ;;  %v2169_v4 = vld [vmem:[%s2922_s4] ss:$0 sm:$0xff]  ;;  %s2876_s5 = smov 72  }
  0x2e   : > { %v2525_v2 = vld [vmem:[%s842_s27] sm:$0xff]  ;;  %s2882_s27 = smov 120   ;;  %s2322_s4 = smov 48  }
  0x2f   : > { %v864_v3 = vpack.c.bf16 %v2525_v2, %v2525_v2  ;;  %s2937_s24 = smov 88   ;;  %s2943_s12 = sld [smem:[#allocation27_spill]] }
  0x30   : > { %896 = vmatpush.bf16.msra.mxu0 %v2091_v1  ;;  %s2944_s13 = sld [smem:[#allocation28_spill]] }
  0x31   : > { %s2945_s14 = sld [smem:[#allocation29_spill]] }
  0x32   : > { %s2946_s15 = sld [smem:[#allocation30_spill]] }
  0x33   : > { %1998 = vmatmul.msk.bf16.vlgmr.msra.gmra.mxu0 %vm885_vm0, %v864_v3 }
  0xb0   : > { %v898_v5 = vpop.f32.mrf.mxu0 }
  0xb1   : > { %v899_v6 = vadd.f32 %v2169_v4, %v898_v5 }
  0xb3   : > { %v2533_v7 = vpack.c.bf16 %v899_v6, %v899_v6 }
  0xb5   : > { %1083 = vrot.lane.b32.xlu2 %v2533_v7, %s2878_s0  ;;  %963 = vrot.lane.b32.xlu1 %v2533_v7, %s2882_s27  ;;  %s2931_s27 = smov 112   ;;  %s2936_s0 = smov 72  }
  0xb6   : > { %904 = vrot.lane.b32.xlu0 %v2533_v7, %s2877_s7  ;;  %s2930_s7 = smov 120  }
  0xb8   : > { %v900_v8 = vpop.f32.mrf.mxu0 }
  0xbd   : > { %1025 = vrot.lane.b32.xlu2 %v2533_v7, %s2873_s29  ;;  %1085 = vrot.lane.b32.xlu1 %v2533_v7, %s2876_s5  ;;  %s2923_s29 = sld [smem:[#allocation17_spill]]  ;;  %s2885_s5 = smov 24  }
  0xbe   : > { %965 = vrot.lane.b32.xlu0 %v2533_v7, %s2874_s9 }
  0xc3   : > { %s850_s9 = scalar_lea.vmem %s2923_s29, %s2519_s30  ;;  %s2319_s29 = smov 64  }
  0xc4   : > { %v862_v21 = vld [vmem:[%s850_s9] sm:$0xff]  ;;  %s2320_s9 = smov 40  }
  0xc6   : > { %1023 = vrot.lane.b32.xlu0 %v2533_v7, %s2880_s10  ;;  %s2924_s10 = sld [smem:[#allocation21_spill]] }
 0x10f   : > { %v1084_v9 = vpop.permute.xlu2 %1083 }
 0x117   : > { %v1026_v10 = vpop.permute.xlu2 %1025 }
 0x118   : > { %v1031_v11 = vsel %vm906_vm1, %v1026_v10, 0 }
 0x119   : > { %1040 = vmatpush.bf16.xpose.msrb.mxu0 %v1031_v11 }
 0x127   : > { %v964_v12 = vpop.permute.xlu1 %963 }
 0x128   : > { %v905_v13 = vpop.permute.xlu0 %904 }
 0x129   : > { %v911_v14 = vsel %vm906_vm1, %v905_v13, 0 }
 0x12a   : > { %920 = vmatpush.bf16.xpose.msra.mxu1 %v911_v14 }
 0x12f   : > { %v1086_v15 = vpop.permute.xlu1 %1085 }
 0x130   : > { %v966_v16 = vpop.permute.xlu0 %965  ;;  %v1091_v17 = vsel %vm906_vm1, %v1086_v15, 0 }
 0x131   : > { %1999 = vmatmul.msk.bf16.vlgmr.msra.gmra.mxu1 %vm906_vm1, %v2533_v7  ;;  %v971_v18 = vsel %vm906_vm1, %v966_v16, 0 }
 0x132   : > { %980 = vmatpush.bf16.xpose.msra.mxu3 %v971_v18 }
 0x138   : > { %v1024_v19 = vpop.permute.xlu0 %1023 }
 0x139   : > { %2001 = vmatmul.msk.bf16.vlgmr.msra.gmra.mxu3 %vm906_vm1, %v964_v12  ;;  %2004 = vmatmul.msk.bf16.vlgmr.msrb.gmra.mxu0 %vm906_vm1, %v1024_v19 }
 0x13a   : > { %1100 = vmatpush.bf16.xpose.msrb.mxu3 %v1091_v17 }
 0x149   : > { %2007 = vmatmul.msk.bf16.vlgmr.msrb.gmra.mxu3 %vm906_vm1, %v1084_v9 }
 0x1ae   : > { %v922_v20 = vpop.f32.mrf.mxu1 }
 0x1af   : > { %v926_v22 = vmul.f32 0.35355338, %v922_v20 }
 0x1b1   : > { %v927_v23 = vadd.f32 %v926_v22, %v862_v21 }
 0x1b3   : > { %v928_v24 = vsel %vm906_vm1, %v927_v23, -inf }
 0x1b4   : > { %929 = vmax.xlane.f32.xlu1 %v928_v24 }
 0x1b6   : > { %v924_v25 = vpop.f32.mrf.mxu1  ;;  %v1042_v26 = vpop.f32.mrf.mxu0 }
 0x1b7   : > { %v1046_v31 = vmul.f32 0.35355338, %v1042_v26 }
 0x1b9   : > { %v1047_v34 = vadd.f32 %v1046_v31, %v862_v21  ;;  %v2093_v31 = vld [vmem:[%s2924_s10] sm:$0xff] }
 0x1bb   : > { %v1048_v35 = vsel %vm906_vm1, %v1047_v34, -inf }
 0x1bc   : > { %v982_v27 = vpop.f32.mrf.mxu3 }
 0x1bd   : > { %v986_v28 = vmul.f32 0.35355338, %v982_v27 }
 0x1be   : > { %v1044_v29 = vpop.f32.mrf.mxu0 }
 0x1bf   : > { %v987_v30 = vadd.f32 %v986_v28, %v862_v21 }
 0x1c1   : > { %v988_v32 = vsel %vm906_vm1, %v987_v30, -inf }
 0x1c2   : > { %989 = vmax.xlane.f32.xlu2 %v988_v32 }
 0x1c4   : > { %v984_v33 = vpop.f32.mrf.mxu3 }
 0x1ca   : > { %1049 = vmax.xlane.f32.xlu2 %v1048_v35 }
 0x1cc   : > { %v1102_v36 = vpop.f32.mrf.mxu3 }
 0x1cd   : > { %v1106_v37 = vmul.f32 0.35355338, %v1102_v36 }
 0x1cf   : > { %v1107_v38 = vadd.f32 %v1106_v37, %v862_v21 }
 0x1d1   : > { %v1108_v39 = vsel %vm906_vm1, %v1107_v38, -inf }
 0x1d2   : > { %1109 = vmax.xlane.f32.xlu0 %v1108_v39 }
 0x1d4   : > { %v1104_v40 = vpop.f32.mrf.mxu3 }
 0x1e2   : > { %941 = vrot.lane.b32.xlu2 %v2533_v7, %s2319_s29  ;;  %s2576_s29 = sand.u32 1, %s2302_s3   ;;  %s2932_s3 = sld [smem:[#allocation24_spill]] }
 0x1ea   : > { %1122 = vrot.lane.b32.xlu2 %v2533_v7, %s2320_s9  ;;  %s2875_s9 = sshll.u32 %s2576_s29, 5 }
 0x227   : > { %v930_v41 = vpop.xlane.xlu1 %929 }
 0x228   : > { %v931_v42 = vsub.f32 %v927_v23, %v930_v41 }
 0x22a   : > { %v932_v43 = vmul.f32 1.442695, %v931_v42 }
 0x22c   : > { %2176 = vpow2.f32 %v932_v43 }
 0x232   : > { %v2177_v44 = vpop.eup %2176 }
 0x233   : > { %v934_v45 = vsel %vm906_vm1, %v2177_v44, 0.0 }
 0x234   : > { %935 = vadd.xlane.f32.xlu1 %v934_v45  ;;  %v2326_v45 = vmov 256.0  }
 0x235   : > { %v990_v46 = vpop.xlane.xlu2 %989 }
 0x236   : > { %v991_v49 = vsub.f32 %v987_v30, %v990_v46  ;;  %v2094_v30 = vld [vmem:[%s2924_s10 + $0x8] sm:$0xff]  ;;  %s2939_s10 = smov 80  }
 0x237   : > { %1190 = vmatpush.bf16.msra.mxu0 %v2094_v30 }
 0x238   : > { %v992_v51 = vmul.f32 1.442695, %v991_v49 }
 0x23b   : > { %1191 = vmatpush.bf16.msra.mxu0 %v2093_v31 }
 0x23d   : > { %v1050_v47 = vpop.xlane.xlu2 %1049 }
 0x23e   : > { %v1051_v48 = vsub.f32 %v1047_v34, %v1050_v47 }
 0x240   : > { %v1052_v50 = vmul.f32 1.442695, %v1051_v48 }
 0x242   : > { %2178 = vpow2.f32 %v1052_v50 }
 0x243   : > { %2180 = vpow2.f32 %v992_v51 }
 0x245   : > { %v942_v52 = vpop.permute.xlu2 %941  ;;  %v1110_v53 = vpop.xlane.xlu0 %1109 }
 0x246   : > { %v948_v54 = vsel %vm946_vm2, %v942_v52, 0  ;;  %v1111_v56 = vsub.f32 %v1107_v38, %v1110_v53 }
 0x247   : > { %957 = vmatpush.bf16.msra.mxu2 %v948_v54 }
 0x248   : > { %v2179_v55 = vpop.eup %2178  ;;  %v1112_v58 = vmul.f32 1.442695, %v1111_v56 }
 0x249   : > { %v1054_v57 = vsel %vm906_vm1, %v2179_v55, 0.0  ;;  %v2181_v59 = vpop.eup %2180 }
 0x24a   : > { %1055 = vadd.xlane.f32.xlu0 %v1054_v57  ;;  %2182 = vpow2.f32 %v1112_v58  ;;  %v994_v60 = vsel %vm906_vm1, %v2181_v59, 0.0 }
 0x24d   : > { %1002 = vrot.lane.b32.xlu1 %v2533_v7, %s2321_s6  ;;  %s2581_s6 = scalar_lea.vmem [#allocation2], %s2875_s9  ;;  %v1123_v5 = vpop.permute.xlu2 %1122  ;;  %s2886_s9 = smov 16  }
 0x24e   : > { %v1128_v8 = vsel %vm946_vm2, %v1123_v5, 0  ;;  %v2096_v5 = vld [vmem:[%s2928_s1 + $0x8] sm:$0xff] }
 0x250   : > { %v2183_v61 = vpop.eup %2182 }
 0x251   : > { %v1114_v62 = vsel %vm906_vm1, %v2183_v61, 0.0 }
 0x252   : > { %995 = vadd.xlane.f32.xlu0 %v994_v60 }
 0x25a   : > { %1115 = vadd.xlane.f32.xlu0 %v1114_v62 }
 0x26e   : > { %1062 = vrot.lane.b32.xlu0 %v2533_v7, %s2322_s4  ;;  %s2887_s4 = smov 8  }
 0x2a7   : > { %v936_v63 = vpop.xlane.xlu1 %935 }
 0x2a8   : > { %2184 = vrcp.f32 %v936_v63 }
 0x2ae   : > { %v2185_v0 = vpop.eup %2184 }
 0x2af   : > { %v938_v1 = vmul.f32 %v2185_v0, %v2177_v44 }
 0x2b1   : > { %939 = vst.msk [vmem:[%s2581_s6] sm:$0xff] %vm906_vm1, %v938_v1  ;;  %v940_v3 = vpack.c.bf16 %v938_v1, %v938_v1 }
 0x2b3   : > { %2000 = vmatmul.msk.bf16.vlgmr.msra.gmra.mxu2 %vm906_vm1, %v940_v3 }
 0x2bd   : > { %v1056_v4 = vpop.xlane.xlu0 %1055 }
 0x2be   : > { %2186 = vrcp.f32 %v1056_v4 }
 0x2bf   : > { %v1003_v6 = vpop.permute.xlu1 %1002 }
 0x2c0   : > { %v1008_v7 = vsel %vm946_vm2, %v1003_v6, 0 }
 0x2c1   : > { %1017 = vmatpush.bf16.msrb.mxu2 %v1008_v7  ;;  %v2095_v7 = vld [vmem:[%s2928_s1] sm:$0xff]  ;;  %s2107_s1 = sshll.u32 %s2484_s8, 5 }
 0x2c4   : > { %v2187_v9 = vpop.eup %2186 }
 0x2c5   : > { %1137 = vmatpush.bf16.msra.mxu2 %v1128_v8  ;;  %v1058_v10 = vmul.f32 %v2187_v9, %v2179_v55  ;;  %v996_v11 = vpop.xlane.xlu0 %995 }
 0x2c6   : > { %2188 = vrcp.f32 %v996_v11 }
 0x2c7   : > { %2005 = vst.msk [vmem:[%s2581_s6 + $0x10] sm:$0xff] %vm906_vm1, %v1058_v10  ;;  %v1061_v21 = vpack.c.bf16 %v1058_v10, %v1058_v10 }
 0x2cc   : > { %v2189_v12 = vpop.eup %2188 }
 0x2cd   : > { %v998_v13 = vmul.f32 %v2189_v12, %v2181_v59  ;;  %v1116_v14 = vpop.xlane.xlu0 %1115 }
 0x2ce   : > { %2190 = vrcp.f32 %v1116_v14 }
 0x2cf   : > { %2002 = vst.msk [vmem:[%s2581_s6 + $0x8] sm:$0xff] %vm906_vm1, %v998_v13  ;;  %v1001_v15 = vpack.c.bf16 %v998_v13, %v998_v13  ;;  %2192 = vrcp.f32 %v2326_v45 }
 0x2d1   : > { %2003 = vmatmul.msk.bf16.vlgmr.msrb.gmra.mxu2 %vm906_vm1, %v1001_v15 }
 0x2d4   : > { %v2191_v16 = vpop.eup %2190 }
 0x2d5   : > { %v1118_v17 = vmul.f32 %v2191_v16, %v2183_v61  ;;  %v2193_v46 = vpop.eup %2192 }
 0x2d6   : > { %v1208_v47 = vmul.f32 256.0, %v2193_v46  ;;  %vm1212_vm5 = vweird.f32 %v2193_v46 }
 0x2d7   : > { %2008 = vst.msk [vmem:[%s2581_s6 + $0x18] sm:$0xff] %vm906_vm1, %v1118_v17  ;;  %v1121_v18 = vpack.c.bf16 %v1118_v17, %v1118_v17 }
 0x2d8   : > { %v1209_v48 = vsub.f32 1.0, %v1208_v47 }
 0x2da   : > { %v1210_v51 = vmul.f32 %v2193_v46, %v1209_v48 }
 0x2dc   : > { %v1211_v54 = vadd.f32 %v2193_v46, %v1210_v51 }
 0x2e0   : > { %v1063_v19 = vpop.permute.xlu0 %1062 }
 0x2e1   : > { %2009 = vmatmul.msk.bf16.vlgmr.msra.gmra.mxu2 %vm906_vm1, %v1121_v18  ;;  %v1068_v20 = vsel %vm946_vm2, %v1063_v19, 0 }
 0x2e2   : > { %1077 = vmatpush.bf16.msrb.mxu1 %v1068_v20 }
 0x2e5   : > { %2006 = vmatmul.msk.bf16.vlgmr.msrb.gmra.mxu1 %vm906_vm1, %v1061_v21  ;;  %v1239_v21 = vld [vmem:[%s2855_s18] sm:$0xff] }
 0x2e6   : > { %1273 = vmatpush.bf16.msra.mxu1 %v2096_v5 }
 0x2ea   : > { %1274 = vmatpush.bf16.msra.mxu1 %v2095_v7 }
 0x336   : > { %v959_v22 = vpop.f32.mrf.mxu2 }
 0x33e   : > { %v961_v23 = vpop.f32.mrf.mxu2 }
 0x33f   : > { %v1241_v23 = vld [vmem:[%s2856_s19] sm:$0xff] }
 0x354   : > { %v1019_v24 = vpop.f32.mrf.mxu2 }
 0x355   : > { %1144 = vrot.lane.b32.xlu1 %v1019_v24, %s2887_s4 }
 0x35c   : > { %v1021_v25 = vpop.f32.mrf.mxu2 }
 0x362   : > { %v1079_v26 = vpop.f32.mrf.mxu1 }
 0x363   : > { %1148 = vrot.lane.b32.xlu2 %v1079_v26, %s2886_s9  ;;  %s2927_s9 = sld [smem:[#allocation16_spill]] }
 0x364   : > { %v1139_v27 = vpop.f32.mrf.mxu2 }
 0x365   : > { %1152 = vrot.lane.b32.xlu1 %v1139_v27, %s2885_s5  ;;  %s2925_s5 = sld [smem:[#allocation22_spill]]  ;;  %v2171_v27 = vld [vmem:[%s2929_s11] ss:$0 sm:$0xff]  ;;  %s1784_s11 = scalar_lea.sflag [#allocation3], %s2576_s29 }
 0x369   : > { %s846_s4 = scalar_lea.vmem %s2927_s9, %s2519_s30  ;;  %s2940_s9 = smov 8  }
 0x36a   : > { %v1081_v28 = vpop.f32.mrf.mxu1  ;;  %v861_v0 = vld [vmem:[%s846_s4] sm:$0xff]  ;;  %s2934_s4 = sld [smem:[#allocation18_spill]] }
 0x36b   : > { %v2170_v39 = vld [vmem:[%s2925_s5] ss:$0 sm:$0xff]  ;;  %s2926_s5 = sld [smem:[#allocation25_spill]]  ;;  %v1280_v1 = vpack.c.bf16 %v861_v0, %v861_v0 }
 0x36c   : > { %v1141_v29 = vpop.f32.mrf.mxu2 }
 0x371   : > { %v2098_v62 = vld [vmem:[%s2926_s5 + $0x8] sm:$0xff]  ;;  %v2097_v63 = vld [vmem:[%s2926_s5] sm:$0xff] }
 0x372   : > { %1310 = vmatpush.bf16.msra.mxu3 %v2098_v62 }
 0x376   : > { %1311 = vmatpush.bf16.msra.mxu3 %v2097_v63 }
 0x379   : > { %2036 = vmatmul.msk.bf16.vlgmr.msra.gmra.mxu3 %vm885_vm0, %v1280_v1 }
 0x3bd   : > { %v1149_v34 = vpop.permute.xlu2 %1148 }
 0x3c7   : > { %v1145_v32 = vpop.permute.xlu1 %1144 }
 0x3c8   : > { %v1155_v33 = vsel %vm906_vm1, %v959_v22, %v1145_v32 }
 0x3c9   : > { %v1157_v36 = vsel %vm1156_vm3, %v1155_v33, %v1149_v34  ;;  %v2172_v33 = vld [vmem:[%s2932_s3] ss:$0 sm:$0xff]  ;;  %s2938_s3 = sshll.u32 %s2576_s29, 5 }
 0x3d7   : > { %v1153_v35 = vpop.permute.xlu1 %1152 }
 0x3d8   : > { %v1159_v37 = vsel %vm1158_vm4, %v1157_v36, %v1153_v35 }
 0x3d9   : > { %v1160_v38 = vpack.c.bf16 %v1159_v37, %v1159_v37 }
 0x3db   : > { %2018 = vmatmul.msk.bf16.vlgmr.msra.gmra.mxu0 %vm885_vm0, %v1160_v38 }
 0x3fc   : > { %v1313_v28 = vpop.f32.mrf.mxu3 }
 0x3fd   : > { %v1314_v29 = vadd.f32 %v2171_v27, %v1313_v28 }
 0x3ff   : > { %v2652_v30 = vpack.c.bf16 %v1314_v29, %v1314_v29 }
 0x401   : > { %1378 = vrot.lane.b32.xlu0 %v2652_v30, %s2930_s7  ;;  %v1323_v31 = vsel %vm906_vm1, %v2652_v30, 0 }
 0x402   : > { %1332 = vmatpush.bf16.xpose.msrb.mxu2 %v1323_v31 }
 0x404   : > { %v1315_v32 = vpop.f32.mrf.mxu3 }
 0x409   : > { %1438 = vrot.lane.b32.xlu0 %v2652_v30, %s2931_s27 }
 0x458   : > { %v1193_v40 = vpop.f32.mrf.mxu0 }
 0x459   : > { %v1194_v41 = vadd.f32 %v2170_v39, %v1193_v40 }
 0x45b   : > { %v1197_v42 = vadd.f32 %v1194_v41, %v2525_v2  ;;  %v2616_v2 = vsel %vm1212_vm5, %v2193_v46, %v1211_v54 }
 0x45d   : > { %v1198_v43 = vsel %vm885_vm0, %v1197_v42, 0.0 }
 0x45e   : > { %1199 = vadd.xlane.f32.xlu2 %v1198_v43 }
 0x460   : > { %v1195_v44 = vpop.f32.mrf.mxu0 }
 0x473   : > { %v1379_v38 = vpop.permute.xlu0 %1378 }
 0x474   : > { %v1384_v39 = vsel %vm906_vm1, %v1379_v38, 0 }
 0x475   : > { %1393 = vmatpush.bf16.xpose.msrb.mxu1 %v1384_v39 }
 0x47b   : > { %v1439_v40 = vpop.permute.xlu0 %1438 }
 0x47c   : > { %v1444_v41 = vsel %vm906_vm1, %v1439_v40, 0 }
 0x47d   : > { %1453 = vmatpush.bf16.xpose.msra.mxu2 %v1444_v41 }
 0x4d1   : > { %v1200_v49 = vpop.xlane.xlu2 %1199 }
 0x4d2   : > { %v1201_v50 = vrot.slane %v1200_v49, 4 }
 0x4d4   : > { %v1202_v52 = vadd.f32 %v1201_v50, %v1200_v49 }
 0x4d6   : > { %v1203_v53 = vrot.slane %v1202_v52, 2 }
 0x4d8   : > { %v1204_v55 = vadd.f32 %v1203_v53, %v1202_v52 }
 0x4da   : > { %v1205_v56 = vrot.slane %v1204_v55, 1 }
 0x4dc   : > { %v1206_v57 = vadd.f32 %v1205_v56, %v1204_v55 }
 0x4de   : > { %v1214_v58 = vmul.f32 %v2616_v2, %v1206_v57 }
 0x4e0   : > { %v1215_v59 = vsub.f32 %v1197_v42, %v1214_v58 }
 0x4e2   : > { %v1216_v60 = vmul.f32 %v1215_v59, %v1215_v59 }
 0x4e4   : > { %v1217_v61 = vsel %vm885_vm0, %v1216_v60, 0.0 }
 0x4e5   : > { %1218 = vadd.xlane.f32.xlu1 %v1217_v61 }
 0x558   : > { %v1219_v3 = vpop.xlane.xlu1 %1218 }
 0x559   : > { %v1220_v4 = vrot.slane %v1219_v3, 4 }
 0x55b   : > { %v1221_v6 = vadd.f32 %v1220_v4, %v1219_v3 }
 0x55d   : > { %v1222_v8 = vrot.slane %v1221_v6, 2 }
 0x55f   : > { %v1223_v9 = vadd.f32 %v1222_v8, %v1221_v6 }
 0x561   : > { %v1224_v10 = vrot.slane %v1223_v9, 1 }
 0x563   : > { %v1225_v11 = vadd.f32 %v1224_v10, %v1223_v9 }
 0x565   : > { %v1226_v12 = vmul.f32 %v1225_v11, %v2616_v2 }
 0x567   : > { %v1227_v13 = vadd.f32 1e-05, %v1226_v12 }
 0x569   : > { %2194 = vrsqrt.f32 %v1227_v13  ;;  %vm1234_vm7 = vweird.f32 %v1227_v13 }
 0x56f   : > { %v2195_v14 = vpop.eup %2194 }
 0x570   : > { %v1229_v15 = vmul.f32 %v2195_v14, %v1227_v13  ;;  %vm1235_vm6 = vweird.f32 %v2195_v14 }
 0x571   : > { %vm1236_vm8 = vmor %vm1234_vm7, %vm1235_vm6 }
 0x572   : > { %v1230_v16 = vmul.f32 %v2195_v14, %v1229_v15 }
 0x574   : > { %v1231_v17 = vmul.f32 0.5, %v1230_v16 }
 0x576   : > { %v1232_v18 = vsub.f32 1.5, %v1231_v17 }
 0x578   : > { %v1233_v19 = vmul.f32 %v2195_v14, %v1232_v18 }
 0x57a   : > { %v1237_v20 = vsel %vm1236_vm8, %v2195_v14, %v1233_v19 }
 0x57b   : > { %v1238_v22 = vmul.f32 %v1237_v20, %v1215_v59 }
 0x57d   : > { %v1240_v24 = vmul.f32 %v1239_v21, %v1238_v22 }
 0x57f   : > { %v2644_v25 = vadd.f32 %v1241_v23, %v1240_v24 }
 0x581   : > { %v1243_v26 = vpack.c.bf16 %v2644_v25, %v2644_v25 }
 0x583   : > { %2027 = vmatmul.msk.bf16.vlgmr.msra.gmra.mxu1 %vm885_vm0, %v1243_v26 }
 0x600   : > { %v1276_v34 = vpop.f32.mrf.mxu1 }
 0x601   : > { %v1277_v35 = vadd.f32 %v2172_v33, %v1276_v34 }
 0x603   : > { %v1317_v36 = vpack.c.bf16 %v1277_v35, %v1277_v35 }
 0x605   : > { %1496 = vrot.lane.b32.xlu2 %v1317_v36, %s2933_s28  ;;  %1376 = vrot.lane.b32.xlu0 %v1317_v36, %s2930_s7  ;;  %s854_s7 = scalar_lea.vmem %s2934_s4, %s2519_s30  ;;  %s2941_s4 = smov 16  }
 0x606   : > { %2037 = vmatmul.msk.bf16.vlgmr.msrb.gmra.mxu2 %vm906_vm1, %v1317_v36  ;;  %v863_v48 = vld [vmem:[%s854_s7] sm:$0xff]  ;;  %s2942_s7 = smov 24  }
 0x608   : > { %v1278_v37 = vpop.f32.mrf.mxu1 }
 0x60d   : > { %1498 = vrot.lane.b32.xlu0 %v2652_v30, %s2933_s28  ;;  %s2696_s28 = scalar_lea.vmem [#allocation4], %s2938_s3  ;;  %s1804_s3 = sshll.u32 %s2581_s6, 4  ;;  %s1805_s3 = int_to_ptr.vmem [resolvable:$true] %s1804_s3 }
 0x615   : > { %1436 = vrot.lane.b32.xlu0 %v1317_v36, %s2931_s27  ;;  %s2935_s27 = smov 96  }
 0x65f   : > { %v1497_v45 = vpop.permute.xlu2 %1496 }
 0x677   : > { %v1377_v42 = vpop.permute.xlu0 %1376 }
 0x678   : > { %2039 = vmatmul.msk.bf16.vlgmr.msrb.gmra.mxu1 %vm906_vm1, %v1377_v42 }
 0x67f   : > { %v1499_v43 = vpop.permute.xlu0 %1498 }
 0x680   : > { %v1504_v44 = vsel %vm906_vm1, %v1499_v43, 0 }
 0x681   : > { %1513 = vmatpush.bf16.xpose.msra.mxu1 %v1504_v44 }
 0x687   : > { %v1437_v46 = vpop.permute.xlu0 %1436 }
 0x688   : > { %2042 = vmatmul.msk.bf16.vlgmr.msra.gmra.mxu2 %vm906_vm1, %v1437_v46  ;;  %2045 = vmatmul.msk.bf16.vlgmr.msra.gmra.mxu1 %vm906_vm1, %v1497_v45 }
 0x689   : > { %v1334_v47 = vpop.f32.mrf.mxu2 }
 0x68a   : > { %v1338_v49 = vmul.f32 0.35355338, %v1334_v47 }
 0x68c   : > { %v1339_v50 = vadd.f32 %v1338_v49, %v863_v48 }
 0x68e   : > { %v1340_v51 = vsel %vm906_vm1, %v1339_v50, -inf }
 0x68f   : > { %1341 = vmax.xlane.f32.xlu0 %v1340_v51 }
 0x691   : > { %v1336_v52 = vpop.f32.mrf.mxu2 }
 0x6a3   : > { %1354 = vrot.lane.b32.xlu0 %v2652_v30, %s2935_s27 }
 0x6ab   : > { %1535 = vrot.lane.b32.xlu0 %v2652_v30, %s2936_s0 }
 0x6f5   : > { %v1395_v53 = vpop.f32.mrf.mxu1 }
 0x6f6   : > { %v1399_v54 = vmul.f32 0.35355338, %v1395_v53 }
 0x6f8   : > { %v1400_v55 = vadd.f32 %v1399_v54, %v863_v48 }
 0x6fa   : > { %v1401_v56 = vsel %vm906_vm1, %v1400_v55, -inf }
 0x6fb   : > { %1402 = vmax.xlane.f32.xlu1 %v1401_v56 }
 0x6fd   : > { %v1397_v57 = vpop.f32.mrf.mxu1 }
 0x702   : > { %v1342_v60 = vpop.xlane.xlu0 %1341 }
 0x703   : > { %v1343_v0 = vsub.f32 %v1339_v50, %v1342_v60 }
 0x705   : > { %v1515_v58 = vpop.f32.mrf.mxu1  ;;  %v1344_v4 = vmul.f32 1.442695, %v1343_v0 }
 0x706   : > { %v1519_v1 = vmul.f32 0.35355338, %v1515_v58  ;;  %v2100_v58 = vld [vmem:[%s2943_s12 + $0x8] sm:$0xff] }
 0x707   : > { %2196 = vpow2.f32 %v1344_v4  ;;  %1601 = vmatpush.bf16.msrb.mxu2 %v2100_v58  ;;  %v2173_v4 = vld [vmem:[%s2944_s13] ss:$0 sm:$0xff] }
 0x708   : > { %v1520_v6 = vadd.f32 %v1519_v1, %v863_v48 }
 0x70a   : > { %v1521_v9 = vsel %vm906_vm1, %v1520_v6, -inf }
 0x70b   : > { %v1455_v59 = vpop.f32.mrf.mxu2 }
 0x70c   : > { %v1459_v61 = vmul.f32 0.35355338, %v1455_v59  ;;  %v2099_v59 = vld [vmem:[%s2943_s12] sm:$0xff] }
 0x70d   : > { %v1517_v62 = vpop.f32.mrf.mxu1  ;;  %v2197_v10 = vpop.eup %2196  ;;  %1602 = vmatpush.bf16.msrb.mxu2 %v2099_v59 }
 0x70e   : > { %v1460_v63 = vadd.f32 %v1459_v61, %v863_v48  ;;  %v1346_v11 = vsel %vm906_vm1, %v2197_v10, 0.0 }
 0x710   : > { %v1461_v3 = vsel %vm906_vm1, %v1460_v63, -inf }
 0x711   : > { %1462 = vmax.xlane.f32.xlu1 %v1461_v3 }
 0x713   : > { %v1457_v5 = vpop.f32.mrf.mxu2 }
 0x715   : > { %v1355_v7 = vpop.permute.xlu0 %1354 }
 0x716   : > { %v1360_v8 = vsel %vm946_vm2, %v1355_v7, 0 }
 0x717   : > { %1369 = vmatpush.bf16.msrb.mxu0 %v1360_v8 }
 0x719   : > { %1522 = vmax.xlane.f32.xlu1 %v1521_v9 }
 0x71d   : > { %v1536_v33 = vpop.permute.xlu0 %1535 }
 0x71e   : > { %v1541_v36 = vsel %vm946_vm2, %v1536_v33, 0  ;;  %v2105_v33 = vld [vmem:[%s2853_s16 + $0x10] sm:$0xff] }
 0x721   : > { %1347 = vadd.xlane.f32.xlu1 %v1346_v11 }
 0x73a   : > { %1415 = vrot.lane.b32.xlu1 %v2652_v30, %s2937_s24  ;;  %s1820_s24 = scalar_lea.hbm %s2863_s26, %s2107_s1 }
 0x76e   : > { %v1403_v12 = vpop.xlane.xlu1 %1402 }
 0x76f   : > { %v1404_v13 = vsub.f32 %v1400_v55, %v1403_v12 }
 0x771   : > { %v1405_v14 = vmul.f32 1.442695, %v1404_v13 }
 0x773   : > { %2198 = vpow2.f32 %v1405_v14 }
 0x779   : > { %v2199_v15 = vpop.eup %2198 }
 0x77a   : > { %v1407_v16 = vsel %vm906_vm1, %v2199_v15, 0.0 }
 0x77b   : > { %1408 = vadd.xlane.f32.xlu2 %v1407_v16 }
 0x784   : > { %v1463_v17 = vpop.xlane.xlu1 %1462 }
 0x785   : > { %v1464_v18 = vsub.f32 %v1460_v63, %v1463_v17 }
 0x787   : > { %v1465_v19 = vmul.f32 1.442695, %v1464_v18 }
 0x789   : > { %2200 = vpow2.f32 %v1465_v19 }
 0x78c   : > { %v1523_v20 = vpop.xlane.xlu1 %1522 }
 0x78d   : > { %v1524_v21 = vsub.f32 %v1520_v6, %v1523_v20 }
 0x78f   : > { %v2201_v22 = vpop.eup %2200  ;;  %v1525_v23 = vmul.f32 1.442695, %v1524_v21 }
 0x790   : > { %v1467_v24 = vsel %vm906_vm1, %v2201_v22, 0.0 }
 0x791   : > { %2202 = vpow2.f32 %v1525_v23  ;;  %1468 = vadd.xlane.f32.xlu2 %v1467_v24  ;;  %v2102_v23 = vld [vmem:[%s2945_s14 + $0x8] sm:$0xff] }
 0x794   : > { %v1348_v26 = vpop.xlane.xlu1 %1347 }
 0x795   : > { %2204 = vrcp.f32 %v1348_v26  ;;  %v2101_v26 = vld [vmem:[%s2945_s14] sm:$0xff] }
 0x797   : > { %v2203_v27 = vpop.eup %2202 }
 0x798   : > { %v1527_v28 = vsel %vm906_vm1, %v2203_v27, 0.0 }
 0x799   : > { %1528 = vadd.xlane.f32.xlu1 %v1527_v28 }
 0x79b   : > { %v2205_v29 = vpop.eup %2204 }
 0x79c   : > { %v1350_v31 = vmul.f32 %v2205_v29, %v2197_v10 }
 0x79e   : > { %1351 = vst.msk [vmem:[%s2696_s28] sm:$0xff] %vm906_vm1, %v1350_v31  ;;  %v1352_v32 = vpack.c.bf16 %v1350_v31, %v1350_v31  ;;  %v2106_v31 = vld [vmem:[%s2853_s16 + $0x18] sm:$0xff] }
 0x79f   : > { %1730 = vmatpush.bf16.msrb.mxu1 %v2106_v31 }
 0x7a0   : > { %2038 = vmatmul.msk.bf16.vlgmr.msrb.gmra.mxu0 %vm906_vm1, %v1352_v32 }
 0x7a3   : > { %1731 = vmatpush.bf16.msrb.mxu1 %v2105_v33 }
 0x7a9   : > { %1475 = vrot.lane.b32.xlu2 %v2652_v30, %s2939_s10  ;;  %s2236_s10 = scalar_lea.hbm %s2862_s25, 64 }
 0x7ac   : > { %v1416_v34 = vpop.permute.xlu1 %1415 }
 0x7ad   : > { %v1421_v35 = vsel %vm946_vm2, %v1416_v34, 0 }
 0x7ae   : > { %1430 = vmatpush.bf16.msrb.mxu3 %v1421_v35 }
 0x7b2   : > { %1550 = vmatpush.bf16.msra.mxu3 %v1541_v36 }
 0x7ee   : > { %v1409_v37 = vpop.xlane.xlu2 %1408 }
 0x7ef   : > { %2206 = vrcp.f32 %v1409_v37 }
 0x7f5   : > { %v2207_v38 = vpop.eup %2206 }
 0x7f6   : > { %v1411_v39 = vmul.f32 %v2207_v38, %v2199_v15 }
 0x7f8   : > { %2040 = vst.msk [vmem:[%s2696_s28 + $0x8] sm:$0xff] %vm906_vm1, %v1411_v39  ;;  %v1414_v40 = vpack.c.bf16 %v1411_v39, %v1411_v39 }
 0x7fa   : > { %2041 = vmatmul.msk.bf16.vlgmr.msrb.gmra.mxu3 %vm906_vm1, %v1414_v40 }
 0x804   : > { %v1469_v30 = vpop.xlane.xlu2 %1468 }
 0x805   : > { %2208 = vrcp.f32 %v1469_v30 }
 0x80b   : > { %v2209_v41 = vpop.eup %2208 }
 0x80c   : > { %v1471_v42 = vmul.f32 %v2209_v41, %v2201_v22  ;;  %v1476_v43 = vpop.permute.xlu2 %1475  ;;  %v1529_v44 = vpop.xlane.xlu1 %1528  ;;  %v1643_v41 = vld [vmem:[%s2857_s20] sm:$0xff] }
 0x80d   : > { %v1481_v45 = vsel %vm946_vm2, %v1476_v43, 0  ;;  %2210 = vrcp.f32 %v1529_v44  ;;  %v1645_v43 = vld [vmem:[%s2858_s21] sm:$0xff] }
 0x80e   : > { %2043 = vst.msk [vmem:[%s2696_s28 + $0x10] sm:$0xff] %vm906_vm1, %v1471_v42  ;;  %v1474_v46 = vpack.c.bf16 %v1471_v42, %v1471_v42  ;;  %1490 = vmatpush.bf16.msra.mxu0 %v1481_v45 }
 0x811   : > { %2044 = vmatmul.msk.bf16.vlgmr.msra.gmra.mxu0 %vm906_vm1, %v1474_v46 }
 0x812   : > { %1677 = vmatpush.bf16.msrb.mxu0 %v2102_v23 }
 0x813   : > { %v2211_v47 = vpop.eup %2210 }
 0x814   : > { %v1531_v48 = vmul.f32 %v2211_v47, %v2203_v27  ;;  %v2104_v47 = vld [vmem:[%s2853_s16 + $0x8] sm:$0xff] }
 0x815   : > { %1732 = vmatpush.bf16.msrb.mxu1 %v2104_v47 }
 0x816   : > { %2046 = vst.msk [vmem:[%s2696_s28 + $0x18] sm:$0xff] %vm906_vm1, %v1531_v48  ;;  %v1534_v49 = vpack.c.bf16 %v1531_v48, %v1531_v48  ;;  %1678 = vmatpush.bf16.msrb.mxu0 %v2101_v26  ;;  %v2103_v48 = vld [vmem:[%s2853_s16] sm:$0xff] }
 0x818   : > { %2047 = vmatmul.msk.bf16.vlgmr.msra.gmra.mxu3 %vm906_vm1, %v1534_v49  ;;  %v2174_v49 = vld [vmem:[%s2946_s15] ss:$0 sm:$0xff] }
 0x819   : > { %1733 = vmatpush.bf16.msrb.mxu1 %v2103_v48 }
 0x81d   : > { %v1371_v50 = vpop.f32.mrf.mxu0 }
 0x825   : > { %v1373_v51 = vpop.f32.mrf.mxu0 }
 0x87d   : > { %v1432_v52 = vpop.f32.mrf.mxu3 }
 0x87e   : > { %1557 = vrot.lane.b32.xlu0 %v1432_v52, %s2940_s9 }
 0x885   : > { %v1434_v53 = vpop.f32.mrf.mxu3 }
 0x88e   : > { %v1492_v54 = vpop.f32.mrf.mxu0 }
 0x88f   : > { %1561 = vrot.lane.b32.xlu0 %v1492_v54, %s2941_s4 }
 0x896   : > { %v1494_v55 = vpop.f32.mrf.mxu0 }
 0x897   : > { %v2175_v55 = vld [vmem:[%s2854_s17] ss:$0 sm:$0xff] }
 0x89b   : > { %v1552_v56 = vpop.f32.mrf.mxu3 }
 0x89c   : > { %1565 = vrot.lane.b32.xlu0 %v1552_v56, %s2942_s7  ;;  %s1803_s7 = scalar_lea.hbm %s2862_s25, %s2107_s1 }
 0x89d   : > { %s1806_s5 = sshll.u32 %s1803_s7, 4  ;;  %s1807_s5 = int_to_ptr.hbm [resolvable:$true] %s1806_s5 }
 0x89e   : > { %s2230_s12 = sshra.s32 %s1807_s5, 4  ;;  %s2231_s12 = int_to_ptr.hbm [resolvable:$true] %s2230_s12 }
 0x89f   : > { %s2232_s13 = scalar_lea.hbm %s2231_s12, 32  ;;  %p2237_p0 = scmp.lt.s32.totalorder %s2231_s12, %s2862_s25 }
 0x8a0   : > { %p2233_p11 = scmp.ne.s32.totalorder %s2231_s12, %s2232_s13  ;;  %p2238_p1 = scmp.lt.s32.totalorder %s2236_s10, %s2232_s13 }
 0x8a2   : > { %p2234_p12 = pnand %p2233_p11, %p2501_p5  ;;  %p2239_p2 = por %p2238_p1, %p2237_p0 }
 0x8a3   : > { %v1554_v57 = vpop.f32.mrf.mxu3 }
 0x8a4   : > { %p2235_p13 = pneg %p2234_p12 }
 0x8a6   : > { %p2240_p3 = pnand %p2239_p2, %p2235_p13 }
 0x8f0   : > { %v1558_v60 = vpop.permute.xlu0 %1557 }
 0x8f1   : > { %v1568_v62 = vsel %vm906_vm1, %v1371_v50, %v1558_v60 }
 0x901   : > { %v1562_v61 = vpop.permute.xlu0 %1561 }
 0x902   : > { %v1569_v63 = vsel %vm1156_vm3, %v1568_v62, %v1562_v61 }
 0x90e   : > { %v1566_v0 = vpop.permute.xlu0 %1565 }
 0x90f   : > { %v1570_v1 = vsel %vm1158_vm4, %v1569_v63, %v1566_v0 }
 0x910   : > { %v1571_v3 = vpack.c.bf16 %v1570_v1, %v1570_v1 }
 0x912   : > { %2056 = vmatmul.msk.bf16.vlgmr.msrb.gmra.mxu2 %vm885_vm0, %v1571_v3 }
 0x995   : > { %v1604_v5 = vpop.f32.mrf.mxu2 }
 0x996   : > { %v1605_v6 = vadd.f32 %v2173_v4, %v1604_v5 }
 0x998   : > { %v1608_v7 = vadd.f32 %v1605_v6, %v2644_v25 }
 0x99a   : > { %v1609_v8 = vsel %vm885_vm0, %v1608_v7, 0.0 }
 0x99b   : > { %1610 = vadd.xlane.f32.xlu2 %v1609_v8 }
 0x99d   : > { %v1606_v9 = vpop.f32.mrf.mxu2 }
 0xa0e   : > { %v1611_v10 = vpop.xlane.xlu2 %1610 }
 0xa0f   : > { %v1612_v11 = vrot.slane %v1611_v10, 4 }
 0xa11   : > { %v1613_v12 = vadd.f32 %v1612_v11, %v1611_v10 }
 0xa13   : > { %v1614_v13 = vrot.slane %v1613_v12, 2 }
 0xa15   : > { %v1615_v14 = vadd.f32 %v1614_v13, %v1613_v12 }
 0xa17   : > { %v1616_v15 = vrot.slane %v1615_v14, 1 }
 0xa19   : > { %v1617_v16 = vadd.f32 %v1616_v15, %v1615_v14 }
 0xa1b   : > { %v1618_v17 = vmul.f32 %v1617_v16, %v2616_v2 }
 0xa1d   : > { %v1619_v18 = vsub.f32 %v1608_v7, %v1618_v17 }
 0xa1f   : > { %v1620_v19 = vmul.f32 %v1619_v18, %v1619_v18 }
 0xa21   : > { %v1621_v20 = vsel %vm885_vm0, %v1620_v19, 0.0 }
 0xa22   : > { %1622 = vadd.xlane.f32.xlu0 %v1621_v20 }
 0xa95   : > { %v1623_v21 = vpop.xlane.xlu0 %1622 }
 0xa96   : > { %v1624_v25 = vrot.slane %v1623_v21, 4 }
 0xa98   : > { %v1625_v22 = vadd.f32 %v1624_v25, %v1623_v21 }
 0xa9a   : > { %v1626_v24 = vrot.slane %v1625_v22, 2 }
 0xa9c   : > { %v1627_v27 = vadd.f32 %v1626_v24, %v1625_v22 }
 0xa9e   : > { %v1628_v28 = vrot.slane %v1627_v27, 1 }
 0xaa0   : > { %v1629_v29 = vadd.f32 %v1628_v28, %v1627_v27 }
 0xaa2   : > { %v1630_v32 = vmul.f32 %v1629_v29, %v2616_v2 }
 0xaa4   : > { %v1631_v34 = vadd.f32 1e-05, %v1630_v32 }
 0xaa6   : > { %2212 = vrsqrt.f32 %v1631_v34  ;;  %vm1638_vm10 = vweird.f32 %v1631_v34 }
 0xaac   : > { %v2213_v35 = vpop.eup %2212 }
 0xaad   : > { %v1633_v36 = vmul.f32 %v2213_v35, %v1631_v34  ;;  %vm1639_vm9 = vweird.f32 %v2213_v35 }
 0xaae   : > { %vm1640_vm11 = vmor %vm1638_vm10, %vm1639_vm9 }
 0xaaf   : > { %v1634_v37 = vmul.f32 %v2213_v35, %v1633_v36 }
 0xab1   : > { %v1635_v38 = vmul.f32 0.5, %v1634_v37 }
 0xab3   : > { %v1636_v39 = vsub.f32 1.5, %v1635_v38 }
 0xab5   : > { %v1637_v40 = vmul.f32 %v2213_v35, %v1636_v39 }
 0xab7   : > { %v1641_v30 = vsel %vm1640_vm11, %v2213_v35, %v1637_v40 }
 0xab8   : > { %v1642_v42 = vmul.f32 %v1641_v30, %v1619_v18 }
 0xaba   : > { %v1644_v44 = vmul.f32 %v1643_v41, %v1642_v42 }
 0xabc   : > { %v1646_v45 = vadd.f32 %v1645_v43, %v1644_v44 }
 0xabe   : > { %v1647_v46 = vpack.c.bf16 %v1646_v45, %v1646_v45 }
 0xac0   : > { %2065 = vmatmul.msk.bf16.vlgmr.msrb.gmra.mxu0 %vm885_vm0, %v1647_v46 }
 0xb3d   : > { %v1680_v50 = vpop.f32.mrf.mxu0 }
 0xb3e   : > { %v1681_v51 = vadd.f32 %v2174_v49, %v1680_v50 }
 0xb40   : > { %v1684_v52 = vmax.f32 %v1681_v51, 0.0 }
 0xb42   : > { %v1685_v53 = vpack.c.bf16 %v1684_v52, %v1684_v52 }
 0xb44   : > { %2082 = vmatmul.msk.bf16.vlgmr.msrb.gmra.mxu1 %vm1722_vm12, %v1685_v53 }
 0xb45   : > { %v1682_v54 = vpop.f32.mrf.mxu0 }
 0xbc1   : > { %v1735_v56 = vpop.f32.mrf.mxu1 }
 0xbc2   : > { %v1736_v57 = vadd.f32 %v2175_v55, %v1735_v56 }
 0xbc4   : > { %v1739_v58 = vadd.f32 %v1736_v57, %v1646_v45 }
 0xbc6   : > { %v1740_v59 = vsel %vm885_vm0, %v1739_v58, 0.0 }
 0xbc7   : > { %1741 = vadd.xlane.f32.xlu1 %v1740_v59 }
 0xbc9   : > { %v1737_v60 = vpop.f32.mrf.mxu1 }
 0xc3a   : > { %v1742_v61 = vpop.xlane.xlu1 %1741 }
 0xc3b   : > { %v1743_v62 = vrot.slane %v1742_v61, 4 }
 0xc3d   : > { %v1744_v63 = vadd.f32 %v1743_v62, %v1742_v61 }
 0xc3f   : > { %v1745_v0 = vrot.slane %v1744_v63, 2 }
 0xc41   : > { %v1746_v1 = vadd.f32 %v1745_v0, %v1744_v63 }
 0xc43   : > { %v1747_v3 = vrot.slane %v1746_v1, 1 }
 0xc45   : > { %v1748_v4 = vadd.f32 %v1747_v3, %v1746_v1 }
 0xc47   : > { %v1749_v5 = vmul.f32 %v1748_v4, %v2616_v2 }
 0xc49   : > { %v2769_v6 = vsub.f32 %v1739_v58, %v1749_v5 }
 0xc4b   : > { %v1751_v7 = vmul.f32 %v2769_v6, %v2769_v6 }
 0xc4d   : > { %v1752_v8 = vsel %vm885_vm0, %v1751_v7, 0.0 }
 0xc4e   : > { %1753 = vadd.xlane.f32.xlu1 %v1752_v8 }
 0xc4f   : > { %2243 = shalt.err (!%p2240_p3)
}
 0xc50   : > { %s2327_s6 = smov 128   ;;  %s1821_s1 = sshll.u32 %s2696_s28, 4  ;;  %s1822_s1 = int_to_ptr.vmem [resolvable:$true] %s1821_s1 }
 0xc51   : > { %2109 = dma.vmem_to_hbm [thread:$0]  (%p2501_p5), %s1805_s3, 512, %s1807_s5, %s1784_s11, %s2327_s6, %s2327_s6, %s2940_s9  }
 0xc52   : > { %s1823_s14 = sshll.u32 %s1820_s24, 4  ;;  %s1789_s7 = scalar_lea.sflag [#allocation5], %s2576_s29  ;;  %s1824_s14 = int_to_ptr.hbm [resolvable:$true] %s1823_s14 }
 0xc53   : > { %s2258_s27 = sshra.s32 %s1824_s14, 4  ;;  %s2264_s0 = scalar_lea.hbm %s2863_s26, 64  ;;  %s2259_s27 = int_to_ptr.hbm [resolvable:$true] %s2258_s27 }
 0xc54   : > { %s2260_s12 = scalar_lea.hbm %s2259_s27, 32  ;;  %p2265_p9 = scmp.lt.s32.totalorder %s2259_s27, %s2863_s26 }
 0xc55   : > { %p2261_p4 = scmp.ne.s32.totalorder %s2259_s27, %s2260_s12  ;;  %p2266_p10 = scmp.lt.s32.totalorder %s2264_s0, %s2260_s12 }
 0xc57   : > { %p2262_p7 = pnand %p2261_p4, %p2501_p5  ;;  %p2267_p11 = por %p2266_p10, %p2265_p9 }
 0xc59   : > { %p2263_p8 = pneg %p2262_p7 }
 0xc5b   : > { %p2268_p12 = pnand %p2267_p11, %p2263_p8 }
 0xc5d   : > { %2271 = shalt.err (!%p2268_p12)
}
 0xc5e   : > { %2110 = dma.vmem_to_hbm [thread:$0]  (%p2501_p5), %s1822_s1, 512, %s1824_s14, %s1789_s7, %s2327_s6, %s2327_s6, %s2940_s9  }
 0xc5f   : > { %v1774_v23 = vld [vmem:[%s2859_s22] sm:$0xff]  ;;  %s2947_s24 = sld [smem:[#allocation31_spill]] }
 0xc65   : > { %s858_s3 = scalar_lea.vmem %s2947_s24, %s2519_s30 }
 0xcc1   : > { %v1754_v9 = vpop.xlane.xlu1 %1753 }
 0xcc2   : > { %v1755_v10 = vrot.slane %v1754_v9, 4 }
 0xcc4   : > { %v1756_v11 = vadd.f32 %v1755_v10, %v1754_v9 }
 0xcc6   : > { %v1757_v12 = vrot.slane %v1756_v11, 2 }
 0xcc8   : > { %v1758_v13 = vadd.f32 %v1757_v12, %v1756_v11 }
 0xcca   : > { %v1759_v14 = vrot.slane %v1758_v13, 1 }
 0xccc   : > { %v1760_v15 = vadd.f32 %v1759_v14, %v1758_v13 }
 0xcce   : > { %v1761_v16 = vmul.f32 %v1760_v15, %v2616_v2  ;;  %v1776_v2 = vld [vmem:[%s2860_s23] sm:$0xff] }
 0xcd0   : > { %v1762_v17 = vadd.f32 1e-05, %v1761_v16 }
 0xcd2   : > { %2214 = vrsqrt.f32 %v1762_v17  ;;  %vm1769_vm14 = vweird.f32 %v1762_v17 }
 0xcd8   : > { %v2215_v18 = vpop.eup %2214 }
 0xcd9   : > { %v1764_v19 = vmul.f32 %v2215_v18, %v1762_v17  ;;  %vm1770_vm13 = vweird.f32 %v2215_v18 }
 0xcda   : > { %vm1771_vm15 = vmor %vm1769_vm14, %vm1770_vm13 }
 0xcdb   : > { %v1765_v20 = vmul.f32 %v2215_v18, %v1764_v19 }
 0xcdd   : > { %v1766_v21 = vmul.f32 0.5, %v1765_v20 }
 0xcdf   : > { %v1767_v25 = vsub.f32 1.5, %v1766_v21 }
 0xce1   : > { %v1768_v22 = vmul.f32 %v2215_v18, %v1767_v25 }
 0xce3   : > { %v1772_v24 = vsel %vm1771_vm15, %v2215_v18, %v1768_v22 }
 0xce4   : > { %v1773_v26 = vmul.f32 %v1772_v24, %v2769_v6 }
 0xce6   : > { %v1775_v27 = vmul.f32 %v1774_v23, %v1773_v26 }
 0xce8   : > { %v1777_v28 = vadd.f32 %v1776_v2, %v1775_v27 }
 0xcea   : > { %1778 = vst.msk [vmem:[%s858_s3] sm:$0xff] %vm885_vm0, %v1777_v28 }
 0xceb PF: > { %s2948_s4 = sld [smem:[#allocation11_spill]] }
 0xcec   : > { %s2949_s6 = sld [smem:[#allocation8_spill]] }
 0xcf1   : > { %p2120_p5 = scmp.ge.s32.totalorder %s2948_s4, 2 }
 0xcf2   : > { %s1845_s14 = sand.u32 1, %s2949_s6  }
 0xcf3   : > { %p2114_p13 = pnand %p2120_p5, %p2505_p6  ;;  %s1846_s7 = scalar_lea.sflag [#allocation3], %s1845_s14 }
 0xcf5   : > { %p2115_p0 = pneg %p2114_p13 }
 0xcf7   : > { %2289 = dma.done.wait (%p2115_p0), %s1846_s7, 512  }
 0xcf8   : > { %2291 = vsyncadd (%p2115_p0), %s1846_s7, 4294966784  ;;  %s1856_s27 = scalar_lea.sflag [#allocation5], %s1845_s14 }
 0xcf9   : > { %2293 = dma.done.wait (%p2115_p0), %s1856_s27, 512  }
 0xcfa   : > { %2295 = vsyncadd (%p2115_p0), %s1856_s27, 4294966784  ;;  %s2951_s28 = sld [smem:[#allocation12_spill]] }
 0xcfb   : > { %s2952_s27 = sld [smem:[#allocation9_spill]] }
 0xcfc   : > { %s2953_s3 = sld [smem:[#allocation10_spill]] }
 0xcfd   : > { %s2954_s7 = sld [smem:[#allocation13_spill]] }
 0xd00   : > { %p40_p1 = scmp.ge.s32.totalorder %s2951_s28, 4  }
 0xd02   :  { %42 = sbr.rel (!%p40_p1) target bundleno = 23 (0x17), region = 195 }
 0xd07   :  { %1862 = vsyncpa [#allocation3], 1 }
 0xd08   :  { %1864 = vsyncpa [#allocation3 + $0x1], 1 }
 0xd09   :  { %1865 = vsyncpa [#allocation5], 1 }
 0xd0a   :  { %1867 = vsyncpa [#allocation5 + $0x1], 1 }

// kernel: decoder_forward.3
= control target key start
LH: loop header
LB: loop body
LE: loop exit
PB: predicated region body
PF: predicated region fallthrough
CT: control target
= control target key end

     0   :  { %s3226_s0 = inlined_call_operand.vmem [shape: f32[2,8,32], index: 0, kind: input, shape index: {}]   ;;  %s3227_s1 = inlined_call_operand.vmem [shape: f32[2,8,32], index: 1, kind: input, shape index: {}]   ;;  %s3228_s2 = inlined_call_operand.vmem [shape: f32[2,8,8], index: 2, kind: input, shape index: {}]   ;;  %s3229_s3 = inlined_call_operand.vmem [shape: f32[2,8,8], index: 3, kind: input, shape index: {}]   ;;  %s3230_s4 = inlined_call_operand.vmem [shape: bf16[32,96], index: 4, kind: input, shape index: {}]   ;;  %s3231_s5 = inlined_call_operand.vmem [shape: f32[1,96], index: 5, kind: input, shape index: {}]   ;;  %s3232_s6 = inlined_call_operand.vmem [shape: bf16[32,32], index: 6, kind: input, shape index: {}]   ;;  %s3233_s7 = inlined_call_operand.vmem [shape: f32[1,32], index: 7, kind: input, shape index: {}]   ;;  %s3234_s8 = inlined_call_operand.vmem [shape: bf16[32,32], index: 8, kind: input, shape index: {}]   ;;  %s3235_s9 = inlined_call_operand.vmem [shape: f32[1,32], index: 9, kind: input, shape index: {}]   ;;  %s3236_s10 = inlined_call_operand.vmem [shape: bf16[32,64], index: 10, kind: input, shape index: {}]   ;;  %s3237_s11 = inlined_call_operand.hbm [shape: f32[1,64], index: 11, kind: input, shape index: {}]   ;;  %s3238_s12 = inlined_call_operand.vmem [shape: bf16[32,32], index: 12, kind: input, shape index: {}]   ;;  %s3239_s13 = inlined_call_operand.hbm [shape: f32[1,32], index: 13, kind: input, shape index: {}]   ;;  %s3240_s14 = inlined_call_operand.vmem [shape: bf16[32,64], index: 14, kind: input, shape index: {}]   ;;  %s3241_s15 = inlined_call_operand.hbm [shape: f32[1,64], index: 15, kind: input, shape index: {}]   ;;  %s3242_s16 = inlined_call_operand.vmem [shape: bf16[64,32], index: 16, kind: input, shape index: {}]   ;;  %s3243_s17 = inlined_call_operand.hbm [shape: f32[1,32], index: 17, kind: input, shape index: {}]   ;;  %s3244_s18 = inlined_call_operand.vmem [shape: f32[8,32], index: 18, kind: input, shape index: {}]   ;;  %s3245_s19 = inlined_call_operand.vmem [shape: f32[8,32], index: 19, kind: input, shape index: {}]   ;;  %s3246_s20 = inlined_call_operand.vmem [shape: f32[8,32], index: 20, kind: input, shape index: {}]   ;;  %s3247_s21 = inlined_call_operand.vmem [shape: f32[8,32], index: 21, kind: input, shape index: {}]   ;;  %s3248_s22 = inlined_call_operand.vmem [shape: f32[8,32], index: 22, kind: input, shape index: {}]   ;;  %s3249_s23 = inlined_call_operand.vmem [shape: f32[8,32], index: 23, kind: input, shape index: {}]   ;;  %s3250_s24 = inlined_call_operand.hbm [shape: f32[2,8,32], index: 24, kind: output, shape index: {0}]   ;;  %s3251_s25 = inlined_call_operand.hbm [shape: f32[2,4,8,8], index: 25, kind: output, shape index: {1}]   ;;  %s3252_s26 = inlined_call_operand.hbm [shape: f32[2,4,8,8], index: 26, kind: output, shape index: {2}]  }
   0x1   :  { %3283 = sst [smem:[#allocation25_spill]] %s3226_s0 }
   0x2   :  { %3284 = sst [smem:[#allocation26_spill]] %s3227_s1 }
   0x3   :  { %3285 = sst [smem:[#allocation27_spill]] %s3228_s2 }
   0x4   :  { %3286 = sst [smem:[#allocation28_spill]] %s3229_s3 }
   0x5   :  { %3287 = sst [smem:[#allocation29_spill]] %s3230_s4 }
   0x6   :  { %3288 = sst [smem:[#allocation30_spill]] %s3231_s5 }
   0x7   :  { %3289 = sst [smem:[#allocation31_spill]] %s3232_s6 }
   0x8   :  { %3290 = sst [smem:[#allocation32_spill]] %s3233_s7 }
   0x9   :  { %3291 = sst [smem:[#allocation33_spill]] %s3234_s8 }
   0xa   :  { %3292 = sst [smem:[#allocation34_spill]] %s3235_s9 }
   0xb   :  { %3293 = sst [smem:[#allocation35_spill]] %s3236_s10 }
   0xc   :  { %3294 = sst [smem:[#allocation36_spill]] %s3237_s11 }
   0xd   :  { %3295 = sst [smem:[#allocation37_spill]] %s3238_s12 }
   0xe   :  { %3296 = sst [smem:[#allocation38_spill]] %s3239_s13 }
   0xf   :  { %3297 = sst [smem:[#allocation39_spill]] %s3240_s14 }
  0x10   :  { %3298 = sst [smem:[#allocation40_spill]] %s3241_s15 }
  0x11   :  { %3299 = sst [smem:[#allocation41_spill]] %s3242_s16 }
  0x12   :  { %3300 = sst [smem:[#allocation42_spill]] %s3249_s23 }
  0x13   :  { %32 = vsyncpa [#allocation3], 0 }
  0x14   :  { %33 = vsyncpa [#allocation6], 0 }
  0x15   :  { %34 = vsyncpa [#allocation9], 0 }
  0x16   :  { %35 = vsyncpa [#allocation4], 0 }
  0x17   :  { %37 = vsyncpa [#allocation4 + $0x1], 0 }
  0x18   :  { %38 = vsyncpa [#allocation12], 0 }
  0x19   :  { %40 = vsyncpa [#allocation12 + $0x1], 0  ;;  %s2798_s27 = smov 0   ;;  %s2800_s3 = smov 0  }
  0x1a   :  { %s2802_s7 = smov 0   ;;  %s2804_s28 = smov 0  }
  0x1b LB: > { %3301 = sst [smem:[#allocation19_spill]] %s2629_s27  ;;  %s2819_s8 = sadd.s32 4294967295, %s2641_s28   ;;  %s2641_s28 = sphi %s2804_s28, %s3344_s28   ;;  %s2637_s7 = sphi %s2802_s7, %s3346_s7   ;;  %s2633_s3 = sphi %s2800_s3, %s3348_s3   ;;  %s2629_s27 = sphi %s2798_s27, %s3347_s27  }
  0x1c   : > { %3302 = sst [smem:[#allocation20_spill]] %s2637_s7  ;;  %s3257_s4 = sadd.s32 4294967294, %s2641_s28  }
  0x1d   : > { %3303 = sst [smem:[#allocation21_spill]] %s2641_s28  ;;  %s2823_s29 = sadd.s32 1, %s2641_s28  }
  0x1e   : > { %3304 = sst [smem:[#allocation22_spill]] %s2823_s29  ;;  %s577_s0 = sadd.s32 1, %s2637_s7 }
  0x1f   : > { %s574_s9 = ssub.s32 %s2641_s28, %s2823_s29  ;;  %p587_p0 = scmp.ne.s32.totalorder %s2637_s7, %s2633_s3 }
  0x20   : > { %p575_p1 = scmp.eq.s32.totalorder %s574_s9, 0  ;;  %p588_p2 = scmp.eq.s32.totalorder %s2819_s8, 1 }
  0x21   : > { %p593_p3 = scmp.ne.s32.totalorder %s2633_s3, %s2629_s27  ;;  %p594_p4 = scmp.eq.s32.totalorder %s3257_s4, 1 }
  0x22   : > { %s2836_s30 = scalar_select %p575_p1, %s2637_s7, %s577_s0  }
  0x23   : > { %p2838_p5 = por %p588_p2, %p587_p0  ;;  %p2842_p6 = por %p594_p4, %p593_p3 }
  0x24   : > { %3305 = sst [smem:[#allocation23_spill]] %s2836_s30  ;;  %p2095_p7 = scmp.ge.s32.totalorder %s2641_s28, 1 }
  0x25   : > { %s3307_s5 = scalar_select %p2842_p6, 1, 0 }
  0x26   : > { %p653_p8 = scmp.lt.s32.totalorder %s2641_s28, 3  ;;  %p2279_p9 = scmp.eq.s32.totalorder %s2819_s8, 0 }
  0x27   : > { %3308 = sst [smem:[#allocation24_spill]] %s3307_s5  ;;  %s2643_s9 = smov [#allocation5]  }
  0x28   : > { %p2849_p10 = pnand %p2095_p7, %p653_p8  ;;  %s3310_s13 = sld [smem:[#allocation38_spill]] }
  0x29   : > { %s703_s4 = sshll.u32 %s2643_s9, 4  ;;  %s3311_s11 = sld [smem:[#allocation36_spill]]  ;;  %s704_s4 = int_to_ptr.vmem [resolvable:$true] %s703_s4 }
  0x2a   : > { %p2256_p11 = pneg %p2849_p10  ;;  %s3313_s15 = sld [smem:[#allocation40_spill]] }
  0x2b   : > { %s2644_s9 = smov [#allocation2]   ;;  %s2645_s28 = smov [#allocation7]  }
  0x2c   : > { %p2863_p12 = pnand %p2279_p9, %p2256_p11  ;;  %s688_s27 = sshll.u32 %s2644_s9, 4  ;;  %s689_s27 = int_to_ptr.vmem [resolvable:$true] %s688_s27 }
  0x2d   : > { %s718_s23 = sshll.u32 %s2645_s28, 4  ;;  %s2646_s6 = smov [#allocation8]   ;;  %s719_s23 = int_to_ptr.vmem [resolvable:$true] %s718_s23 }
  0x2e   : > { %s701_s0 = sshll.u32 %s3310_s13, 4  ;;  %s733_s1 = sshll.u32 %s2646_s6, 4  ;;  %s702_s0 = int_to_ptr.hbm [resolvable:$true] %s701_s0  ;;  %s734_s1 = int_to_ptr.vmem [resolvable:$true] %s733_s1 }
  0x2f   : > { %s686_s29 = sshll.u32 %s3311_s11, 4  ;;  %s731_s11 = sshll.u32 %s3243_s17, 4  ;;  %s687_s29 = int_to_ptr.hbm [resolvable:$true] %s686_s29  ;;  %s732_s11 = int_to_ptr.hbm [resolvable:$true] %s731_s11 }
  0x30   : > { %s716_s13 = sshll.u32 %s3313_s15, 4  ;;  %792 = sbr.rel (%p2849_p10) target bundleno = 3331 (0xd03), region = 116  ;;  %s717_s13 = int_to_ptr.hbm [resolvable:$true] %s716_s13 }
  0x31   : > { %2262 = dma.hbm_to_vmem [thread:$0]  (!%p2863_p12), %s702_s0, 16, %s704_s4, [#allocation6]  }
  0x32   : > { %2259 = dma.hbm_to_vmem [thread:$0]  (!%p2863_p12), %s687_s29, 16, %s689_s27, [#allocation3]  }
  0x33   : > { %2265 = dma.hbm_to_vmem [thread:$0]  (!%p2863_p12), %s717_s13, 16, %s719_s23, [#allocation6]  }
  0x34   : > { %2268 = dma.hbm_to_vmem [thread:$0]  (!%p2863_p12), %s732_s11, 16, %s734_s1, [#allocation9]  }
  0x35   : > { %2608 = dma.done.wait (%p2279_p9), [#allocation3], 16  }
  0x36   : > { %2610 = vsyncadd (%p2279_p9), [#allocation3], 4294967280 }
  0x37   : > { %2612 = dma.done.wait (%p2279_p9), [#allocation6], 32  }
  0x38   : > { %2614 = vsyncadd (%p2279_p9), [#allocation6], 4294967264 }
  0x39   : > { %2616 = dma.done.wait (%p2279_p9), [#allocation9], 16  }
  0x3a   : > { %2618 = vsyncadd (%p2279_p9), [#allocation9], 4294967280  ;;  %p899_p13 = scmp.lt.s32.totalorder %s2819_s8, 1  ;;  %s3314_s28 = sld [smem:[#allocation25_spill]]  ;;  %vm941_vm0 = vcmask 261120   ;;  %vm962_vm1 = vcmask 64512  }
  0x3b   : > { %s3315_s10 = sld [smem:[#allocation29_spill]]  ;;  %s3274_s1 = smov 104   ;;  %vm1002_vm2 = vcmask 1043456   ;;  %vm1212_vm3 = vcmask 130048   ;;  %vm1214_vm4 = vcmask 195584   ;;  %vm1778_vm12 = vcmask 523264  }
  0x3c   : > { %s900_s11 = scalar_select %p899_p13, %s2819_s8, 1 }
  0x3d   : > { %s3316_s6 = sld [smem:[#allocation30_spill]]  ;;  %s3269_s23 = smov 96  }
  0x3e   : > { %s2897_s13 = sshll.u32 %s900_s11, 3  ;;  %s3278_s11 = smov 120  }
  0x3f   : > { %s3265_s27 = smov 80   ;;  %s3276_s29 = smov 112  }
  0x40   : > { %s902_s4 = scalar_lea.vmem %s3314_s28, %s2897_s13  ;;  %s3268_s28 = smov 72  }
  0x41   : > { %v2217_v0 = vld [vmem:[%s3315_s10 + $0x8] sm:$0xff]  ;;  %v2216_v1 = vld [vmem:[%s3315_s10] sm:$0xff]  ;;  %s3317_s9 = sld [smem:[#allocation27_spill]]  ;;  %s2654_s30 = smov 64  }
  0x42   : > { %v2909_v2 = vld [vmem:[%s902_s4] sm:$0xff]  ;;  %951 = vmatpush.bf16.msra.mxu0 %v2217_v0  ;;  %s3267_s4 = smov 88   ;;  %s2656_s5 = smov 56  }
  0x43   : > { %v920_v3 = vpack.c.bf16 %v2909_v2, %v2909_v2  ;;  %v2340_v4 = vld [vmem:[%s3316_s6] ss:$0 sm:$0xff]  ;;  %s2655_s6 = smov 40   ;;  %s2657_s0 = smov 48  }
  0x44   : > { %s3336_s12 = sld [smem:[#allocation37_spill]] }
  0x45   : > { %s3337_s14 = sld [smem:[#allocation39_spill]] }
  0x46   : > { %952 = vmatpush.bf16.msra.mxu0 %v2216_v1  ;;  %s3338_s16 = sld [smem:[#allocation41_spill]] }
  0x47   : > { %s910_s7 = scalar_lea.vmem %s3317_s9, %s2897_s13  ;;  %s2960_s9 = sand.u32 1, %s2633_s3  }
  0x48   : > { %v918_v21 = vld [vmem:[%s910_s7] sm:$0xff]  ;;  %s3266_s7 = sshll.u32 %s2960_s9, 5 }
  0x49   : > { %2121 = vmatmul.msk.bf16.vlgmr.msra.gmra.mxu0 %vm941_vm0, %v920_v3 }
  0xc6   : > { %v954_v5 = vpop.f32.mrf.mxu0 }
  0xc7   : > { %v955_v6 = vadd.f32 %v2340_v4, %v954_v5 }
  0xc9   : > { %v2917_v7 = vpack.c.bf16 %v955_v6, %v955_v6 }
  0xcb   : > { %1139 = vrot.lane.b32.xlu2 %v2917_v7, %s3274_s1  ;;  %1019 = vrot.lane.b32.xlu1 %v2917_v7, %s3278_s11  ;;  %s3326_s1 = smov 104   ;;  %s3333_s11 = smov 8  }
  0xcc   : > { %960 = vrot.lane.b32.xlu0 %v2917_v7, %s3269_s23  ;;  %s3322_s23 = sld [smem:[#allocation33_spill]] }
  0xce   : > { %v956_v8 = vpop.f32.mrf.mxu0 }
  0xd3   : > { %1081 = vrot.lane.b32.xlu2 %v2917_v7, %s3265_s27  ;;  %1141 = vrot.lane.b32.xlu1 %v2917_v7, %s3268_s28  ;;  %s3325_s27 = sld [smem:[#allocation34_spill]]  ;;  %s3331_s28 = sshll.u32 %s2960_s9, 5 }
  0xd4   : > { %1021 = vrot.lane.b32.xlu0 %v2917_v7, %s3267_s4  ;;  %s3318_s4 = sld [smem:[#allocation31_spill]] }
  0xdc   : > { %1079 = vrot.lane.b32.xlu0 %v2917_v7, %s3276_s29  ;;  %s3327_s29 = sld [smem:[#allocation28_spill]] }
 0x125   : > { %v1140_v9 = vpop.permute.xlu2 %1139 }
 0x12d   : > { %v1082_v10 = vpop.permute.xlu2 %1081 }
 0x12e   : > { %v1087_v11 = vsel %vm962_vm1, %v1082_v10, 0 }
 0x12f   : > { %1096 = vmatpush.bf16.xpose.msrb.mxu0 %v1087_v11 }
 0x13d   : > { %v1020_v12 = vpop.permute.xlu1 %1019 }
 0x13e   : > { %v961_v13 = vpop.permute.xlu0 %960 }
 0x13f   : > { %v967_v14 = vsel %vm962_vm1, %v961_v13, 0 }
 0x140   : > { %976 = vmatpush.bf16.xpose.msra.mxu1 %v967_v14 }
 0x145   : > { %v1142_v15 = vpop.permute.xlu1 %1141 }
 0x146   : > { %v1022_v16 = vpop.permute.xlu0 %1021  ;;  %v1147_v17 = vsel %vm962_vm1, %v1142_v15, 0 }
 0x147   : > { %2122 = vmatmul.msk.bf16.vlgmr.msra.gmra.mxu1 %vm962_vm1, %v2917_v7  ;;  %v1027_v18 = vsel %vm962_vm1, %v1022_v16, 0 }
 0x148   : > { %1036 = vmatpush.bf16.xpose.msra.mxu3 %v1027_v18 }
 0x14e   : > { %v1080_v19 = vpop.permute.xlu0 %1079 }
 0x14f   : > { %2124 = vmatmul.msk.bf16.vlgmr.msra.gmra.mxu3 %vm962_vm1, %v1020_v12  ;;  %2127 = vmatmul.msk.bf16.vlgmr.msrb.gmra.mxu0 %vm962_vm1, %v1080_v19 }
 0x150   : > { %1156 = vmatpush.bf16.xpose.msrb.mxu3 %v1147_v17 }
 0x15f   : > { %2130 = vmatmul.msk.bf16.vlgmr.msrb.gmra.mxu3 %vm962_vm1, %v1140_v9 }
 0x1c4   : > { %v978_v20 = vpop.f32.mrf.mxu1 }
 0x1c5   : > { %v982_v22 = vmul.f32 0.35355338, %v978_v20 }
 0x1c7   : > { %v983_v23 = vadd.f32 %v982_v22, %v918_v21 }
 0x1c9   : > { %v984_v24 = vsel %vm962_vm1, %v983_v23, -inf }
 0x1ca   : > { %985 = vmax.xlane.f32.xlu1 %v984_v24 }
 0x1cc   : > { %v980_v25 = vpop.f32.mrf.mxu1  ;;  %v1098_v26 = vpop.f32.mrf.mxu0 }
 0x1cd   : > { %v1102_v31 = vmul.f32 0.35355338, %v1098_v26 }
 0x1cf   : > { %v1103_v34 = vadd.f32 %v1102_v31, %v918_v21  ;;  %v2218_v31 = vld [vmem:[%s3318_s4] sm:$0xff] }
 0x1d1   : > { %v1104_v35 = vsel %vm962_vm1, %v1103_v34, -inf }
 0x1d2   : > { %v1038_v27 = vpop.f32.mrf.mxu3 }
 0x1d3   : > { %v1042_v28 = vmul.f32 0.35355338, %v1038_v27 }
 0x1d4   : > { %v1100_v29 = vpop.f32.mrf.mxu0 }
 0x1d5   : > { %v1043_v30 = vadd.f32 %v1042_v28, %v918_v21 }
 0x1d7   : > { %v1044_v32 = vsel %vm962_vm1, %v1043_v30, -inf }
 0x1d8   : > { %1045 = vmax.xlane.f32.xlu2 %v1044_v32 }
 0x1da   : > { %v1040_v33 = vpop.f32.mrf.mxu3 }
 0x1e0   : > { %1105 = vmax.xlane.f32.xlu2 %v1104_v35 }
 0x1e2   : > { %v1158_v36 = vpop.f32.mrf.mxu3 }
 0x1e3   : > { %v1162_v37 = vmul.f32 0.35355338, %v1158_v36 }
 0x1e5   : > { %v1163_v38 = vadd.f32 %v1162_v37, %v918_v21 }
 0x1e7   : > { %v1164_v39 = vsel %vm962_vm1, %v1163_v38, -inf }
 0x1e8   : > { %1165 = vmax.xlane.f32.xlu0 %v1164_v39 }
 0x1ea   : > { %v1160_v40 = vpop.f32.mrf.mxu3 }
 0x1f8   : > { %997 = vrot.lane.b32.xlu2 %v2917_v7, %s2654_s30  ;;  %s2965_s30 = scalar_lea.vmem [#allocation11], %s3266_s7  ;;  %s3329_s7 = smov 72  }
 0x200   : > { %1178 = vrot.lane.b32.xlu2 %v2917_v7, %s2655_s6  ;;  %s3272_s6 = smov 8  }
 0x23d   : > { %v986_v41 = vpop.xlane.xlu1 %985 }
 0x23e   : > { %v987_v42 = vsub.f32 %v983_v23, %v986_v41 }
 0x240   : > { %v988_v43 = vmul.f32 1.442695, %v987_v42 }
 0x242   : > { %2347 = vpow2.f32 %v988_v43 }
 0x248   : > { %v2348_v44 = vpop.eup %2347 }
 0x249   : > { %v990_v45 = vsel %vm962_vm1, %v2348_v44, 0.0 }
 0x24a   : > { %991 = vadd.xlane.f32.xlu1 %v990_v45  ;;  %v2661_v45 = vmov 256.0  }
 0x24b   : > { %v1046_v46 = vpop.xlane.xlu2 %1045 }
 0x24c   : > { %v1047_v49 = vsub.f32 %v1043_v30, %v1046_v46  ;;  %v2219_v30 = vld [vmem:[%s3318_s4 + $0x8] sm:$0xff]  ;;  %s3334_s4 = smov 16  }
 0x24d   : > { %1246 = vmatpush.bf16.msra.mxu0 %v2219_v30 }
 0x24e   : > { %v1048_v51 = vmul.f32 1.442695, %v1047_v49 }
 0x251   : > { %1247 = vmatpush.bf16.msra.mxu0 %v2218_v31 }
 0x253   : > { %v1106_v47 = vpop.xlane.xlu2 %1105 }
 0x254   : > { %v1107_v48 = vsub.f32 %v1103_v34, %v1106_v47 }
 0x256   : > { %v1108_v50 = vmul.f32 1.442695, %v1107_v48 }
 0x258   : > { %2349 = vpow2.f32 %v1108_v50 }
 0x259   : > { %2351 = vpow2.f32 %v1048_v51 }
 0x25b   : > { %v998_v52 = vpop.permute.xlu2 %997  ;;  %v1166_v53 = vpop.xlane.xlu0 %1165 }
 0x25c   : > { %v1004_v54 = vsel %vm1002_vm2, %v998_v52, 0  ;;  %v1167_v56 = vsub.f32 %v1163_v38, %v1166_v53 }
 0x25d   : > { %1013 = vmatpush.bf16.msra.mxu2 %v1004_v54 }
 0x25e   : > { %v2350_v55 = vpop.eup %2349  ;;  %v1168_v58 = vmul.f32 1.442695, %v1167_v56 }
 0x25f   : > { %v1110_v57 = vsel %vm962_vm1, %v2350_v55, 0.0  ;;  %v2352_v59 = vpop.eup %2351 }
 0x260   : > { %1111 = vadd.xlane.f32.xlu0 %v1110_v57  ;;  %2353 = vpow2.f32 %v1168_v58  ;;  %v1050_v60 = vsel %vm962_vm1, %v2352_v59, 0.0 }
 0x263   : > { %1058 = vrot.lane.b32.xlu1 %v2917_v7, %s2656_s5  ;;  %v1179_v5 = vpop.permute.xlu2 %1178  ;;  %s3271_s5 = smov 16  }
 0x264   : > { %v1184_v8 = vsel %vm1002_vm2, %v1179_v5, 0  ;;  %v2221_v5 = vld [vmem:[%s3322_s23 + $0x8] sm:$0xff] }
 0x266   : > { %v2354_v61 = vpop.eup %2353 }
 0x267   : > { %v1170_v62 = vsel %vm962_vm1, %v2354_v61, 0.0 }
 0x268   : > { %1051 = vadd.xlane.f32.xlu0 %v1050_v60 }
 0x270   : > { %1171 = vadd.xlane.f32.xlu0 %v1170_v62 }
 0x284   : > { %1118 = vrot.lane.b32.xlu0 %v2917_v7, %s2657_s0  ;;  %s3270_s0 = smov 24  }
 0x2bd   : > { %v992_v63 = vpop.xlane.xlu1 %991 }
 0x2be   : > { %2355 = vrcp.f32 %v992_v63 }
 0x2c4   : > { %v2356_v0 = vpop.eup %2355 }
 0x2c5   : > { %v994_v1 = vmul.f32 %v2356_v0, %v2348_v44 }
 0x2c7   : > { %995 = vst.msk [vmem:[%s2965_s30] sm:$0xff] %vm962_vm1, %v994_v1  ;;  %v996_v3 = vpack.c.bf16 %v994_v1, %v994_v1 }
 0x2c9   : > { %2123 = vmatmul.msk.bf16.vlgmr.msra.gmra.mxu2 %vm962_vm1, %v996_v3 }
 0x2d3   : > { %v1112_v4 = vpop.xlane.xlu0 %1111 }
 0x2d4   : > { %2357 = vrcp.f32 %v1112_v4 }
 0x2d5   : > { %v1059_v6 = vpop.permute.xlu1 %1058 }
 0x2d6   : > { %v1064_v7 = vsel %vm1002_vm2, %v1059_v6, 0 }
 0x2d7   : > { %1073 = vmatpush.bf16.msrb.mxu2 %v1064_v7  ;;  %v2220_v7 = vld [vmem:[%s3322_s23] sm:$0xff] }
 0x2da   : > { %v2358_v9 = vpop.eup %2357 }
 0x2db   : > { %1193 = vmatpush.bf16.msra.mxu2 %v1184_v8  ;;  %v1114_v10 = vmul.f32 %v2358_v9, %v2350_v55  ;;  %v1052_v11 = vpop.xlane.xlu0 %1051 }
 0x2dc   : > { %2359 = vrcp.f32 %v1052_v11 }
 0x2dd   : > { %2128 = vst.msk [vmem:[%s2965_s30 + $0x10] sm:$0xff] %vm962_vm1, %v1114_v10  ;;  %v1117_v21 = vpack.c.bf16 %v1114_v10, %v1114_v10 }
 0x2e2   : > { %v2360_v12 = vpop.eup %2359 }
 0x2e3   : > { %v1054_v13 = vmul.f32 %v2360_v12, %v2352_v59  ;;  %v1172_v14 = vpop.xlane.xlu0 %1171 }
 0x2e4   : > { %2361 = vrcp.f32 %v1172_v14 }
 0x2e5   : > { %2125 = vst.msk [vmem:[%s2965_s30 + $0x8] sm:$0xff] %vm962_vm1, %v1054_v13  ;;  %v1057_v15 = vpack.c.bf16 %v1054_v13, %v1054_v13  ;;  %2363 = vrcp.f32 %v2661_v45 }
 0x2e7   : > { %2126 = vmatmul.msk.bf16.vlgmr.msrb.gmra.mxu2 %vm962_vm1, %v1057_v15 }
 0x2ea   : > { %v2362_v16 = vpop.eup %2361 }
 0x2eb   : > { %v1174_v17 = vmul.f32 %v2362_v16, %v2354_v61  ;;  %v2364_v46 = vpop.eup %2363 }
 0x2ec   : > { %v1264_v47 = vmul.f32 256.0, %v2364_v46  ;;  %vm1268_vm5 = vweird.f32 %v2364_v46 }
 0x2ed   : > { %2131 = vst.msk [vmem:[%s2965_s30 + $0x18] sm:$0xff] %vm962_vm1, %v1174_v17  ;;  %v1177_v18 = vpack.c.bf16 %v1174_v17, %v1174_v17 }
 0x2ee   : > { %v1265_v48 = vsub.f32 1.0, %v1264_v47 }
 0x2f0   : > { %v1266_v51 = vmul.f32 %v2364_v46, %v1265_v48 }
 0x2f2   : > { %v1267_v54 = vadd.f32 %v2364_v46, %v1266_v51 }
 0x2f6   : > { %v1119_v19 = vpop.permute.xlu0 %1118 }
 0x2f7   : > { %2132 = vmatmul.msk.bf16.vlgmr.msra.gmra.mxu2 %vm962_vm1, %v1177_v18  ;;  %v1124_v20 = vsel %vm1002_vm2, %v1119_v19, 0 }
 0x2f8   : > { %1133 = vmatpush.bf16.msrb.mxu1 %v1124_v20 }
 0x2fb   : > { %2129 = vmatmul.msk.bf16.vlgmr.msrb.gmra.mxu1 %vm962_vm1, %v1117_v21  ;;  %v1295_v21 = vld [vmem:[%s3244_s18] sm:$0xff] }
 0x2fc   : > { %1329 = vmatpush.bf16.msra.mxu1 %v2221_v5 }
 0x300   : > { %1330 = vmatpush.bf16.msra.mxu1 %v2220_v7 }
 0x34c   : > { %v1015_v22 = vpop.f32.mrf.mxu2 }
 0x354   : > { %v1017_v23 = vpop.f32.mrf.mxu2 }
 0x355   : > { %v1297_v23 = vld [vmem:[%s3245_s19] sm:$0xff] }
 0x36a   : > { %v1075_v24 = vpop.f32.mrf.mxu2 }
 0x36b   : > { %1200 = vrot.lane.b32.xlu1 %v1075_v24, %s3272_s6 }
 0x372   : > { %v1077_v25 = vpop.f32.mrf.mxu2 }
 0x378   : > { %v1135_v26 = vpop.f32.mrf.mxu1 }
 0x379   : > { %1204 = vrot.lane.b32.xlu2 %v1135_v26, %s3271_s5  ;;  %s3321_s5 = sld [smem:[#allocation26_spill]] }
 0x37a   : > { %v1195_v27 = vpop.f32.mrf.mxu2 }
 0x37b   : > { %1208 = vrot.lane.b32.xlu1 %v1195_v27, %s3270_s0  ;;  %s3319_s0 = sld [smem:[#allocation32_spill]]  ;;  %v2342_v27 = vld [vmem:[#allocation2] ss:$0 sm:$0xff] }
 0x37f   : > { %s906_s6 = scalar_lea.vmem %s3321_s5, %s2897_s13  ;;  %s3324_s5 = smov 112  }
 0x380   : > { %v1137_v28 = vpop.f32.mrf.mxu1  ;;  %v917_v0 = vld [vmem:[%s906_s6] sm:$0xff]  ;;  %s3323_s6 = smov 120  }
 0x381   : > { %v2341_v39 = vld [vmem:[%s3319_s0] ss:$0 sm:$0xff]  ;;  %s3320_s0 = sld [smem:[#allocation35_spill]]  ;;  %v1336_v1 = vpack.c.bf16 %v917_v0, %v917_v0 }
 0x382   : > { %v1197_v29 = vpop.f32.mrf.mxu2 }
 0x387   : > { %v2223_v62 = vld [vmem:[%s3320_s0 + $0x8] sm:$0xff]  ;;  %v2222_v63 = vld [vmem:[%s3320_s0] sm:$0xff] }
 0x388   : > { %1366 = vmatpush.bf16.msra.mxu3 %v2223_v62 }
 0x38c   : > { %1367 = vmatpush.bf16.msra.mxu3 %v2222_v63 }
 0x38f   : > { %2159 = vmatmul.msk.bf16.vlgmr.msra.gmra.mxu3 %vm941_vm0, %v1336_v1 }
 0x3d3   : > { %v1205_v34 = vpop.permute.xlu2 %1204 }
 0x3dd   : > { %v1201_v32 = vpop.permute.xlu1 %1200 }
 0x3de   : > { %v1211_v33 = vsel %vm962_vm1, %v1015_v22, %v1201_v32 }
 0x3df   : > { %v1213_v36 = vsel %vm1212_vm3, %v1211_v33, %v1205_v34  ;;  %v2343_v33 = vld [vmem:[%s3325_s27] ss:$0 sm:$0xff]  ;;  %s3077_s27 = scalar_lea.vmem [#allocation13], %s3331_s28  ;;  %s1840_s28 = sand.u32 1, %s2819_s8  }
 0x3ed   : > { %v1209_v35 = vpop.permute.xlu1 %1208 }
 0x3ee   : > { %v1215_v37 = vsel %vm1214_vm4, %v1213_v36, %v1209_v35 }
 0x3ef   : > { %v1216_v38 = vpack.c.bf16 %v1215_v37, %v1215_v37 }
 0x3f1   : > { %2141 = vmatmul.msk.bf16.vlgmr.msra.gmra.mxu0 %vm941_vm0, %v1216_v38 }
 0x412   : > { %v1369_v28 = vpop.f32.mrf.mxu3 }
 0x413   : > { %v1370_v29 = vadd.f32 %v2342_v27, %v1369_v28 }
 0x415   : > { %v3033_v30 = vpack.c.bf16 %v1370_v29, %v1370_v29 }
 0x417   : > { %1434 = vrot.lane.b32.xlu0 %v3033_v30, %s3323_s6  ;;  %v1379_v31 = vsel %vm962_vm1, %v3033_v30, 0 }
 0x418   : > { %1388 = vmatpush.bf16.xpose.msrb.mxu2 %v1379_v31 }
 0x41a   : > { %v1371_v32 = vpop.f32.mrf.mxu3 }
 0x41f   : > { %1494 = vrot.lane.b32.xlu0 %v3033_v30, %s3324_s5 }
 0x46e   : > { %v1249_v40 = vpop.f32.mrf.mxu0 }
 0x46f   : > { %v1250_v41 = vadd.f32 %v2341_v39, %v1249_v40 }
 0x471   : > { %v1253_v42 = vadd.f32 %v1250_v41, %v2909_v2  ;;  %v3000_v2 = vsel %vm1268_vm5, %v2364_v46, %v1267_v54 }
 0x473   : > { %v1254_v43 = vsel %vm941_vm0, %v1253_v42, 0.0 }
 0x474   : > { %1255 = vadd.xlane.f32.xlu2 %v1254_v43 }
 0x476   : > { %v1251_v44 = vpop.f32.mrf.mxu0 }
 0x489   : > { %v1435_v38 = vpop.permute.xlu0 %1434 }
 0x48a   : > { %v1440_v39 = vsel %vm962_vm1, %v1435_v38, 0 }
 0x48b   : > { %1449 = vmatpush.bf16.xpose.msrb.mxu1 %v1440_v39 }
 0x491   : > { %v1495_v40 = vpop.permute.xlu0 %1494 }
 0x492   : > { %v1500_v41 = vsel %vm962_vm1, %v1495_v40, 0 }
 0x493   : > { %1509 = vmatpush.bf16.xpose.msra.mxu2 %v1500_v41 }
 0x4e7   : > { %v1256_v49 = vpop.xlane.xlu2 %1255 }
 0x4e8   : > { %v1257_v50 = vrot.slane %v1256_v49, 4 }
 0x4ea   : > { %v1258_v52 = vadd.f32 %v1257_v50, %v1256_v49 }
 0x4ec   : > { %v1259_v53 = vrot.slane %v1258_v52, 2 }
 0x4ee   : > { %v1260_v55 = vadd.f32 %v1259_v53, %v1258_v52 }
 0x4f0   : > { %v1261_v56 = vrot.slane %v1260_v55, 1 }
 0x4f2   : > { %v1262_v57 = vadd.f32 %v1261_v56, %v1260_v55 }
 0x4f4   : > { %v1270_v58 = vmul.f32 %v3000_v2, %v1262_v57 }
 0x4f6   : > { %v1271_v59 = vsub.f32 %v1253_v42, %v1270_v58 }
 0x4f8   : > { %v1272_v60 = vmul.f32 %v1271_v59, %v1271_v59 }
 0x4fa   : > { %v1273_v61 = vsel %vm941_vm0, %v1272_v60, 0.0 }
 0x4fb   : > { %1274 = vadd.xlane.f32.xlu1 %v1273_v61 }
 0x56e   : > { %v1275_v3 = vpop.xlane.xlu1 %1274 }
 0x56f   : > { %v1276_v4 = vrot.slane %v1275_v3, 4 }
 0x571   : > { %v1277_v6 = vadd.f32 %v1276_v4, %v1275_v3 }
 0x573   : > { %v1278_v8 = vrot.slane %v1277_v6, 2 }
 0x575   : > { %v1279_v9 = vadd.f32 %v1278_v8, %v1277_v6 }
 0x577   : > { %v1280_v10 = vrot.slane %v1279_v9, 1 }
 0x579   : > { %v1281_v11 = vadd.f32 %v1280_v10, %v1279_v9 }
 0x57b   : > { %v1282_v12 = vmul.f32 %v1281_v11, %v3000_v2 }
 0x57d   : > { %v1283_v13 = vadd.f32 1e-05, %v1282_v12 }
 0x57f   : > { %2365 = vrsqrt.f32 %v1283_v13  ;;  %vm1290_vm7 = vweird.f32 %v1283_v13 }
 0x585   : > { %v2366_v14 = vpop.eup %2365 }
 0x586   : > { %v1285_v15 = vmul.f32 %v2366_v14, %v1283_v13  ;;  %vm1291_vm6 = vweird.f32 %v2366_v14 }
 0x587   : > { %vm1292_vm8 = vmor %vm1290_vm7, %vm1291_vm6 }
 0x588   : > { %v1286_v16 = vmul.f32 %v2366_v14, %v1285_v15 }
 0x58a   : > { %v1287_v17 = vmul.f32 0.5, %v1286_v16 }
 0x58c   : > { %v1288_v18 = vsub.f32 1.5, %v1287_v17 }
 0x58e   : > { %v1289_v19 = vmul.f32 %v2366_v14, %v1288_v18 }
 0x590   : > { %v1293_v20 = vsel %vm1292_vm8, %v2366_v14, %v1289_v19 }
 0x591   : > { %v1294_v22 = vmul.f32 %v1293_v20, %v1271_v59 }
 0x593   : > { %v1296_v24 = vmul.f32 %v1295_v21, %v1294_v22 }
 0x595   : > { %v3028_v25 = vadd.f32 %v1297_v23, %v1296_v24 }
 0x597   : > { %v1299_v26 = vpack.c.bf16 %v3028_v25, %v3028_v25 }
 0x599   : > { %2150 = vmatmul.msk.bf16.vlgmr.msra.gmra.mxu1 %vm941_vm0, %v1299_v26 }
 0x616   : > { %v1332_v34 = vpop.f32.mrf.mxu1 }
 0x617   : > { %v1333_v35 = vadd.f32 %v2343_v33, %v1332_v34 }
 0x619   : > { %v1373_v36 = vpack.c.bf16 %v1333_v35, %v1333_v35 }
 0x61b   : > { %1552 = vrot.lane.b32.xlu2 %v1373_v36, %s3326_s1  ;;  %1432 = vrot.lane.b32.xlu0 %v1373_v36, %s3323_s6  ;;  %s914_s6 = scalar_lea.vmem %s3327_s29, %s2897_s13  ;;  %s3330_s13 = smov 88  }
 0x61c   : > { %2160 = vmatmul.msk.bf16.vlgmr.msrb.gmra.mxu2 %vm962_vm1, %v1373_v36  ;;  %v919_v48 = vld [vmem:[%s914_s6] sm:$0xff]  ;;  %s3335_s29 = smov 24  }
 0x61e   : > { %v1334_v37 = vpop.f32.mrf.mxu1 }
 0x623   : > { %1554 = vrot.lane.b32.xlu0 %v3033_v30, %s3326_s1  ;;  %s3332_s1 = smov 80  }
 0x62b   : > { %1492 = vrot.lane.b32.xlu0 %v1373_v36, %s3324_s5  ;;  %s3328_s5 = smov 96  }
 0x675   : > { %v1553_v45 = vpop.permute.xlu2 %1552 }
 0x68d   : > { %v1433_v42 = vpop.permute.xlu0 %1432 }
 0x68e   : > { %2162 = vmatmul.msk.bf16.vlgmr.msrb.gmra.mxu1 %vm962_vm1, %v1433_v42 }
 0x695   : > { %v1555_v43 = vpop.permute.xlu0 %1554 }
 0x696   : > { %v1560_v44 = vsel %vm962_vm1, %v1555_v43, 0 }
 0x697   : > { %1569 = vmatpush.bf16.xpose.msra.mxu1 %v1560_v44 }
 0x69d   : > { %v1493_v46 = vpop.permute.xlu0 %1492 }
 0x69e   : > { %2165 = vmatmul.msk.bf16.vlgmr.msra.gmra.mxu2 %vm962_vm1, %v1493_v46  ;;  %2168 = vmatmul.msk.bf16.vlgmr.msra.gmra.mxu1 %vm962_vm1, %v1553_v45 }
 0x69f   : > { %v1390_v47 = vpop.f32.mrf.mxu2 }
 0x6a0   : > { %v1394_v49 = vmul.f32 0.35355338, %v1390_v47 }
 0x6a2   : > { %v1395_v50 = vadd.f32 %v1394_v49, %v919_v48 }
 0x6a4   : > { %v1396_v51 = vsel %vm962_vm1, %v1395_v50, -inf }
 0x6a5   : > { %1397 = vmax.xlane.f32.xlu0 %v1396_v51 }
 0x6a7   : > { %v1392_v52 = vpop.f32.mrf.mxu2 }
 0x6b9   : > { %1410 = vrot.lane.b32.xlu0 %v3033_v30, %s3328_s5  ;;  %s1872_s5 = sshll.u32 %s2965_s30, 4  ;;  %s2527_s30 = scalar_lea.hbm %s3251_s25, 64  ;;  %s1873_s5 = int_to_ptr.vmem [resolvable:$true] %s1872_s5 }
 0x6c1   : > { %1591 = vrot.lane.b32.xlu0 %v3033_v30, %s3329_s7 }
 0x70b   : > { %v1451_v53 = vpop.f32.mrf.mxu1 }
 0x70c   : > { %v1455_v54 = vmul.f32 0.35355338, %v1451_v53 }
 0x70e   : > { %v1456_v55 = vadd.f32 %v1455_v54, %v919_v48 }
 0x710   : > { %v1457_v56 = vsel %vm962_vm1, %v1456_v55, -inf }
 0x711   : > { %1458 = vmax.xlane.f32.xlu1 %v1457_v56 }
 0x713   : > { %v1453_v57 = vpop.f32.mrf.mxu1 }
 0x718   : > { %v1398_v60 = vpop.xlane.xlu0 %1397 }
 0x719   : > { %v1399_v0 = vsub.f32 %v1395_v50, %v1398_v60 }
 0x71b   : > { %v1571_v58 = vpop.f32.mrf.mxu1  ;;  %v1400_v4 = vmul.f32 1.442695, %v1399_v0 }
 0x71c   : > { %v1575_v1 = vmul.f32 0.35355338, %v1571_v58  ;;  %v2225_v58 = vld [vmem:[%s3336_s12 + $0x8] sm:$0xff] }
 0x71d   : > { %2367 = vpow2.f32 %v1400_v4  ;;  %1657 = vmatpush.bf16.msrb.mxu2 %v2225_v58  ;;  %v2344_v4 = vld [vmem:[#allocation5] ss:$0 sm:$0xff] }
 0x71e   : > { %v1576_v6 = vadd.f32 %v1575_v1, %v919_v48 }
 0x720   : > { %v1577_v9 = vsel %vm962_vm1, %v1576_v6, -inf }
 0x721   : > { %v1511_v59 = vpop.f32.mrf.mxu2 }
 0x722   : > { %v1515_v61 = vmul.f32 0.35355338, %v1511_v59  ;;  %v2224_v59 = vld [vmem:[%s3336_s12] sm:$0xff]  ;;  %s3155_s12 = scalar_lea.sflag [#allocation12], %s1840_s28 }
 0x723   : > { %v1573_v62 = vpop.f32.mrf.mxu1  ;;  %v2368_v10 = vpop.eup %2367  ;;  %1658 = vmatpush.bf16.msrb.mxu2 %v2224_v59 }
 0x724   : > { %v1516_v63 = vadd.f32 %v1515_v61, %v919_v48  ;;  %v1402_v11 = vsel %vm962_vm1, %v2368_v10, 0.0 }
 0x726   : > { %v1517_v3 = vsel %vm962_vm1, %v1516_v63, -inf }
 0x727   : > { %1518 = vmax.xlane.f32.xlu1 %v1517_v3 }
 0x729   : > { %v1513_v5 = vpop.f32.mrf.mxu2 }
 0x72b   : > { %v1411_v7 = vpop.permute.xlu0 %1410 }
 0x72c   : > { %v1416_v8 = vsel %vm1002_vm2, %v1411_v7, 0 }
 0x72d   : > { %1425 = vmatpush.bf16.msrb.mxu0 %v1416_v8 }
 0x72f   : > { %1578 = vmax.xlane.f32.xlu1 %v1577_v9 }
 0x733   : > { %v1592_v33 = vpop.permute.xlu0 %1591 }
 0x734   : > { %v1597_v36 = vsel %vm1002_vm2, %v1592_v33, 0  ;;  %v2230_v33 = vld [vmem:[%s3338_s16 + $0x10] sm:$0xff] }
 0x737   : > { %1403 = vadd.xlane.f32.xlu1 %v1402_v11 }
 0x750   : > { %1471 = vrot.lane.b32.xlu1 %v3033_v30, %s3330_s13 }
 0x784   : > { %v1459_v12 = vpop.xlane.xlu1 %1458 }
 0x785   : > { %v1460_v13 = vsub.f32 %v1456_v55, %v1459_v12 }
 0x787   : > { %v1461_v14 = vmul.f32 1.442695, %v1460_v13 }
 0x789   : > { %2369 = vpow2.f32 %v1461_v14 }
 0x78f   : > { %v2370_v15 = vpop.eup %2369 }
 0x790   : > { %v1463_v16 = vsel %vm962_vm1, %v2370_v15, 0.0 }
 0x791   : > { %1464 = vadd.xlane.f32.xlu2 %v1463_v16 }
 0x79a   : > { %v1519_v17 = vpop.xlane.xlu1 %1518 }
 0x79b   : > { %v1520_v18 = vsub.f32 %v1516_v63, %v1519_v17 }
 0x79d   : > { %v1521_v19 = vmul.f32 1.442695, %v1520_v18 }
 0x79f   : > { %2371 = vpow2.f32 %v1521_v19 }
 0x7a2   : > { %v1579_v20 = vpop.xlane.xlu1 %1578 }
 0x7a3   : > { %v1580_v21 = vsub.f32 %v1576_v6, %v1579_v20 }
 0x7a5   : > { %v2372_v22 = vpop.eup %2371  ;;  %v1581_v23 = vmul.f32 1.442695, %v1580_v21 }
 0x7a6   : > { %v1523_v24 = vsel %vm962_vm1, %v2372_v22, 0.0 }
 0x7a7   : > { %2373 = vpow2.f32 %v1581_v23  ;;  %1524 = vadd.xlane.f32.xlu2 %v1523_v24  ;;  %v2227_v23 = vld [vmem:[%s3337_s14 + $0x8] sm:$0xff] }
 0x7aa   : > { %v1404_v26 = vpop.xlane.xlu1 %1403 }
 0x7ab   : > { %2375 = vrcp.f32 %v1404_v26  ;;  %v2226_v26 = vld [vmem:[%s3337_s14] sm:$0xff] }
 0x7ad   : > { %v2374_v27 = vpop.eup %2373 }
 0x7ae   : > { %v1583_v28 = vsel %vm962_vm1, %v2374_v27, 0.0 }
 0x7af   : > { %1584 = vadd.xlane.f32.xlu1 %v1583_v28 }
 0x7b1   : > { %v2376_v29 = vpop.eup %2375 }
 0x7b2   : > { %v1406_v31 = vmul.f32 %v2376_v29, %v2368_v10 }
 0x7b4   : > { %1407 = vst.msk [vmem:[%s3077_s27] sm:$0xff] %vm962_vm1, %v1406_v31  ;;  %v1408_v32 = vpack.c.bf16 %v1406_v31, %v1406_v31  ;;  %v2231_v31 = vld [vmem:[%s3338_s16 + $0x18] sm:$0xff] }
 0x7b5   : > { %1786 = vmatpush.bf16.msrb.mxu1 %v2231_v31 }
 0x7b6   : > { %2161 = vmatmul.msk.bf16.vlgmr.msrb.gmra.mxu0 %vm962_vm1, %v1408_v32 }
 0x7b9   : > { %1787 = vmatpush.bf16.msrb.mxu1 %v2230_v33 }
 0x7bf   : > { %1531 = vrot.lane.b32.xlu2 %v3033_v30, %s3332_s1  ;;  %s2232_s1 = sshll.u32 %s2819_s8, 5 }
 0x7c0   : > { %s1871_s6 = scalar_lea.hbm %s3251_s25, %s2232_s1  ;;  %s1888_s10 = scalar_lea.hbm %s3252_s26, %s2232_s1 }
 0x7c1   : > { %s1874_s7 = sshll.u32 %s1871_s6, 4  ;;  %s1875_s7 = int_to_ptr.hbm [resolvable:$true] %s1874_s7 }
 0x7c2   : > { %v1472_v34 = vpop.permute.xlu1 %1471  ;;  %s2521_s14 = sshra.s32 %s1875_s7, 4  ;;  %s2522_s14 = int_to_ptr.hbm [resolvable:$true] %s2521_s14 }
 0x7c3   : > { %v1477_v35 = vsel %vm1002_vm2, %v1472_v34, 0  ;;  %s2523_s15 = scalar_lea.hbm %s2522_s14, 32  ;;  %p2528_p3 = scmp.lt.s32.totalorder %s2522_s14, %s3251_s25 }
 0x7c4   : > { %1486 = vmatpush.bf16.msrb.mxu3 %v1477_v35  ;;  %p2524_p0 = scmp.ne.s32.totalorder %s2522_s14, %s2523_s15  ;;  %p2529_p4 = scmp.lt.s32.totalorder %s2527_s30, %s2523_s15 }
 0x7c6   : > { %p2525_p1 = pnand %p2524_p0, %p2838_p5  ;;  %p2530_p7 = por %p2529_p4, %p2528_p3 }
 0x7c8   : > { %1606 = vmatpush.bf16.msra.mxu3 %v1597_v36  ;;  %p2526_p2 = pneg %p2525_p1 }
 0x7ca   : > { %p2531_p8 = pnand %p2530_p7, %p2526_p2 }
 0x804   : > { %v1465_v37 = vpop.xlane.xlu2 %1464 }
 0x805   : > { %2377 = vrcp.f32 %v1465_v37 }
 0x80b   : > { %v2378_v38 = vpop.eup %2377 }
 0x80c   : > { %v1467_v39 = vmul.f32 %v2378_v38, %v2370_v15 }
 0x80e   : > { %2163 = vst.msk [vmem:[%s3077_s27 + $0x8] sm:$0xff] %vm962_vm1, %v1467_v39  ;;  %v1470_v40 = vpack.c.bf16 %v1467_v39, %v1467_v39 }
 0x810   : > { %2164 = vmatmul.msk.bf16.vlgmr.msrb.gmra.mxu3 %vm962_vm1, %v1470_v40 }
 0x81a   : > { %v1525_v30 = vpop.xlane.xlu2 %1524 }
 0x81b   : > { %2379 = vrcp.f32 %v1525_v30 }
 0x821   : > { %v2380_v41 = vpop.eup %2379 }
 0x822   : > { %v1527_v42 = vmul.f32 %v2380_v41, %v2372_v22  ;;  %v1532_v43 = vpop.permute.xlu2 %1531  ;;  %v1585_v44 = vpop.xlane.xlu1 %1584  ;;  %v1699_v41 = vld [vmem:[%s3246_s20] sm:$0xff] }
 0x823   : > { %v1537_v45 = vsel %vm1002_vm2, %v1532_v43, 0  ;;  %2381 = vrcp.f32 %v1585_v44  ;;  %v1701_v43 = vld [vmem:[%s3247_s21] sm:$0xff] }
 0x824   : > { %2166 = vst.msk [vmem:[%s3077_s27 + $0x10] sm:$0xff] %vm962_vm1, %v1527_v42  ;;  %v1530_v46 = vpack.c.bf16 %v1527_v42, %v1527_v42  ;;  %1546 = vmatpush.bf16.msra.mxu0 %v1537_v45 }
 0x827   : > { %2167 = vmatmul.msk.bf16.vlgmr.msra.gmra.mxu0 %vm962_vm1, %v1530_v46 }
 0x828   : > { %1733 = vmatpush.bf16.msrb.mxu0 %v2227_v23 }
 0x829   : > { %v2382_v47 = vpop.eup %2381 }
 0x82a   : > { %v1587_v48 = vmul.f32 %v2382_v47, %v2374_v27  ;;  %v2229_v47 = vld [vmem:[%s3338_s16 + $0x8] sm:$0xff] }
 0x82b   : > { %1788 = vmatpush.bf16.msrb.mxu1 %v2229_v47 }
 0x82c   : > { %2169 = vst.msk [vmem:[%s3077_s27 + $0x18] sm:$0xff] %vm962_vm1, %v1587_v48  ;;  %v1590_v49 = vpack.c.bf16 %v1587_v48, %v1587_v48  ;;  %1734 = vmatpush.bf16.msrb.mxu0 %v2226_v26  ;;  %v2228_v48 = vld [vmem:[%s3338_s16] sm:$0xff] }
 0x82e   : > { %2170 = vmatmul.msk.bf16.vlgmr.msra.gmra.mxu3 %vm962_vm1, %v1590_v49  ;;  %v2345_v49 = vld [vmem:[#allocation7] ss:$0 sm:$0xff] }
 0x82f   : > { %1789 = vmatpush.bf16.msrb.mxu1 %v2228_v48 }
 0x833   : > { %v1427_v50 = vpop.f32.mrf.mxu0 }
 0x83b   : > { %v1429_v51 = vpop.f32.mrf.mxu0 }
 0x893   : > { %v1488_v52 = vpop.f32.mrf.mxu3 }
 0x894   : > { %1613 = vrot.lane.b32.xlu0 %v1488_v52, %s3333_s11 }
 0x89b   : > { %v1490_v53 = vpop.f32.mrf.mxu3 }
 0x8a4   : > { %v1548_v54 = vpop.f32.mrf.mxu0 }
 0x8a5   : > { %1617 = vrot.lane.b32.xlu0 %v1548_v54, %s3334_s4 }
 0x8ac   : > { %v1550_v55 = vpop.f32.mrf.mxu0 }
 0x8ad   : > { %v2346_v55 = vld [vmem:[#allocation8] ss:$0 sm:$0xff] }
 0x8b1   : > { %v1608_v56 = vpop.f32.mrf.mxu3 }
 0x8b2   : > { %1621 = vrot.lane.b32.xlu0 %v1608_v56, %s3335_s29 }
 0x8b9   : > { %v1610_v57 = vpop.f32.mrf.mxu3 }
 0x906   : > { %v1614_v60 = vpop.permute.xlu0 %1613 }
 0x907   : > { %v1624_v62 = vsel %vm962_vm1, %v1427_v50, %v1614_v60 }
 0x917   : > { %v1618_v61 = vpop.permute.xlu0 %1617 }
 0x918   : > { %v1625_v63 = vsel %vm1212_vm3, %v1624_v62, %v1618_v61 }
 0x924   : > { %v1622_v0 = vpop.permute.xlu0 %1621 }
 0x925   : > { %v1626_v1 = vsel %vm1214_vm4, %v1625_v63, %v1622_v0 }
 0x926   : > { %v1627_v3 = vpack.c.bf16 %v1626_v1, %v1626_v1 }
 0x928   : > { %2179 = vmatmul.msk.bf16.vlgmr.msrb.gmra.mxu2 %vm941_vm0, %v1627_v3 }
 0x9ab   : > { %v1660_v5 = vpop.f32.mrf.mxu2 }
 0x9ac   : > { %v1661_v6 = vadd.f32 %v2344_v4, %v1660_v5 }
 0x9ae   : > { %v1664_v7 = vadd.f32 %v1661_v6, %v3028_v25 }
 0x9b0   : > { %v1665_v8 = vsel %vm941_vm0, %v1664_v7, 0.0 }
 0x9b1   : > { %1666 = vadd.xlane.f32.xlu2 %v1665_v8 }
 0x9b3   : > { %v1662_v9 = vpop.f32.mrf.mxu2 }
 0xa24   : > { %v1667_v10 = vpop.xlane.xlu2 %1666 }
 0xa25   : > { %v1668_v11 = vrot.slane %v1667_v10, 4 }
 0xa27   : > { %v1669_v12 = vadd.f32 %v1668_v11, %v1667_v10 }
 0xa29   : > { %v1670_v13 = vrot.slane %v1669_v12, 2 }
 0xa2b   : > { %v1671_v14 = vadd.f32 %v1670_v13, %v1669_v12 }
 0xa2d   : > { %v1672_v15 = vrot.slane %v1671_v14, 1 }
 0xa2f   : > { %v1673_v16 = vadd.f32 %v1672_v15, %v1671_v14 }
 0xa31   : > { %v1674_v17 = vmul.f32 %v1673_v16, %v3000_v2 }
 0xa33   : > { %v1675_v18 = vsub.f32 %v1664_v7, %v1674_v17 }
 0xa35   : > { %v1676_v19 = vmul.f32 %v1675_v18, %v1675_v18 }
 0xa37   : > { %v1677_v20 = vsel %vm941_vm0, %v1676_v19, 0.0 }
 0xa38   : > { %1678 = vadd.xlane.f32.xlu0 %v1677_v20 }
 0xaab   : > { %v1679_v21 = vpop.xlane.xlu0 %1678 }
 0xaac   : > { %v1680_v25 = vrot.slane %v1679_v21, 4 }
 0xaae   : > { %v1681_v22 = vadd.f32 %v1680_v25, %v1679_v21 }
 0xab0   : > { %v1682_v24 = vrot.slane %v1681_v22, 2 }
 0xab2   : > { %v1683_v27 = vadd.f32 %v1682_v24, %v1681_v22 }
 0xab4   : > { %v1684_v28 = vrot.slane %v1683_v27, 1 }
 0xab6   : > { %v1685_v29 = vadd.f32 %v1684_v28, %v1683_v27 }
 0xab8   : > { %v1686_v32 = vmul.f32 %v1685_v29, %v3000_v2 }
 0xaba   : > { %v1687_v34 = vadd.f32 1e-05, %v1686_v32 }
 0xabc   : > { %2383 = vrsqrt.f32 %v1687_v34  ;;  %vm1694_vm10 = vweird.f32 %v1687_v34 }
 0xac2   : > { %v2384_v35 = vpop.eup %2383 }
 0xac3   : > { %v1689_v36 = vmul.f32 %v2384_v35, %v1687_v34  ;;  %vm1695_vm9 = vweird.f32 %v2384_v35 }
 0xac4   : > { %vm1696_vm11 = vmor %vm1694_vm10, %vm1695_vm9 }
 0xac5   : > { %v1690_v37 = vmul.f32 %v2384_v35, %v1689_v36 }
 0xac7   : > { %v1691_v38 = vmul.f32 0.5, %v1690_v37 }
 0xac9   : > { %v1692_v39 = vsub.f32 1.5, %v1691_v38 }
 0xacb   : > { %v1693_v40 = vmul.f32 %v2384_v35, %v1692_v39 }
 0xacd   : > { %v1697_v30 = vsel %vm1696_vm11, %v2384_v35, %v1693_v40 }
 0xace   : > { %v1698_v42 = vmul.f32 %v1697_v30, %v1675_v18 }
 0xad0   : > { %v1700_v44 = vmul.f32 %v1699_v41, %v1698_v42 }
 0xad2   : > { %v1702_v45 = vadd.f32 %v1701_v43, %v1700_v44 }
 0xad4   : > { %v1703_v46 = vpack.c.bf16 %v1702_v45, %v1702_v45 }
 0xad6   : > { %2188 = vmatmul.msk.bf16.vlgmr.msrb.gmra.mxu0 %vm941_vm0, %v1703_v46 }
 0xb53   : > { %v1736_v50 = vpop.f32.mrf.mxu0 }
 0xb54   : > { %v1737_v51 = vadd.f32 %v2345_v49, %v1736_v50 }
 0xb56   : > { %v1740_v52 = vmax.f32 %v1737_v51, 0.0 }
 0xb58   : > { %v1741_v53 = vpack.c.bf16 %v1740_v52, %v1740_v52 }
 0xb5a   : > { %2205 = vmatmul.msk.bf16.vlgmr.msrb.gmra.mxu1 %vm1778_vm12, %v1741_v53 }
 0xb5b   : > { %v1738_v54 = vpop.f32.mrf.mxu0 }
 0xbd7   : > { %v1791_v56 = vpop.f32.mrf.mxu1 }
 0xbd8   : > { %v1792_v57 = vadd.f32 %v2346_v55, %v1791_v56 }
 0xbda   : > { %v1795_v58 = vadd.f32 %v1792_v57, %v1702_v45 }
 0xbdc   : > { %v1796_v59 = vsel %vm941_vm0, %v1795_v58, 0.0 }
 0xbdd   : > { %1797 = vadd.xlane.f32.xlu1 %v1796_v59 }
 0xbdf   : > { %v1793_v60 = vpop.f32.mrf.mxu1 }
 0xc50   : > { %v1798_v61 = vpop.xlane.xlu1 %1797 }
 0xc51   : > { %v1799_v62 = vrot.slane %v1798_v61, 4 }
 0xc53   : > { %v1800_v63 = vadd.f32 %v1799_v62, %v1798_v61 }
 0xc55   : > { %v1801_v0 = vrot.slane %v1800_v63, 2 }
 0xc57   : > { %v1802_v1 = vadd.f32 %v1801_v0, %v1800_v63 }
 0xc59   : > { %v1803_v3 = vrot.slane %v1802_v1, 1 }
 0xc5b   : > { %v1804_v4 = vadd.f32 %v1803_v3, %v1802_v1 }
 0xc5d   : > { %v1805_v5 = vmul.f32 %v1804_v4, %v3000_v2 }
 0xc5f   : > { %v3141_v6 = vsub.f32 %v1795_v58, %v1805_v5 }
 0xc61   : > { %v1807_v7 = vmul.f32 %v3141_v6, %v3141_v6 }
 0xc63   : > { %v1808_v8 = vsel %vm941_vm0, %v1807_v7, 0.0 }
 0xc64   : > { %1809 = vadd.xlane.f32.xlu1 %v1808_v8 }
 0xc65   : > { %2534 = shalt.err (!%p2531_p8)
}
 0xc66   : > { %s2662_s0 = smov 128   ;;  %s1889_s28 = sshll.u32 %s3077_s27, 4  ;;  %s1890_s28 = int_to_ptr.vmem [resolvable:$true] %s1889_s28 }
 0xc67   : > { %2251 = dma.vmem_to_hbm [thread:$0]  (%p2838_p5), %s1873_s5, 512, %s1875_s7, %s3155_s12, %s2662_s0, %s2662_s0, %s3333_s11  }
 0xc68   : > { %s1891_s1 = sshll.u32 %s1888_s10, 4  ;;  %s2555_s4 = scalar_lea.hbm %s3252_s26, 64  ;;  %s1892_s1 = int_to_ptr.hbm [resolvable:$true] %s1891_s1 }
 0xc69   : > { %s2549_s16 = sshra.s32 %s1892_s1, 4  ;;  %s2550_s16 = int_to_ptr.hbm [resolvable:$true] %s2549_s16 }
 0xc6a   : > { %s2551_s13 = scalar_lea.hbm %s2550_s16, 32  ;;  %p2556_p12 = scmp.lt.s32.totalorder %s2550_s16, %s3252_s26 }
 0xc6b   : > { %p2552_p9 = scmp.ne.s32.totalorder %s2550_s16, %s2551_s13  ;;  %p2557_p13 = scmp.lt.s32.totalorder %s2555_s4, %s2551_s13 }
 0xc6d   : > { %p2553_p10 = pnand %p2552_p9, %p2838_p5  ;;  %p2558_p0 = por %p2557_p13, %p2556_p12 }
 0xc6f   : > { %p2554_p11 = pneg %p2553_p10 }
 0xc71   : > { %p2559_p1 = pnand %p2558_p0, %p2554_p11 }
 0xc73   : > { %2562 = shalt.err (!%p2559_p1)
}
 0xc74   : > { %2252 = dma.vmem_to_hbm [thread:$0]  (%p2838_p5), %s1890_s28, 512, %s1892_s1, %s3155_s12, %s2662_s0, %s2662_s0, %s3333_s11  }
 0xc75   : > { %s2106_s12 = sshll.u32 %s2960_s9, 3  ;;  %s2209_s10 = sshll.u32 %s2819_s8, 3 }
 0xc76   : > { %s1856_s5 = scalar_lea.hbm %s3250_s24, %s2209_s10  ;;  %s3339_s1 = sld [smem:[#allocation42_spill]] }
 0xc77   : > { %s884_s8 = scalar_lea.vmem [#allocation10], %s2106_s12  ;;  %s1860_s13 = sshll.u32 %s1856_s5, 4  ;;  %s1861_s13 = int_to_ptr.hbm [resolvable:$true] %s1860_s13 }
 0xc78   : > { %s1858_s16 = sshll.u32 %s884_s8, 4  ;;  %s1836_s14 = scalar_lea.sflag [#allocation4], %s2960_s9  ;;  %s1859_s16 = int_to_ptr.vmem [resolvable:$true] %s1858_s16 }
 0xc79   : > { %s2577_s15 = sshra.s32 %s1861_s13, 4  ;;  %s2583_s12 = scalar_lea.hbm %s3250_s24, 16  ;;  %s2578_s15 = int_to_ptr.hbm [resolvable:$true] %s2577_s15 }
 0xc7a   : > { %s2579_s4 = scalar_lea.hbm %s2578_s15, 8  ;;  %p2584_p7 = scmp.lt.s32.totalorder %s2578_s15, %s3250_s24 }
 0xc7b   : > { %p2580_p2 = scmp.ne.s32.totalorder %s2578_s15, %s2579_s4  ;;  %p2585_p8 = scmp.lt.s32.totalorder %s2583_s12, %s2579_s4 }
 0xc7c   : > { %v1832_v26 = vld [vmem:[%s3339_s1] sm:$0xff] }
 0xc7d   : > { %p2581_p3 = pnand %p2580_p2, %p2838_p5  ;;  %p2586_p9 = por %p2585_p8, %p2584_p7 }
 0xc7f   : > { %p2582_p4 = pneg %p2581_p3 }
 0xc81   : > { %p2587_p10 = pnand %p2586_p9, %p2582_p4 }
 0xcd7   : > { %v1810_v9 = vpop.xlane.xlu1 %1809 }
 0xcd8   : > { %v1811_v10 = vrot.slane %v1810_v9, 4 }
 0xcda   : > { %v1812_v11 = vadd.f32 %v1811_v10, %v1810_v9 }
 0xcdc   : > { %v1813_v12 = vrot.slane %v1812_v11, 2 }
 0xcde   : > { %v1814_v13 = vadd.f32 %v1813_v12, %v1812_v11 }
 0xce0   : > { %v1815_v14 = vrot.slane %v1814_v13, 1 }
 0xce2   : > { %v1816_v15 = vadd.f32 %v1815_v14, %v1814_v13 }
 0xce4   : > { %v1817_v16 = vmul.f32 %v1816_v15, %v3000_v2  ;;  %v1830_v2 = vld [vmem:[%s3248_s22] sm:$0xff] }
 0xce6   : > { %v1818_v17 = vadd.f32 1e-05, %v1817_v16 }
 0xce8   : > { %2385 = vrsqrt.f32 %v1818_v17  ;;  %vm1825_vm14 = vweird.f32 %v1818_v17 }
 0xcee   : > { %v2386_v18 = vpop.eup %2385 }
 0xcef   : > { %v1820_v19 = vmul.f32 %v2386_v18, %v1818_v17  ;;  %vm1826_vm13 = vweird.f32 %v2386_v18 }
 0xcf0   : > { %vm1827_vm15 = vmor %vm1825_vm14, %vm1826_vm13 }
 0xcf1   : > { %v1821_v20 = vmul.f32 %v2386_v18, %v1820_v19 }
 0xcf3   : > { %v1822_v21 = vmul.f32 0.5, %v1821_v20 }
 0xcf5   : > { %v1823_v25 = vsub.f32 1.5, %v1822_v21 }
 0xcf7   : > { %v1824_v22 = vmul.f32 %v2386_v18, %v1823_v25 }
 0xcf9   : > { %v1828_v23 = vsel %vm1827_vm15, %v2386_v18, %v1824_v22 }
 0xcfa   : > { %v1829_v24 = vmul.f32 %v1828_v23, %v3141_v6 }
 0xcfc   : > { %v1831_v27 = vmul.f32 %v1830_v2, %v1829_v24 }
 0xcfe   : > { %v1833_v28 = vadd.f32 %v1832_v26, %v1831_v27 }
 0xd00   : > { %1834 = vst.msk [vmem:[%s884_s8] sm:$0xff] %vm941_vm0, %v1833_v28 }
 0xd01   : > { %2590 = shalt.err (!%p2587_p10)
}
 0xd02   : > { %2250 = dma.vmem_to_hbm [thread:$0]  (%p2838_p5), %s1859_s16, 128, %s1861_s13, %s1836_s14  }
 0xd03 PF: > { %s3340_s9 = sld [smem:[#allocation21_spill]] }
 0xd04   : > { %s3341_s11 = sld [smem:[#allocation19_spill]] }
 0xd09   : > { %p2287_p11 = scmp.ge.s32.totalorder %s3340_s9, 2 }
 0xd0a   : > { %s1906_s7 = sand.u32 1, %s3341_s11  }
 0xd0b   : > { %p2270_p12 = pnand %p2287_p11, %p2842_p6  ;;  %s1907_s6 = scalar_lea.sflag [#allocation4], %s1906_s7 }
 0xd0d   : > { %p2271_p13 = pneg %p2270_p12 }
 0xd0f   : > { %2620 = dma.done.wait (%p2271_p13), %s1907_s6, 128  }
 0xd10   : > { %2622 = vsyncadd (%p2271_p13), %s1907_s6, 4294967168  ;;  %s3343_s0 = sadd.s32 4294967294, %s3340_s9  }
 0xd11   : > { %s1916_s28 = sand.u32 1, %s3343_s0  }
 0xd12   : > { %s1917_s1 = scalar_lea.sflag [#allocation12], %s1916_s28 }
 0xd13   : > { %2624 = dma.done.wait (%p2271_p13), %s1917_s1, 1024  }
 0xd14   : > { %2626 = vsyncadd (%p2271_p13), %s1917_s1, 4294966272  ;;  %s3344_s28 = sld [smem:[#allocation22_spill]]  ;;  %s3347_s27 = smov %s2633_s3 }
 0xd15   : > { %s3345_s2 = sld [smem:[#allocation20_spill]] }
 0xd16   : > { %s3346_s7 = sld [smem:[#allocation23_spill]] }
 0xd1a   : > { %p43_p5 = scmp.ge.s32.totalorder %s3344_s28, 4  }
 0xd1b   : > { %s3348_s3 = smov %s3345_s2 }
 0xd1c   :  { %45 = sbr.rel (!%p43_p5) target bundleno = 27 (0x1b), region = 215 }
 0xd21   :  { %1933 = vsyncpa [#allocation3], 1 }
 0xd22   :  { %1935 = vsyncpa [#allocation3 + $0x1], 1 }
 0xd23   :  { %1936 = vsyncpa [#allocation6], 1 }
 0xd24   :  { %1937 = vsyncpa [#allocation9], 1 }
 0xd25   :  { %1938 = vsyncpa [#allocation4], 1 }
 0xd26   :  { %1940 = vsyncpa [#allocation4 + $0x1], 1 }
 0xd27   :  { %1941 = vsyncpa [#allocation12], 1 }
 0xd28   :  { %1943 = vsyncpa [#allocation12 + $0x1], 1 }

</bundles_post_ra>
